<compile_context>
chip_gen: v5e
topology: v5e:2x2
jax: 0.10.0
libtpu: 0.0.40
codegen_flags: <defaults>
</compile_context>

<pallas_src>
import functools

import jax
import jax.numpy as jnp
import numpy as np
from jax.experimental import pallas as pl
from jax.experimental.pallas import tpu as pltpu

LANE = 128


def _round_up(x, m):
    return (x + m - 1) // m * m


# ----------------------------- Pallas kernel ------------------------------- #

def _fused_block_kernel(x_ref, w1_ref, b1_ref, w2_ref, b2_ref,
                        o_ref, mid_ref, *, H, W, C, Cp):
    """Fused conv1+bn1+relu -> conv2+bn2+residual+relu for one image.

    x_ref  : (1, H+2, W+2, C) bf16  spatially zero-padded NHWC input
    w1_ref : (3, 3*C, C)      bf16  conv1 weights (BN1 scale folded), ky-major,
                                    K dim ordered [kx=0|kx=1|kx=2] x C
    b1_ref : (1, C)           f32   BN1 bias
    w2_ref : (3, 3*C, Cp)     bf16  conv2 weights (BN2 scale folded), cout->Cp
    b2_ref : (1, Cp)          f32   BN2 bias (padded with zeros)
    o_ref  : (1, H*W, Cp)     f32   lane-dense (channel-padded) output
    mid_ref: (H+2, W+2, C)    bf16  VMEM scratch: zero-padded conv1 activation
    """
    M = H * W
    K3 = 3 * C

    xb = x_ref[0]                                         # (H+2, W+2, C) bf16

    # ---- conv1 (3x3, pad=1): kx taps concatenated along channels ----------
    # xcat[r, x, kx*C + c] == xpad[r, x + kx, c]
    xcat = jnp.concatenate(
        [xb[:, 0:W, :], xb[:, 1:W + 1, :], xb[:, 2:W + 2, :]], axis=-1)

    acc1 = jnp.zeros((M, C), jnp.float32)
    for ky in range(3):                                   # 3 matmuls, K = 3*C
        acc1 = acc1 + jnp.dot(xcat[ky:ky + H].reshape(M, K3), w1_ref[ky],
                              preferred_element_type=jnp.float32)
    act1 = jnp.maximum(acc1 + b1_ref[...], 0.0)           # (M, C) f32
    act1_hwc = act1.astype(jnp.bfloat16).reshape(H, W, C)

    # ---- stage-2 input stays in VMEM: write only the halo + interior -------
    # Halo is rewritten every grid step (cheap: 2 rows + 2 cols) so the kernel
    # does not rely on scratch state surviving a megacore grid split.
    zrow = jnp.zeros((W + 2, C), jnp.bfloat16)
    zcol = jnp.zeros((H, 1, C), jnp.bfloat16)
    mid_ref[0, :, :] = zrow
    mid_ref[H + 1, :, :] = zrow
    mid_ref[1:H + 1, 0:1, :] = zcol
    mid_ref[1:H + 1, W + 1:W + 2, :] = zcol
    mid_ref[1:H + 1, 1:W + 1, :] = act1_hwc

    # ---- conv2 (3x3, pad=1) + bn2 + residual + relu ------------------------
    mid = mid_ref[...]                                    # (H+2, W+2, C) bf16
    mcat = jnp.concatenate(
        [mid[:, 0:W, :], mid[:, 1:W + 1, :], mid[:, 2:W + 2, :]], axis=-1)

    acc2 = jnp.zeros((M, Cp), jnp.float32)
    for ky in range(3):                                   # 3 matmuls, K = 3*C
        acc2 = acc2 + jnp.dot(mcat[ky:ky + H].reshape(M, K3), w2_ref[ky],
                              preferred_element_type=jnp.float32)

    # Residual from the bf16 input copy (cast up; no MXU identity projection).
    res = xb[1:H + 1, 1:W + 1, :].astype(jnp.float32).reshape(M, C)
    if Cp > C:
        res = jnp.concatenate(
            [res, jnp.zeros((M, Cp - C), jnp.float32)], axis=-1)

    o_ref[0] = jnp.maximum(acc2 + b2_ref[...] + res, 0.0)


# ------------------------------ JAX wrapper -------------------------------- #

def _fold_bn(gamma, beta, running_mean, running_var, eps=1e-5):
    scale = gamma / jnp.sqrt(running_var + eps)
    bias = beta - running_mean * scale
    return scale.astype(jnp.float32), bias.astype(jnp.float32)


def _prep_weight(w_oihw, scale, cout_pad):
    """(O, I, 3, 3) -> (3, 3*I, cout_pad) bf16, BN scale folded, ky-major."""
    O, I, KH, KW = w_oihw.shape
    wf = w_oihw.astype(jnp.float32) * scale[:, None, None, None]
    wm = jnp.transpose(wf, (2, 3, 1, 0)).reshape(KH, KW * I, O)  # [ky, kx*I+i, o]
    if cout_pad > O:
        wm = jnp.pad(wm, ((0, 0), (0, 0), (0, cout_pad - O)))
    return wm.astype(jnp.bfloat16)


def _prep_bias(bias, cout_pad):
    if cout_pad > bias.shape[0]:
        bias = jnp.pad(bias, (0, cout_pad - bias.shape[0]))
    return bias[None, :].astype(jnp.float32)


@jax.jit
def basic_block_forward(x_nchw, params):
    """BasicBlock forward (stride=1, no downsample). NCHW f32 in/out."""
    x = jnp.transpose(x_nchw, (0, 2, 3, 1))                       # NHWC
    N, H, W, C = x.shape
    planes = params["conv1_w"].shape[0]
    assert planes == C, "stride=1 / no-downsample BasicBlock needs inplanes == planes"

    Cp = _round_up(planes, LANE)       # lane-dense output channels only

    s1, b1 = _fold_bn(*params["bn1"])
    s2, b2 = _fold_bn(*params["bn2"])
    w1 = _prep_weight(params["conv1_w"], s1, C)                   # (3, 3C, C)
    w2 = _prep_weight(params["conv2_w"], s2, Cp)                  # (3, 3C, Cp)
    b1p = _prep_bias(b1, C)                                       # (1, C)
    b2p = _prep_bias(b2, Cp)                                      # (1, Cp)

    # bf16 input DMA (halves the largest per-step HBM transfer); the residual
    # is taken from this bf16 copy inside the kernel (deliberate precision
    # choice — conv inputs are bf16 either way, MXU accumulation stays f32).
    xb = x.astype(jnp.bfloat16)
    xp = jnp.pad(xb, ((0, 0), (1, 1), (1, 1), (0, 0)))            # spatial pad

    kernel = functools.partial(_fused_block_kernel, H=H, W=W, C=C, Cp=Cp)

    out = pl.pallas_call(
        kernel,
        out_shape=jax.ShapeDtypeStruct((N, H * W, Cp), jnp.float32),
        grid_spec=pltpu.PrefetchScalarGridSpec(
            num_scalar_prefetch=0,
            grid=(N,),
            in_specs=[
                pl.BlockSpec((1, H + 2, W + 2, C), lambda n: (n, 0, 0, 0)),
                pl.BlockSpec((3, 3 * C, C), lambda n: (0, 0, 0)),   # resident
                pl.BlockSpec((1, C), lambda n: (0, 0)),             # resident
                pl.BlockSpec((3, 3 * C, Cp), lambda n: (0, 0, 0)),  # resident
                pl.BlockSpec((1, Cp), lambda n: (0, 0)),            # resident
            ],
            out_specs=pl.BlockSpec((1, H * W, Cp), lambda n: (n, 0, 0)),
            scratch_shapes=[pltpu.VMEM((H + 2, W + 2, C), jnp.bfloat16)],
        ),
        compiler_params=pltpu.CompilerParams(
            dimension_semantics=("parallel",),
            vmem_limit_bytes=64 * 1024 * 1024,
        ),
    )(xp, w1, b1p, w2, b2p)

    # TODO(synk): benchmark emitting only `planes` output channels (masked
    #             stores) vs. this lane-dense Cp-padded layout.
    out = out.reshape(N, H, W, Cp)[..., :planes]
    return jnp.transpose(out, (0, 3, 1, 2)).astype(x_nchw.dtype)  # back to NCHW


# --------------------------- pure-JAX reference ----------------------------- #

def reference_forward(x_nchw, params):
    def conv(x, w):
        return jax.lax.conv_general_dilated(
            x, w, window_strides=(1, 1), padding=((1, 1), (1, 1)),
            dimension_numbers=("NCHW", "OIHW", "NCHW"))

    def bn(x, gamma, beta, mean, var, eps=1e-5):
        s = gamma / jnp.sqrt(var + eps)
        b = beta - mean * s
        return x * s[None, :, None, None] + b[None, :, None, None]

    out = jnp.maximum(bn(conv(x_nchw, params["conv1_w"]), *params["bn1"]), 0.0)
    out = bn(conv(out, params["conv2_w"]), *params["bn2"])
    return jnp.maximum(out + x_nchw, 0.0)


# ----------------------------------- main ----------------------------------- #

if __name__ == "__main__":
    inplanes, planes = 4, 4
    N, H, W = 2, 16, 16

    key = jax.random.PRNGKey(0)
    k = jax.random.split(key, 10)

    x = jax.random.normal(k[0], (N, inplanes, H, W), dtype=jnp.float32)

    params = {
        "conv1_w": 0.1 * jax.random.normal(k[1], (planes, inplanes, 3, 3), jnp.float32),
        "conv2_w": 0.1 * jax.random.normal(k[2], (planes, planes, 3, 3), jnp.float32),
        "bn1": (  # gamma, beta, running_mean, running_var
            1.0 + 0.1 * jax.random.normal(k[3], (planes,), jnp.float32),
            0.1 * jax.random.normal(k[4], (planes,), jnp.float32),
            0.1 * jax.random.normal(k[5], (planes,), jnp.float32),
            jnp.abs(jax.random.normal(k[6], (planes,), jnp.float32)) + 0.5,
        ),
        "bn2": (
            1.0 + 0.1 * jax.random.normal(k[7], (planes,), jnp.float32),
            0.1 * jax.random.normal(k[8], (planes,), jnp.float32),
            0.1 * jax.random.normal(k[9], (planes,), jnp.float32),
            jnp.abs(jax.random.normal(k[6], (planes,), jnp.float32)) + 0.5,
        ),
    }

    out = jax.block_until_ready(basic_block_forward(x, params))
    ref = jax.block_until_ready(reference_forward(x, params))

    # bf16 conv inputs / bf16 residual copy vs. the all-f32 reference
    # (deliberate, documented precision choice; MXU accumulation is f32).
    np.testing.assert_allclose(np.asarray(out), np.asarray(ref), rtol=2e-2, atol=3e-2)

    print("KERNEL_OK")
</pallas_src>

<mosaic_0001>
module attributes {stable_mosaic.version = 11 : i64} {
  func.func @_fused_block_kernel(%arg0: i32, %arg1: memref<1x18x18x4xbf16, #tpu.memory_space<vmem>>, %arg2: memref<3x12x4xbf16, #tpu.memory_space<vmem>>, %arg3: memref<1x4xf32, #tpu.memory_space<vmem>>, %arg4: memref<3x12x128xbf16, #tpu.memory_space<vmem>>, %arg5: memref<1x128xf32, #tpu.memory_space<vmem>>, %arg6: memref<1x256x128xf32, #tpu.memory_space<vmem>>, %arg7: memref<18x18x4xbf16, #tpu.memory_space<vmem>>) attributes {dimension_semantics = [#tpu.dimension_semantics<parallel>], iteration_bounds = array<i64: 2>, scalar_prefetch = 0 : i64, scratch_operands = 1 : i64, tpu.core_type = #tpu.core_type<tc>, window_params = [{transform_indices = @transform_0, window_bounds = array<i64: 1, 18, 18, 4>}, {pipeline_mode = #tpu.pipeline_mode<synchronous>, transform_indices = @transform_1, window_bounds = array<i64: 3, 12, 4>}, {pipeline_mode = #tpu.pipeline_mode<synchronous>, transform_indices = @transform_2, window_bounds = array<i64: 1, 4>}, {pipeline_mode = #tpu.pipeline_mode<synchronous>, transform_indices = @transform_3, window_bounds = array<i64: 3, 12, 128>}, {pipeline_mode = #tpu.pipeline_mode<synchronous>, transform_indices = @transform_4, window_bounds = array<i64: 1, 128>}, {transform_indices = @transform_5, window_bounds = array<i64: 1, 256, 128>}]} {
    %c0 = arith.constant 0 : index
    %c0_0 = arith.constant 0 : index
    %c0_1 = arith.constant 0 : index
    %c0_2 = arith.constant 0 : index
    %0 = vector.load %arg1[%c0, %c0_0, %c0_1, %c0_2] : memref<1x18x18x4xbf16, #tpu.memory_space<vmem>>, vector<1x18x18x4xbf16>
    %1 = vector.shape_cast %0 : vector<1x18x18x4xbf16> to vector<18x18x4xbf16>
    %2 = vector.extract_strided_slice %1 {offsets = [0, 0, 0], sizes = [18, 16, 4], strides = [1, 1, 1]} : vector<18x18x4xbf16> to vector<18x16x4xbf16>
    %3 = vector.extract_strided_slice %1 {offsets = [0, 1, 0], sizes = [18, 16, 4], strides = [1, 1, 1]} : vector<18x18x4xbf16> to vector<18x16x4xbf16>
    %4 = vector.extract_strided_slice %1 {offsets = [0, 2, 0], sizes = [18, 16, 4], strides = [1, 1, 1]} : vector<18x18x4xbf16> to vector<18x16x4xbf16>
    %5 = tpu.concatenate %2, %3, %4 in 2 : vector<18x16x4xbf16>, vector<18x16x4xbf16>, vector<18x16x4xbf16> -> vector<18x16x12xbf16>
    %cst = arith.constant 0.000000e+00 : f32
    %6 = vector.broadcast %cst : f32 to vector<256x4xf32>
    %7 = vector.extract_strided_slice %5 {offsets = [0, 0, 0], sizes = [16, 16, 12], strides = [1, 1, 1]} : vector<18x16x12xbf16> to vector<16x16x12xbf16>
    %8 = vector.shape_cast %7 : vector<16x16x12xbf16> to vector<256x12xbf16>
    %c0_3 = arith.constant 0 : index
    %c0_4 = arith.constant 0 : index
    %c0_5 = arith.constant 0 : index
    %9 = vector.load %arg2[%c0_3, %c0_4, %c0_5] : memref<3x12x4xbf16, #tpu.memory_space<vmem>>, vector<1x12x4xbf16>
    %10 = vector.shape_cast %9 : vector<1x12x4xbf16> to vector<12x4xbf16>
    %cst_6 = arith.constant dense<0.000000e+00> : vector<256x4xf32>
    %11 = tpu.matmul %8, %10, %cst_6 {dimension_numbers = #tpu.dot_dimension_numbers<[1], [0], [0], [1], [0, 0, 1, 1], [], []>} : vector<256x12xbf16>, vector<12x4xbf16>, vector<256x4xf32> -> vector<256x4xf32>
    %12 = arith.addf %6, %11 : vector<256x4xf32>
    %13 = vector.extract_strided_slice %5 {offsets = [1, 0, 0], sizes = [16, 16, 12], strides = [1, 1, 1]} : vector<18x16x12xbf16> to vector<16x16x12xbf16>
    %14 = vector.shape_cast %13 : vector<16x16x12xbf16> to vector<256x12xbf16>
    %c1 = arith.constant 1 : index
    %c0_7 = arith.constant 0 : index
    %c0_8 = arith.constant 0 : index
    %15 = vector.load %arg2[%c1, %c0_7, %c0_8] : memref<3x12x4xbf16, #tpu.memory_space<vmem>>, vector<1x12x4xbf16>
    %16 = vector.shape_cast %15 : vector<1x12x4xbf16> to vector<12x4xbf16>
    %cst_9 = arith.constant dense<0.000000e+00> : vector<256x4xf32>
    %17 = tpu.matmul %14, %16, %cst_9 {dimension_numbers = #tpu.dot_dimension_numbers<[1], [0], [0], [1], [0, 0, 1, 1], [], []>} : vector<256x12xbf16>, vector<12x4xbf16>, vector<256x4xf32> -> vector<256x4xf32>
    %18 = arith.addf %12, %17 : vector<256x4xf32>
    %19 = vector.extract_strided_slice %5 {offsets = [2, 0, 0], sizes = [16, 16, 12], strides = [1, 1, 1]} : vector<18x16x12xbf16> to vector<16x16x12xbf16>
    %20 = vector.shape_cast %19 : vector<16x16x12xbf16> to vector<256x12xbf16>
    %c2 = arith.constant 2 : index
    %c0_10 = arith.constant 0 : index
    %c0_11 = arith.constant 0 : index
    %21 = vector.load %arg2[%c2, %c0_10, %c0_11] : memref<3x12x4xbf16, #tpu.memory_space<vmem>>, vector<1x12x4xbf16>
    %22 = vector.shape_cast %21 : vector<1x12x4xbf16> to vector<12x4xbf16>
    %cst_12 = arith.constant dense<0.000000e+00> : vector<256x4xf32>
    %23 = tpu.matmul %20, %22, %cst_12 {dimension_numbers = #tpu.dot_dimension_numbers<[1], [0], [0], [1], [0, 0, 1, 1], [], []>} : vector<256x12xbf16>, vector<12x4xbf16>, vector<256x4xf32> -> vector<256x4xf32>
    %24 = arith.addf %18, %23 : vector<256x4xf32>
    %c0_13 = arith.constant 0 : index
    %c0_14 = arith.constant 0 : index
    %25 = vector.load %arg3[%c0_13, %c0_14] : memref<1x4xf32, #tpu.memory_space<vmem>>, vector<1x4xf32>
    %26 = vector.broadcast %25 : vector<1x4xf32> to vector<256x4xf32>
    %27 = arith.addf %24, %26 : vector<256x4xf32>
    %cst_15 = arith.constant 0.000000e+00 : f32
    %28 = vector.broadcast %cst_15 : f32 to vector<256x4xf32>
    %29 = arith.maximumf %27, %28 : vector<256x4xf32>
    %30 = arith.truncf %29 : vector<256x4xf32> to vector<256x4xbf16>
    %31 = vector.shape_cast %30 : vector<256x4xbf16> to vector<16x16x4xbf16>
    %cst_16 = arith.constant 0.000000e+00 : bf16
    %32 = vector.broadcast %cst_16 : bf16 to vector<18x4xbf16>
    %cst_17 = arith.constant 0.000000e+00 : bf16
    %33 = vector.broadcast %cst_17 : bf16 to vector<16x1x4xbf16>
    %c0_18 = arith.constant 0 : index
    %c0_19 = arith.constant 0 : index
    %c0_20 = arith.constant 0 : index
    %34 = vector.load %arg7[%c0_18, %c0_19, %c0_20] : memref<18x18x4xbf16, #tpu.memory_space<vmem>>, vector<1x18x4xbf16>
    %35 = vector.shape_cast %34 : vector<1x18x4xbf16> to vector<18x4xbf16>
    %36 = vector.shape_cast %32 : vector<18x4xbf16> to vector<1x18x4xbf16>
    tpu.vector_store %arg7[%c0_18, %c0_19, %c0_20], %36 {strides = array<i32>} : memref<18x18x4xbf16, #tpu.memory_space<vmem>>, vector<1x18x4xbf16>,
    %c17 = arith.constant 17 : index
    %c0_21 = arith.constant 0 : index
    %c0_22 = arith.constant 0 : index
    %37 = vector.load %arg7[%c17, %c0_21, %c0_22] : memref<18x18x4xbf16, #tpu.memory_space<vmem>>, vector<1x18x4xbf16>
    %38 = vector.shape_cast %37 : vector<1x18x4xbf16> to vector<18x4xbf16>
    %39 = vector.shape_cast %32 : vector<18x4xbf16> to vector<1x18x4xbf16>
    tpu.vector_store %arg7[%c17, %c0_21, %c0_22], %39 {strides = array<i32>} : memref<18x18x4xbf16, #tpu.memory_space<vmem>>, vector<1x18x4xbf16>,
    %c1_23 = arith.constant 1 : index
    %c0_24 = arith.constant 0 : index
    %c0_25 = arith.constant 0 : index
    %40 = vector.load %arg7[%c1_23, %c0_24, %c0_25] : memref<18x18x4xbf16, #tpu.memory_space<vmem>>, vector<16x1x4xbf16>
    tpu.vector_store %arg7[%c1_23, %c0_24, %c0_25], %33 {strides = array<i32>} : memref<18x18x4xbf16, #tpu.memory_space<vmem>>, vector<16x1x4xbf16>,
    %c1_26 = arith.constant 1 : index
    %c17_27 = arith.constant 17 : index
    %c0_28 = arith.constant 0 : index
    %41 = vector.load %arg7[%c1_26, %c17_27, %c0_28] : memref<18x18x4xbf16, #tpu.memory_space<vmem>>, vector<16x1x4xbf16>
    tpu.vector_store %arg7[%c1_26, %c17_27, %c0_28], %33 {strides = array<i32>} : memref<18x18x4xbf16, #tpu.memory_space<vmem>>, vector<16x1x4xbf16>,
    %c1_29 = arith.constant 1 : index
    %c1_30 = arith.constant 1 : index
    %c0_31 = arith.constant 0 : index
    %42 = vector.load %arg7[%c1_29, %c1_30, %c0_31] : memref<18x18x4xbf16, #tpu.memory_space<vmem>>, vector<16x16x4xbf16>
    tpu.vector_store %arg7[%c1_29, %c1_30, %c0_31], %31 {strides = array<i32>} : memref<18x18x4xbf16, #tpu.memory_space<vmem>>, vector<16x16x4xbf16>,
    %c0_32 = arith.constant 0 : index
    %c0_33 = arith.constant 0 : index
    %c0_34 = arith.constant 0 : index
    %43 = vector.load %arg7[%c0_32, %c0_33, %c0_34] : memref<18x18x4xbf16, #tpu.memory_space<vmem>>, vector<18x18x4xbf16>
    %44 = vector.extract_strided_slice %43 {offsets = [0, 0, 0], sizes = [18, 16, 4], strides = [1, 1, 1]} : vector<18x18x4xbf16> to vector<18x16x4xbf16>
    %45 = vector.extract_strided_slice %43 {offsets = [0, 1, 0], sizes = [18, 16, 4], strides = [1, 1, 1]} : vector<18x18x4xbf16> to vector<18x16x4xbf16>
    %46 = vector.extract_strided_slice %43 {offsets = [0, 2, 0], sizes = [18, 16, 4], strides = [1, 1, 1]} : vector<18x18x4xbf16> to vector<18x16x4xbf16>
    %47 = tpu.concatenate %44, %45, %46 in 2 : vector<18x16x4xbf16>, vector<18x16x4xbf16>, vector<18x16x4xbf16> -> vector<18x16x12xbf16>
    %cst_35 = arith.constant 0.000000e+00 : f32
    %48 = vector.broadcast %cst_35 : f32 to vector<256x128xf32>
    %49 = vector.extract_strided_slice %47 {offsets = [0, 0, 0], sizes = [16, 16, 12], strides = [1, 1, 1]} : vector<18x16x12xbf16> to vector<16x16x12xbf16>
    %50 = vector.shape_cast %49 : vector<16x16x12xbf16> to vector<256x12xbf16>
    %c0_36 = arith.constant 0 : index
    %c0_37 = arith.constant 0 : index
    %c0_38 = arith.constant 0 : index
    %51 = vector.load %arg4[%c0_36, %c0_37, %c0_38] : memref<3x12x128xbf16, #tpu.memory_space<vmem>>, vector<1x12x128xbf16>
    %52 = vector.shape_cast %51 : vector<1x12x128xbf16> to vector<12x128xbf16>
    %cst_39 = arith.constant dense<0.000000e+00> : vector<256x128xf32>
    %53 = tpu.matmul %50, %52, %cst_39 {dimension_numbers = #tpu.dot_dimension_numbers<[1], [0], [0], [1], [0, 0, 1, 1], [], []>} : vector<256x12xbf16>, vector<12x128xbf16>, vector<256x128xf32> -> vector<256x128xf32>
    %54 = arith.addf %48, %53 : vector<256x128xf32>
    %55 = vector.extract_strided_slice %47 {offsets = [1, 0, 0], sizes = [16, 16, 12], strides = [1, 1, 1]} : vector<18x16x12xbf16> to vector<16x16x12xbf16>
    %56 = vector.shape_cast %55 : vector<16x16x12xbf16> to vector<256x12xbf16>
    %c1_40 = arith.constant 1 : index
    %c0_41 = arith.constant 0 : index
    %c0_42 = arith.constant 0 : index
    %57 = vector.load %arg4[%c1_40, %c0_41, %c0_42] : memref<3x12x128xbf16, #tpu.memory_space<vmem>>, vector<1x12x128xbf16>
    %58 = vector.shape_cast %57 : vector<1x12x128xbf16> to vector<12x128xbf16>
    %cst_43 = arith.constant dense<0.000000e+00> : vector<256x128xf32>
    %59 = tpu.matmul %56, %58, %cst_43 {dimension_numbers = #tpu.dot_dimension_numbers<[1], [0], [0], [1], [0, 0, 1, 1], [], []>} : vector<256x12xbf16>, vector<12x128xbf16>, vector<256x128xf32> -> vector<256x128xf32>
    %60 = arith.addf %54, %59 : vector<256x128xf32>
    %61 = vector.extract_strided_slice %47 {offsets = [2, 0, 0], sizes = [16, 16, 12], strides = [1, 1, 1]} : vector<18x16x12xbf16> to vector<16x16x12xbf16>
    %62 = vector.shape_cast %61 : vector<16x16x12xbf16> to vector<256x12xbf16>
    %c2_44 = arith.constant 2 : index
    %c0_45 = arith.constant 0 : index
    %c0_46 = arith.constant 0 : index
    %63 = vector.load %arg4[%c2_44, %c0_45, %c0_46] : memref<3x12x128xbf16, #tpu.memory_space<vmem>>, vector<1x12x128xbf16>
    %64 = vector.shape_cast %63 : vector<1x12x128xbf16> to vector<12x128xbf16>
    %cst_47 = arith.constant dense<0.000000e+00> : vector<256x128xf32>
    %65 = tpu.matmul %62, %64, %cst_47 {dimension_numbers = #tpu.dot_dimension_numbers<[1], [0], [0], [1], [0, 0, 1, 1], [], []>} : vector<256x12xbf16>, vector<12x128xbf16>, vector<256x128xf32> -> vector<256x128xf32>
    %66 = arith.addf %60, %65 : vector<256x128xf32>
    %67 = vector.extract_strided_slice %1 {offsets = [1, 1, 0], sizes = [16, 16, 4], strides = [1, 1, 1]} : vector<18x18x4xbf16> to vector<16x16x4xbf16>
    %68 = arith.extf %67 : vector<16x16x4xbf16> to vector<16x16x4xf32>
    %69 = vector.shape_cast %68 : vector<16x16x4xf32> to vector<256x4xf32>
    %cst_48 = arith.constant 0.000000e+00 : f32
    %70 = vector.broadcast %cst_48 : f32 to vector<256x124xf32>
    %71 = tpu.concatenate %69, %70 in 1 : vector<256x4xf32>, vector<256x124xf32> -> vector<256x128xf32>
    %c0_49 = arith.constant 0 : index
    %c0_50 = arith.constant 0 : index
    %72 = vector.load %arg5[%c0_49, %c0_50] : memref<1x128xf32, #tpu.memory_space<vmem>>, vector<1x128xf32>
    %73 = vector.broadcast %72 : vector<1x128xf32> to vector<256x128xf32>
    %74 = arith.addf %66, %73 : vector<256x128xf32>
    %75 = arith.addf %74, %71 : vector<256x128xf32>
    %cst_51 = arith.constant 0.000000e+00 : f32
    %76 = vector.broadcast %cst_51 : f32 to vector<256x128xf32>
    %77 = arith.maximumf %75, %76 : vector<256x128xf32>
    %c0_52 = arith.constant 0 : index
    %c0_53 = arith.constant 0 : index
    %c0_54 = arith.constant 0 : index
    %78 = vector.load %arg6[%c0_52, %c0_53, %c0_54] : memref<1x256x128xf32, #tpu.memory_space<vmem>>, vector<1x256x128xf32>
    %79 = vector.shape_cast %78 : vector<1x256x128xf32> to vector<256x128xf32>
    %80 = vector.shape_cast %77 : vector<256x128xf32> to vector<1x256x128xf32>
    tpu.vector_store %arg6[%c0_52, %c0_53, %c0_54], %80 {strides = array<i32>} : memref<1x256x128xf32, #tpu.memory_space<vmem>>, vector<1x256x128xf32>,
    return
  }
  func.func @transform_0(%arg0: i32) -> (i32, i32, i32, i32) {
    %c0_i32 = arith.constant 0 : i32
    %c0_i32_0 = arith.constant 0 : i32
    %c0_i32_1 = arith.constant 0 : i32
    %c0_i32_2 = arith.constant 0 : i32
    return %arg0, %c0_i32, %c0_i32_0, %c0_i32_1 : i32, i32, i32, i32
  }
  func.func @transform_1(%arg0: i32) -> (i32, i32, i32) {
    %c0_i32 = arith.constant 0 : i32
    %c0_i32_0 = arith.constant 0 : i32
    %c0_i32_1 = arith.constant 0 : i32
    %c0_i32_2 = arith.constant 0 : i32
    return %c0_i32, %c0_i32_0, %c0_i32_1 : i32, i32, i32
  }
  func.func @transform_2(%arg0: i32) -> (i32, i32) {
    %c0_i32 = arith.constant 0 : i32
    %c0_i32_0 = arith.constant 0 : i32
    %c0_i32_1 = arith.constant 0 : i32
    return %c0_i32, %c0_i32_0 : i32, i32
  }
  func.func @transform_3(%arg0: i32) -> (i32, i32, i32) {
    %c0_i32 = arith.constant 0 : i32
    %c0_i32_0 = arith.constant 0 : i32
    %c0_i32_1 = arith.constant 0 : i32
    %c0_i32_2 = arith.constant 0 : i32
    return %c0_i32, %c0_i32_0, %c0_i32_1 : i32, i32, i32
  }
  func.func @transform_4(%arg0: i32) -> (i32, i32) {
    %c0_i32 = arith.constant 0 : i32
    %c0_i32_0 = arith.constant 0 : i32
    %c0_i32_1 = arith.constant 0 : i32
    return %c0_i32, %c0_i32_0 : i32, i32
  }
  func.func @transform_5(%arg0: i32) -> (i32, i32, i32) {
    %c0_i32 = arith.constant 0 : i32
    %c0_i32_0 = arith.constant 0 : i32
    %c0_i32_1 = arith.constant 0 : i32
    return %arg0, %c0_i32, %c0_i32_0 : i32, i32, i32
  }
}

</mosaic_0001>

<bundles_post_ra>
// kernel: basic_block_forward.1
= control target key start
LH: loop header
LB: loop body
LE: loop exit
PB: predicated region body
PF: predicated region fallthrough
CT: control target
= control target key end

     0   :  { %s3667_s18 = smov 0   ;;  %s4942_s0 = inlined_call_operand.vmem [shape: bf16[2,18,18,4], index: 0, kind: input, shape index: {}]   ;;  %s4943_s1 = inlined_call_operand.vmem [shape: bf16[3,12,4], index: 1, kind: input, shape index: {}]   ;;  %s4944_s2 = inlined_call_operand.vmem [shape: f32[1,4], index: 2, kind: input, shape index: {}]   ;;  %s4945_s3 = inlined_call_operand.vmem [shape: bf16[3,12,128], index: 3, kind: input, shape index: {}]   ;;  %s4946_s4 = inlined_call_operand.vmem [shape: f32[1,128], index: 4, kind: input, shape index: {}]   ;;  %s4947_s5 = inlined_call_operand.vmem [shape: f32[2,256,128], index: 5, kind: output, shape index: {}]  }
   0x1 LB: > { %s3265_s19 = sadd.s32 4294967295, %s3632_s18   ;;  %p3269_p0 = scmp.ge.s32.totalorder %s3632_s18, 1  ;;  %s3632_s18 = sphi %s3667_s18, %s15_s18  }
   0x2   : > { %p187_p1 = scmp.lt.s32.totalorder %s3632_s18, 3 }
   0x4   : > { %p188_p2 = pnand %p3269_p0, %p187_p1 }
   0x5   : > { %p215_p3 = scmp.lt.s32.totalorder (!%p188_p2), %s3265_s19, 1  ;;  %s3634_s24 = smov (!%p188_p2), 4  }
   0x6   : > { %191 = sbr.rel (%p188_p2) target bundleno = 1030 (0x406), region = 40  ;;  %s3635_s25 = smov (!%p188_p2), 8  }
   0xb   : > { %s4957_s19 = smov (!%p215_p3, %s3265_s19), 1  ;;  %vm424_vm0 = vsmask.f32 7424  ;;  %vm677_vm1 = vcmask 1046528   ;;  %vm885_vm2 = vcmask 1045504   ;;  %vm768_vm3 = vcmask 31744  }
   0xc   : > { %s3592_s20 = smul.u32 216, %s4957_s19  ;;  %vm805_vm4 = vcmask 64512   ;;  %vm852_vm5 = vcmask 97280   ;;  %vm1314_vm6 = vcmask 24576   ;;  %vm1322_vm7 = vsmask.f32 256 }
   0xd   : > { %vm4073_vm8 = vmand %vm1314_vm6, %vm1322_vm7  ;;  %vm1372_vm9 = vsmask.f32 7938  ;;  %vm1311_vm11 = vcmask 27648   ;;  %vm1422_vm13 = vsmask.f32 4368  ;;  %s3547_s11 = sshll.u32 %s4957_s19, 8 }
   0xe   : > { %s3681_s23 = scalar_lea.vmem %s4942_s0, %s3592_s20  ;;  %vm4083_vm10 = vmand %vm1314_vm6, %vm1372_vm9  ;;  %s4693_s14 = scalar_lea.vmem %s4947_s5, %s3547_s11 }
   0xf   : > { %v3684_v0 = vld [vmem:[%s3681_s23 + $0x6c] sm:$0xff]  ;;  %v255_v1 = vld [vmem:[%s3681_s23 + $0x74] sm:$0x1]  ;;  %v3688_v2 = vld [vmem:[%s3681_s23 + $0x78] sm:$0xff] }
  0x10   : > { %v397_v3 = vunpack.c.l.b16 %v255_v1  ;;  %v258_v4 = vld [vmem:[%s3681_s23 + $0x80] sm:$0x1]  ;;  %v534_v5 = vshrl.u32 %v3684_v0, 16  ;;  %v536_v6 = vshll.u32 %v3684_v0, 16  ;;  %v546_v9 = vshrl.u32 %v3688_v2, 16  ;;  %v3697_v20 = vld [vmem:[%s3681_s23 + $0x90] sm:$0xff]  ;;  %vm4129_vm12 = vmand %vm1311_vm11, %vm1372_vm9 }
  0x11   : > { %v398_v7 = vunpack.c.l.b16 %v258_v4  ;;  %v548_v10 = vshll.u32 %v3688_v2, 16  ;;  %v264_v13 = vld [vmem:[%s3681_s23 + $0x98] sm:$0x1]  ;;  %v3700_v23 = vld [vmem:[%s3681_s23 + $0x84] sm:$0xff]  ;;  %v261_v24 = vld [vmem:[%s3681_s23 + $0x8c] sm:$0x1] }
  0x12   : > { %v415_v8 = vpack.c.b16 %v397_v3, %v397_v3  ;;  %v538_v11 = vrot.slane %v536_v6, 1  ;;  %v400_v21 = vunpack.c.l.b16 %v264_v13  ;;  %v705_v26 = vrot.slane %v3684_v0, 1  ;;  %v267_v44 = vld [vmem:[%s3681_s23 + $0xa4] sm:$0x1]  ;;  %v3719_v49 = vld [vmem:[%s3681_s23 + $0x9c] sm:$0xff]  ;;  %v3728_v58 = vld [vmem:[%s3681_s23 + $0xb4] sm:$0xff] }
  0x13   : > { %v416_v12 = vpack.c.b16 %v398_v7, %v398_v7  ;;  %v550_v15 = vrot.slane %v548_v10, 1  ;;  %v572_v30 = vshll.u32 %v3697_v20, 16  ;;  %v399_v31 = vunpack.c.l.b16 %v261_v24  ;;  %v273_v52 = vld [vmem:[%s3681_s23 + $0xbc] sm:$0x1]  ;;  %v270_v3 = vld [vmem:[%s3681_s23 + $0xb0] sm:$0x1]  ;;  %vm4149_vm14 = vmor %vm1322_vm7, %vm1422_vm13 }
  0x14   : > { %v541_v14 = vshll.u32 %v415_v8, 16  ;;  %v539_v16 = vor.u32 %v538_v11, %v534_v5  ;;  %v706_v28 = vrot.slane %v415_v8, 1  ;;  %v418_v29 = vpack.c.b16 %v400_v21, %v400_v21 }
  0x15   : > { %v553_v17 = vshll.u32 %v416_v12, 16  ;;  %v551_v19 = vor.u32 %v550_v15, %v546_v9  ;;  %v708_v32 = vrot.slane %v3688_v2, 1  ;;  %v709_v33 = vrot.slane %v416_v12, 1 }
  0x16   : > { %v543_v18 = vrot.slane %v541_v14, 1  ;;  %v558_v34 = vshrl.u32 %v3700_v23, 16  ;;  %v560_v35 = vshll.u32 %v3700_v23, 16  ;;  %v417_v36 = vpack.c.b16 %v399_v31, %v399_v31 }
  0x17   : > { %v555_v22 = vrot.slane %v553_v17, 1  ;;  %v570_v37 = vshrl.u32 %v3697_v20, 16  ;;  %v707_v39 = vsel %vm677_vm1, %v705_v26, %v706_v28  ;;  %v574_v40 = vrot.slane %v572_v30, 1  ;;  %v276_v17 = vld [vmem:[%s3681_s23 + $0xc8] sm:$0x1] }
  0x18   : > { %v544_v25 = vsel %vm424_vm0, %v539_v16, %v543_v18  ;;  %v562_v38 = vrot.slane %v560_v35, 1  ;;  %v577_v41 = vshll.u32 %v418_v29, 16  ;;  %v565_v42 = vshll.u32 %v417_v36, 16 }
  0x19   : > { %659 = vrot.lane.b32.xlu0 %v544_v25, %s3634_s24  ;;  %v556_v27 = vsel %vm424_vm0, %v551_v19, %v555_v22  ;;  %v710_v43 = vsel %vm677_vm1, %v708_v32, %v709_v33  ;;  %v575_v47 = vor.u32 %v574_v40, %v570_v37  ;;  %v401_v50 = vunpack.c.l.b16 %v267_v44  ;;  %v3748_v19 = vld [vmem:[%s3681_s23 + $0xa8] sm:$0xff]  ;;  %v3752_v25 = vld [vmem:[%s3681_s23 + $0xc0] sm:$0xff] }
  0x1a   : > { %661 = vrot.lane.b32.xlu1 %v556_v27, %s3634_s24  ;;  %v563_v45 = vor.u32 %v562_v38, %v558_v34  ;;  %v567_v46 = vrot.slane %v565_v42, 1  ;;  %v579_v48 = vrot.slane %v577_v41, 1  ;;  %v711_v53 = vrot.slane %v3700_v23, 1  ;;  %v228_v27 = vld [vmem:[%s3681_s23 + $0x8] sm:$0x1]  ;;  %v3761_v34 = vld [vmem:[%s3681_s23] sm:$0xff] }
  0x1b   : > { %v712_v54 = vrot.slane %v417_v36, 1  ;;  %v584_v55 = vshll.u32 %v3719_v49, 16  ;;  %v419_v57 = vpack.c.b16 %v401_v50, %v401_v50  ;;  %v403_v59 = vunpack.c.l.b16 %v273_v52 }
  0x1c   : > { %v568_v51 = vsel %vm424_vm0, %v563_v45, %v567_v46  ;;  %v580_v56 = vsel %vm424_vm0, %v575_v47, %v579_v48  ;;  %v582_v61 = vshrl.u32 %v3719_v49, 16  ;;  %v717_v1 = vrot.slane %v3719_v49, 1  ;;  %v234_v45 = vld [vmem:[%s3681_s23 + $0x20] sm:$0x1] }
  0x1d   : > { %663 = vrot.lane.b32.xlu2 %v568_v51, %s3634_s24  ;;  %v713_v60 = vsel %vm677_vm1, %v711_v53, %v712_v54  ;;  %v586_v62 = vrot.slane %v584_v55, 1  ;;  %v589_v63 = vshll.u32 %v419_v57, 16  ;;  %v714_v4 = vrot.slane %v3697_v20, 1 }
  0x1e   : > { %v718_v5 = vrot.slane %v419_v57, 1  ;;  %v3736_v6 = vpack.c.b16 %v403_v59, %v403_v59  ;;  %v608_v7 = vshll.u32 %v3728_v58, 16  ;;  %v715_v8 = vrot.slane %v418_v29, 1 }
  0x1f   : > { %v587_v9 = vor.u32 %v586_v62, %v582_v61  ;;  %v591_v10 = vrot.slane %v589_v63, 1  ;;  %v402_v11 = vunpack.c.l.b16 %v270_v3  ;;  %v606_v14 = vshrl.u32 %v3728_v58, 16  ;;  %v3781_v62 = vld [vmem:[%s3681_s23 + $0x18] sm:$0xff] }
  0x20   : > { %v716_v12 = vsel %vm677_vm1, %v714_v4, %v715_v8  ;;  %v719_v13 = vsel %vm677_vm1, %v717_v1, %v718_v5  ;;  %v610_v15 = vrot.slane %v608_v7, 1  ;;  %v613_v16 = vshll.u32 %v3736_v6, 16  ;;  %v240_v8 = vld [vmem:[%s3681_s23 + $0x38] sm:$0x1] }
  0x21   : > { %750 = vrot.lane.b32.xlu0 %v707_v39, %s3635_s25  ;;  %v592_v18 = vsel %vm424_vm0, %v587_v9, %v591_v10  ;;  %v420_v21 = vpack.c.b16 %v402_v11, %v402_v11  ;;  %v404_v26 = vunpack.c.l.b16 %v276_v17  ;;  %v720_v28 = vrot.slane %v3748_v19, 1 }
  0x22   : > { %752 = vrot.lane.b32.xlu1 %v710_v43, %s3635_s25  ;;  %v611_v22 = vor.u32 %v610_v15, %v606_v14  ;;  %v615_v24 = vrot.slane %v613_v16, 1  ;;  %v620_v30 = vshll.u32 %v3752_v25, 16  ;;  %v596_v31 = vshll.u32 %v3748_v19, 16  ;;  %v3794_v14 = vld [vmem:[%s3681_s23 + $0xc] sm:$0xff] }
  0x23   : > { %v721_v29 = vrot.slane %v420_v21, 1  ;;  %v422_v33 = vpack.c.b16 %v404_v26, %v404_v26  ;;  %v388_v35 = vunpack.c.l.b16 %v228_v27  ;;  %v594_v36 = vshrl.u32 %v3748_v19, 16  ;;  %v3797_v15 = vld [vmem:[%s3681_s23 + $0x30] sm:$0xff]  ;;  %v237_v27 = vld [vmem:[%s3681_s23 + $0x2c] sm:$0x1] }
  0x24   : > { %v616_v32 = vsel %vm424_vm0, %v611_v22, %v615_v24  ;;  %v598_v37 = vrot.slane %v596_v31, 1  ;;  %v601_v38 = vshll.u32 %v420_v21, 16  ;;  %v618_v40 = vshrl.u32 %v3752_v25, 16 }
  0x25   : > { %754 = vrot.lane.b32.xlu2 %v713_v60, %s3635_s25  ;;  %v722_v39 = vsel %vm677_vm1, %v720_v28, %v721_v29  ;;  %v622_v41 = vrot.slane %v620_v30, 1  ;;  %v625_v42 = vshll.u32 %v422_v33, 16  ;;  %v726_v46 = vrot.slane %v3752_v25, 1  ;;  %v231_v60 = vld [vmem:[%s3681_s23 + $0x14] sm:$0x1] }
  0x26   : > { %v599_v43 = vor.u32 %v598_v37, %v594_v36  ;;  %v603_v44 = vrot.slane %v601_v38, 1  ;;  %v727_v47 = vrot.slane %v422_v33, 1  ;;  %v3769_v48 = vpack.c.b16 %v388_v35, %v388_v35 }
  0x27   : > { %v428_v50 = vshll.u32 %v3761_v34, 16  ;;  %v623_v52 = vor.u32 %v622_v41, %v618_v40  ;;  %v627_v53 = vrot.slane %v625_v42, 1  ;;  %v390_v54 = vunpack.c.l.b16 %v234_v45  ;;  %v243_v42 = vld [vmem:[%s3681_s23 + $0x44] sm:$0x1] }
  0x28   : > { %v604_v51 = vsel %vm424_vm0, %v599_v43, %v603_v44  ;;  %v728_v55 = vsel %vm677_vm1, %v726_v46, %v727_v47  ;;  %v433_v59 = vshll.u32 %v3769_v48, 16  ;;  %v723_v1 = vrot.slane %v3728_v58, 1  ;;  %v3820_v47 = vld [vmem:[%s3681_s23 + $0x24] sm:$0xff] }
  0x29   : > { %665 = vrot.lane.b32.xlu0 %v580_v56, %s3634_s24  ;;  %v426_v56 = vshrl.u32 %v3761_v34, 16  ;;  %v430_v57 = vrot.slane %v428_v50, 1  ;;  %v628_v61 = vsel %vm424_vm0, %v623_v52, %v627_v53  ;;  %v408_v63 = vpack.c.b16 %v390_v54, %v390_v54  ;;  %v3826_v54 = vld [vmem:[%s3681_s23 + $0x3c] sm:$0xff] }
  0x2a   : > { %756 = vrot.lane.b32.xlu1 %v716_v12, %s3635_s25  ;;  %v724_v3 = vrot.slane %v3736_v6, 1  ;;  %v435_v5 = vrot.slane %v433_v59, 1  ;;  %v389_v7 = vunpack.c.l.b16 %v231_v60  ;;  %v684_v10 = vrot.slane %v3781_v62, 1 }
  0x2b   : > { %v431_v4 = vor.u32 %v430_v57, %v426_v56  ;;  %v685_v11 = vrot.slane %v408_v63, 1  ;;  %v452_v12 = vshll.u32 %v3781_v62, 16  ;;  %v392_v16 = vunpack.c.l.b16 %v240_v8  ;;  %v249_v56 = vld [vmem:[%s3681_s23 + $0x5c] sm:$0x1] }
  0x2c   : > { %v725_v9 = vsel %vm677_vm1, %v723_v1, %v724_v3  ;;  %v407_v6 = vpack.c.b16 %v389_v7, %v389_v7  ;;  %v450_v17 = vshrl.u32 %v3781_v62, 16  ;;  %v457_v21 = vshll.u32 %v408_v63, 16  ;;  %v3837_v3 = vld [vmem:[%s3681_s23 + $0x54] sm:$0xff] }
  0x2d   : > { %667 = vrot.lane.b32.xlu2 %v592_v18, %s3634_s24  ;;  %v454_v18 = vrot.slane %v452_v12, 1  ;;  %v686_v22 = vsel %vm677_vm1, %v684_v10, %v685_v11  ;;  %v681_v28 = vrot.slane %v3794_v14, 1  ;;  %v3804_v30 = vpack.c.b16 %v392_v16, %v392_v16  ;;  %v246_v10 = vld [vmem:[%s3681_s23 + $0x50] sm:$0x1] }
  0x2e   : > { %v459_v26 = vrot.slane %v457_v21, 1  ;;  %v682_v29 = vrot.slane %v407_v6, 1  ;;  %v476_v31 = vshll.u32 %v3797_v15, 16  ;;  %v678_v33 = vrot.slane %v3761_v34, 1 }
  0x2f   : > { %v455_v24 = vor.u32 %v454_v18, %v450_v17  ;;  %v679_v35 = vrot.slane %v3769_v48, 1  ;;  %v391_v36 = vunpack.c.l.b16 %v237_v27  ;;  %v440_v37 = vshll.u32 %v3794_v14, 16  ;;  %v252_v27 = vld [vmem:[%s3681_s23 + $0x68] sm:$0x1] }
  0x30   : > { %v683_v38 = vsel %vm677_vm1, %v681_v28, %v682_v29  ;;  %v478_v40 = vrot.slane %v476_v31, 1  ;;  %v481_v41 = vshll.u32 %v3804_v30, 16  ;;  %v438_v43 = vshrl.u32 %v3794_v14, 16  ;;  %v3854_v29 = vld [vmem:[%s3681_s23 + $0x48] sm:$0xff] }
  0x31   : > { %758 = vrot.lane.b32.xlu0 %v719_v13, %s3635_s25  ;;  %v436_v13 = vsel %vm424_vm0, %v431_v4, %v435_v5  ;;  %v442_v44 = vrot.slane %v440_v37, 1  ;;  %v445_v45 = vshll.u32 %v407_v6, 16  ;;  %v680_v46 = vsel %vm677_vm1, %v678_v33, %v679_v35  ;;  %v3860_v35 = vld [vmem:[%s3681_s23 + $0x60] sm:$0xff] }
  0x32   : > { %669 = vrot.lane.b32.xlu1 %v604_v51, %s3634_s24  ;;  %v3822_v48 = vpack.c.b16 %v391_v36, %v391_v36  ;;  %v483_v53 = vrot.slane %v481_v41, 1  ;;  %v687_v59 = vrot.slane %v3820_v47, 1  ;;  %v395_v4 = vunpack.c.l.b16 %v249_v56 }
  0x33   : > { %v443_v50 = vor.u32 %v442_v44, %v438_v43  ;;  %v447_v51 = vrot.slane %v445_v45, 1  ;;  %v486_v7 = vshrl.u32 %v3826_v54, 16  ;;  %v693_v11 = vrot.slane %v3826_v54, 1 }
  0x34   : > { %v688_v60 = vrot.slane %v3822_v48, 1  ;;  %v512_v6 = vshll.u32 %v3837_v3, 16  ;;  %v394_v18 = vunpack.c.l.b16 %v246_v10  ;;  %v396_v36 = vunpack.c.l.b16 %v252_v27 }
  0x35   : > { %760 = vrot.lane.b32.xlu2 %v722_v39, %s3635_s25  ;;  %v474_v39 = vshrl.u32 %v3797_v15, 16  ;;  %v448_v57 = vsel %vm424_vm0, %v443_v50, %v447_v51  ;;  %v696_v37 = vrot.slane %v3854_v29, 1  ;;  %v522_v43 = vshrl.u32 %v3860_v35, 16 }
  0x36   : > { %v689_v5 = vsel %vm677_vm1, %v687_v59, %v688_v60  ;;  %v3856_v31 = vpack.c.b16 %v394_v18, %v394_v18  ;;  %v414_v41 = vpack.c.b16 %v396_v36, %v396_v36  ;;  %v691_v27 = vrot.slane %v3804_v30, 1 }
  0x37   : > { %v479_v52 = vor.u32 %v478_v40, %v474_v39  ;;  %v524_v39 = vshll.u32 %v3860_v35, 16 }
  0x38   : > { %v529_v45 = vshll.u32 %v414_v41, 16  ;;  %v703_v50 = vrot.slane %v414_v41, 1 }
  0x39   : > { %671 = vrot.lane.b32.xlu0 %v616_v32, %s3634_s24  ;;  %v460_v32 = vsel %vm424_vm0, %v455_v24, %v459_v26  ;;  %v484_v63 = vsel %vm424_vm0, %v479_v52, %v483_v53  ;;  %v514_v24 = vrot.slane %v512_v6, 1  ;;  %v526_v44 = vrot.slane %v524_v39, 1  ;;  %v3349_v53 = vld [vmem:[%s4943_s1 + $0x8] sm:$0xf] }
  0x3a   : > { %762 = vrot.lane.b32.xlu1 %v725_v9, %s3635_s25  ;;  %v531_v52 = vrot.slane %v529_v45, 1 }
  0x3b   : > { %v527_v51 = vor.u32 %v526_v44, %v522_v43 }
  0x3d   : > { %673 = vrot.lane.b32.xlu2 %v628_v61, %s3634_s24  ;;  %v488_v61 = vshll.u32 %v3826_v54, 16 }
  0x3f   : > { %v490_v8 = vrot.slane %v488_v61, 1  ;;  %v462_v61 = vshrl.u32 %v3820_v47, 16 }
  0x41   : > { %764 = vrot.lane.b32.xlu0 %v728_v55, %s3635_s25  ;;  %v393_v55 = vunpack.c.l.b16 %v243_v42  ;;  %v491_v16 = vor.u32 %v490_v8, %v486_v7 }
  0x42   : > { %645 = vrot.lane.b32.xlu1 %v460_v32, %s3634_s24 }
  0x43   : > { %v411_v1 = vpack.c.b16 %v393_v55, %v393_v55  ;;  %v3567_v55 = vld [vmem:[%s4943_s1 + $0x8] sm:$0x30] }
  0x44   : > { %v3350_v56 = vor.u32 %v3567_v55, %v3349_v53  ;;  %v505_v55 = vshll.u32 %v3856_v31, 16 }
  0x45   : > { %736 = vrot.lane.b32.xlu2 %v686_v22, %s3635_s25  ;;  %v493_v9 = vshll.u32 %v411_v1, 16  ;;  %v694_v12 = vrot.slane %v411_v1, 1  ;;  %v510_v22 = vshrl.u32 %v3837_v3, 16  ;;  %v469_v1 = vshll.u32 %v3822_v48, 16  ;;  %v3568_v48 = vld [vmem:[%s4943_s1 + $0x10] sm:$0x30] }
  0x46   : > { %v887_v60 = vsel %vm885_vm2, %v3350_v56, 0  ;;  %v3566_v56 = vld [vmem:[%s4943_s1] sm:$0x30] }
  0x47   : > { %v495_v17 = vrot.slane %v493_v9, 1  ;;  %v695_v21 = vsel %vm677_vm1, %v693_v11, %v694_v12  ;;  %v515_v32 = vor.u32 %v514_v24, %v510_v22  ;;  %3590 = vmatpush.bf16.msra.mxu2 %v887_v60  ;;  %896 = vmatpush.bf16.msra.mxu0 %v887_v60  ;;  %v471_v7 = vrot.slane %v469_v1, 1  ;;  %v3391_v9 = vld [vmem:[%s4943_s1 + $0x10] sm:$0xf] }
  0x48   : > { %v3392_v10 = vor.u32 %v3568_v48, %v3391_v9  ;;  %v699_v9 = vrot.slane %v3837_v3, 1 }
  0x49   : > { %641 = vrot.lane.b32.xlu0 %v436_v13, %s3634_s24  ;;  %v3844_v13 = vpack.c.b16 %v395_v4, %v395_v4  ;;  %v496_v28 = vsel %vm424_vm0, %v491_v16, %v495_v17  ;;  %v532_v4 = vsel %vm424_vm0, %v527_v51, %v531_v52  ;;  %v498_v52 = vshrl.u32 %v3854_v29, 16 }
  0x4a   : > { %643 = vrot.lane.b32.xlu1 %v448_v57, %s3634_s24  ;;  %v464_v57 = vshll.u32 %v3820_v47, 16  ;;  %v1088_v11 = vsel %vm885_vm2, %v3392_v10, 0 }
  0x4b   : > { %v517_v26 = vshll.u32 %v3844_v13, 16  ;;  %1097 = vmatpush.bf16.msrb.mxu2 %v1088_v11  ;;  %v700_v48 = vrot.slane %v3844_v13, 1 }
  0x4d   : > { %732 = vrot.lane.b32.xlu2 %v680_v46, %s3635_s25  ;;  %v519_v33 = vrot.slane %v517_v26, 1  ;;  %v702_v46 = vrot.slane %v3860_v35, 1  ;;  %v690_v26 = vrot.slane %v3797_v15, 1 }
  0x4f   : > { %v520_v40 = vsel %vm424_vm0, %v515_v32, %v519_v33  ;;  %v704_v59 = vsel %vm677_vm1, %v702_v46, %v703_v50  ;;  %v500_v50 = vshll.u32 %v3854_v29, 16 }
  0x51   : > { %734 = vrot.lane.b32.xlu0 %v683_v38, %s3635_s25  ;;  %v697_v38 = vrot.slane %v3856_v31, 1  ;;  %v502_v53 = vrot.slane %v500_v50, 1 }
  0x53   : > { %v698_v42 = vsel %vm677_vm1, %v696_v37, %v697_v38 }
  0x55   : > { %738 = vrot.lane.b32.xlu2 %v689_v5, %s3635_s25 }
  0x59   : > { %649 = vrot.lane.b32.xlu0 %v484_v63, %s3634_s24  ;;  %v466_v63 = vrot.slane %v464_v57, 1  ;;  %v503_v57 = vor.u32 %v502_v53, %v498_v52 }
  0x5b   : > { %v467_v5 = vor.u32 %v466_v63, %v462_v61 }
  0x5d   : > { %651 = vrot.lane.b32.xlu2 %v496_v28, %s3634_s24  ;;  %v472_v8 = vsel %vm424_vm0, %v467_v5, %v471_v7  ;;  %v692_v28 = vsel %vm677_vm1, %v690_v26, %v691_v27 }
  0x5e   : > { %647 = vrot.lane.b32.xlu1 %v472_v8, %s3634_s24 }
  0x61   : > { %742 = vrot.lane.b32.xlu0 %v695_v21, %s3635_s25 }
  0x65   : > { %744 = vrot.lane.b32.xlu2 %v698_v42, %s3635_s25 }
  0x66   : > { %740 = vrot.lane.b32.xlu1 %v692_v28, %s3635_s25 }
  0x69   : > { %655 = vrot.lane.b32.xlu0 %v520_v40, %s3634_s24 }
  0x6d   : > { %657 = vrot.lane.b32.xlu2 %v532_v4, %s3634_s24 }
  0x71   : > { %748 = vrot.lane.b32.xlu0 %v704_v59, %s3635_s25  ;;  %v507_v59 = vrot.slane %v505_v55, 1 }
  0x73   : > { %v508_v1 = vsel %vm424_vm0, %v503_v57, %v507_v59 }
  0x74   : > { %653 = vrot.lane.b32.xlu1 %v508_v1, %s3634_s24 }
  0x77   : > { %v664_v12 = vpop.permute.xlu2 %663 }
  0x78   : > { %v792_v43 = vsel %vm768_vm3, %v3700_v23, %v664_v12  ;;  %v3369_v23 = vld [vmem:[%s4943_s1] sm:$0xf] }
  0x79   : > { %v3370_v60 = vor.u32 %v3566_v56, %v3369_v23 }
  0x7b   : > { %v986_v4 = vsel %vm885_vm2, %v3370_v60, 0 }
  0x7c   : > { %3591 = vmatpush.bf16.msra.mxu3 %v986_v4  ;;  %995 = vmatpush.bf16.msra.mxu1 %v986_v4  ;;  %v1324_v4 = vld [vmem:[#allocation2 + $0xc] sm:$0x1] }
  0x7f   : > { %v755_v6 = vpop.permute.xlu2 %754 }
  0x80   : > { %v3922_v45 = vsel %vm805_vm4, %v792_v43, %v755_v6 }
  0x87   : > { %v3895_v17 = vpop.permute.xlu2 %667 }
  0x88   : > { %v796_v13 = vsel %vm768_vm3, %v3719_v49, %v3895_v17 }
  0x8b   : > { %v660_v16 = vpop.permute.xlu0 %659 }
  0x8c   : > { %v788_v18 = vsel %vm768_vm3, %v3684_v0, %v660_v16  ;;  %v662_v22 = vpop.permute.xlu1 %661 }
  0x8d   : > { %v790_v36 = vsel %vm768_vm3, %v3688_v2, %v662_v22 }
  0x8f   : > { %v3907_v32 = vpop.permute.xlu2 %760 }
  0x93   : > { %v751_v21 = vpop.permute.xlu0 %750 }
  0x94   : > { %v3900_v24 = vsel %vm805_vm4, %v788_v18, %v751_v21  ;;  %v753_v0 = vpop.permute.xlu1 %752 }
  0x95   : > { %3359 = vmatmul.msk.bf16.vlgmr.msra.gmra.mxu2 %vm852_vm5, %v3900_v24  ;;  %v3913_v39 = vsel %vm805_vm4, %v790_v36, %v753_v0 }
  0x97   : > { %v674_v37 = vpop.permute.xlu2 %673 }
  0x98   : > { %v802_v18 = vsel %vm768_vm3, %v3752_v25, %v674_v37 }
  0x9b   : > { %v666_v33 = vpop.permute.xlu0 %665 }
  0x9c   : > { %v757_v30 = vpop.permute.xlu1 %756  ;;  %v794_v63 = vsel %vm768_vm3, %v3697_v20, %v666_v33 }
  0x9d   : > { %v3943_v7 = vsel %vm805_vm4, %v794_v63, %v757_v30 }
  0x9f   : > { %v737_v41 = vpop.permute.xlu2 %736 }
  0xa3   : > { %v759_v38 = vpop.permute.xlu0 %758 }
  0xa4   : > { %v670_v42 = vpop.permute.xlu1 %669  ;;  %v3963_v21 = vsel %vm805_vm4, %v796_v13, %v759_v38 }
  0xa5   : > { %3360 = vmatmul.msk.bf16.gmra.mxu2 %vm852_vm5, %v3913_v39  ;;  %v798_v17 = vsel %vm768_vm3, %v3748_v19, %v670_v42 }
  0xa6   : > { %v3981_v33 = vsel %vm805_vm4, %v798_v17, %v3907_v32  ;;  %v3636_v17 = vmov 0  }
  0xa7   : > { %v733_v2 = vpop.permute.xlu2 %732  ;;  %1312 = vst.msk [vmem:[#allocation2] sm:$0xf] %vm1311_vm11, %v3636_v17 }
  0xa8   : > { %1313 = vst.msk [vmem:[#allocation2 + $0x4] sm:$0xf] %vm1311_vm11, %v3636_v17 }
  0xa9   : > { %1315 = vst.msk [vmem:[#allocation2 + $0x8] sm:$0x1] %vm1314_vm6, %v3636_v17 }
  0xaa   : > { %1317 = vst.msk [vmem:[#allocation2 + $0xcc] sm:$0xf] %vm1311_vm11, %v3636_v17 }
  0xab   : > { %v3917_v40 = vpop.permute.xlu0 %671  ;;  %1318 = vst.msk [vmem:[#allocation2 + $0xd0] sm:$0xf] %vm1311_vm11, %v3636_v17 }
  0xac   : > { %v763_v46 = vpop.permute.xlu1 %762  ;;  %v800_v32 = vsel %vm768_vm3, %v3728_v58, %v3917_v40  ;;  %1319 = vst.msk [vmem:[#allocation2 + $0xd4] sm:$0x1] %vm1314_vm6, %v3636_v17 }
  0xad   : > { %v3996_v38 = vsel %vm805_vm4, %v800_v32, %v763_v46 }
  0xaf   : > { %v739_v31 = vpop.permute.xlu2 %738 }
  0xb3   : > { %v765_v44 = vpop.permute.xlu0 %764 }
  0xb4   : > { %v646_v61 = vpop.permute.xlu1 %645  ;;  %v3970_v27 = vsel %vm805_vm4, %v802_v18, %v765_v44 }
  0xb5   : > { %3361 = vmatmul.msk.bf16.gmra.mxu2 %vm852_vm5, %v3922_v45  ;;  %v774_v22 = vsel %vm768_vm3, %v3781_v62, %v646_v61 }
  0xb6   : > { %v811_v28 = vsel %vm805_vm4, %v774_v22, %v737_v41 }
  0xb7   : > { %v652_v6 = vpop.permute.xlu2 %651 }
  0xb8   : > { %v780_v42 = vsel %vm768_vm3, %v3826_v54, %v652_v6  ;;  %v1327_v6 = vld [vmem:[#allocation2 + $0x18] sm:$0x1] }
  0xbb   : > { %v642_v51 = vpop.permute.xlu0 %641 }
  0xbc   : > { %v770_v5 = vsel %vm768_vm3, %v3761_v34, %v642_v51  ;;  %v644_v10 = vpop.permute.xlu1 %643  ;;  %v701_v34 = vsel %vm677_vm1, %v699_v9, %v700_v48  ;;  %v1374_v48 = vld [vmem:[#allocation2 + $0x14] sm:$0x1] }
  0xbd   : > { %v807_v20 = vsel %vm805_vm4, %v770_v5, %v733_v2  ;;  %v772_v11 = vsel %vm768_vm3, %v3794_v14, %v644_v10  ;;  %746 = vrot.lane.b32.xlu1 %v701_v34, %s3635_s25  ;;  %v1375_v10 = vsel %vm4083_vm10, 0, %v1374_v48 }
  0xbe   : > { %3371 = vmatmul.msk.bf16.vlgmr.msra.gmra.mxu1 %vm852_vm5, %v807_v20  ;;  %1376 = vst [vmem:[#allocation2 + $0x14] sm:$0x1] %v1375_v10 }
  0xbf   : > { %v745_v26 = vpop.permute.xlu2 %744 }
  0xc3   : > { %v735_v8 = vpop.permute.xlu0 %734 }
  0xc4   : > { %v809_v12 = vsel %vm805_vm4, %v772_v11, %v735_v8 }
  0xc5   : > { %3362 = vmatmul.msk.bf16.gmra.mxu2 %vm852_vm5, %v3943_v7  ;;  %3351 = vmatmul.msk.bf16.vlgmr.msra.gmra.mxu0 %vm852_vm5, %v809_v12 }
  0xc7   : > { %v658_v25 = vpop.permute.xlu2 %657 }
  0xc8   : > { %v786_v62 = vsel %vm768_vm3, %v3860_v35, %v658_v25 }
  0xcb   : > { %v650_v16 = vpop.permute.xlu0 %649 }
  0xcc   : > { %v778_v58 = vsel %vm768_vm3, %v3797_v15, %v650_v16  ;;  %v1328_v16 = vsel %vm4073_vm8, 0, %v1327_v6 }
  0xcd   : > { %1329 = vst [vmem:[#allocation2 + $0x18] sm:$0x1] %v1328_v16  ;;  %v1380_v16 = vld [vmem:[#allocation2 + $0x2c] sm:$0x1] }
  0xce   : > { %3372 = vmatmul.msk.bf16.gmra.mxu1 %vm852_vm5, %v809_v12 }
  0xd0   : > { %v648_v37 = vpop.permute.xlu1 %647 }
  0xd1   : > { %v776_v19 = vsel %vm768_vm3, %v3820_v47, %v648_v37 }
  0xd2   : > { %v813_v35 = vsel %vm805_vm4, %v776_v19, %v739_v31  ;;  %v1325_v31 = vsel %vm4073_vm8, 0, %v1324_v4 }
  0xd3   : > { %v743_v14 = vpop.permute.xlu0 %742  ;;  %1326 = vst [vmem:[#allocation2 + $0xc] sm:$0x1] %v1325_v31 }
  0xd4   : > { %v817_v15 = vsel %vm805_vm4, %v780_v42, %v743_v14  ;;  %v4123_v42 = vld [vmem:[#allocation2] sm:$0xff] }
  0xd5   : > { %3363 = vmatmul.msk.bf16.gmra.mxu2 %vm852_vm5, %v3963_v21  ;;  %3352 = vmatmul.msk.bf16.gmra.mxu0 %vm852_vm5, %v811_v28 }
  0xd8   : > { %v741_v47 = vpop.permute.xlu1 %740 }
  0xd9   : > { %v815_v30 = vsel %vm805_vm4, %v778_v58, %v741_v47 }
  0xdb   : > { %v656_v49 = vpop.permute.xlu0 %655 }
  0xdc   : > { %v784_v52 = vsel %vm768_vm3, %v3837_v3, %v656_v49 }
  0xde   : > { %3373 = vmatmul.msk.bf16.gmra.mxu1 %vm852_vm5, %v811_v28 }
  0xe3   : > { %v749_v0 = vpop.permute.xlu0 %748 }
  0xe4   : > { %v823_v36 = vsel %vm805_vm4, %v786_v62, %v749_v0  ;;  %v1330_v0 = vld [vmem:[#allocation2 + $0x24] sm:$0x1] }
  0xe5   : > { %3364 = vmatmul.msk.bf16.gmra.mxu2 %vm852_vm5, %v3981_v33  ;;  %3379 = vmatmul.msk.bf16.vlgmr.msra.gmra.mxu3 %vm852_vm5, %v823_v36  ;;  %v1331_v32 = vsel %vm4073_vm8, 0, %v1330_v0 }
  0xe6   : > { %3353 = vmatmul.msk.bf16.gmra.mxu0 %vm852_vm5, %v813_v35  ;;  %v654_v2 = vpop.permute.xlu1 %653  ;;  %1332 = vst [vmem:[#allocation2 + $0x24] sm:$0x1] %v1331_v32 }
  0xe7   : > { %v782_v46 = vsel %vm768_vm3, %v3854_v29, %v654_v2  ;;  %v1860_v2 = vld [vmem:[#allocation2 + $0x8] sm:$0x1] }
  0xe8   : > { %v819_v54 = vsel %vm805_vm4, %v782_v46, %v745_v26  ;;  %v4106_v26 = vld [vmem:[%s4944_s2] ss:$0 sm:$0xff] }
  0xee   : > { %3374 = vmatmul.msk.bf16.gmra.mxu1 %vm852_vm5, %v813_v35 }
  0xf5   : > { %3365 = vmatmul.msk.bf16.gmra.mxu2 %vm852_vm5, %v3996_v38  ;;  %3380 = vmatmul.msk.bf16.gmra.mxu3 %vm852_vm5, %v3900_v24 }
  0xf6   : > { %3354 = vmatmul.msk.bf16.gmra.mxu0 %vm852_vm5, %v815_v30 }
  0xfe   : > { %3375 = vmatmul.msk.bf16.gmra.mxu1 %vm852_vm5, %v815_v30 }
 0x105   : > { %3366 = vmatmul.msk.bf16.gmra.mxu2 %vm852_vm5, %v3970_v27  ;;  %3381 = vmatmul.msk.bf16.gmra.mxu3 %vm852_vm5, %v3913_v39 }
 0x106   : > { %3355 = vmatmul.msk.bf16.gmra.mxu0 %vm852_vm5, %v817_v15 }
 0x10e   : > { %3376 = vmatmul.msk.bf16.gmra.mxu1 %vm852_vm5, %v817_v15 }
 0x115   : > { %3382 = vmatmul.msk.bf16.gmra.mxu3 %vm852_vm5, %v3922_v45  ;;  %3393 = vmatmul.msk.bf16.vlgmr.msrb.gmra.mxu2 %vm852_vm5, %v811_v28 }
 0x116   : > { %3356 = vmatmul.msk.bf16.gmra.mxu0 %vm852_vm5, %v819_v54 }
 0x118   : > { %v4015_v40 = vpop.f32.mrf.mxu2 }
 0x11e   : > { %3377 = vmatmul.msk.bf16.gmra.mxu1 %vm852_vm5, %v819_v54 }
 0x120   : > { %v4017_v41 = vpop.f32.mrf.mxu2 }
 0x125   : > { %3383 = vmatmul.msk.bf16.gmra.mxu3 %vm852_vm5, %v3943_v7  ;;  %3394 = vmatmul.msk.bf16.gmra.mxu2 %vm852_vm5, %v813_v35 }
 0x128   : > { %v4027_v43 = vpop.f32.mrf.mxu2 }
 0x12f   : > { %v747_v53 = vpop.permute.xlu1 %746 }
 0x130   : > { %v4029_v44 = vpop.f32.mrf.mxu2  ;;  %v821_v29 = vsel %vm805_vm4, %v784_v52, %v747_v53  ;;  %v2020_v52 = vunpack.c.l.b16 %v1860_v2  ;;  %v2059_v53 = vshll.u32 %v4123_v42, 16 }
 0x131   : > { %3357 = vmatmul.msk.bf16.gmra.mxu0 %vm852_vm5, %v821_v29  ;;  %3378 = vmatmul.msk.bf16.gmra.mxu1 %vm852_vm5, %v821_v29 }
 0x135   : > { %3384 = vmatmul.msk.bf16.gmra.mxu3 %vm852_vm5, %v3963_v21  ;;  %3395 = vmatmul.msk.bf16.gmra.mxu2 %vm852_vm5, %v815_v30 }
 0x138   : > { %v4039_v50 = vpop.f32.mrf.mxu2 }
 0x13b   : > { %v997_v61 = vpop.f32.mrf.mxu1 }
 0x140   : > { %v4041_v51 = vpop.f32.mrf.mxu2 }
 0x141   : > { %3358 = vmatmul.msk.bf16.gmra.mxu0 %vm852_vm5, %v823_v36 }
 0x142   : > { %v898_v60 = vpop.f32.mrf.mxu0 }
 0x143   : > { %v999_v20 = vpop.f32.mrf.mxu1  ;;  %v998_v22 = vadd.f32 %v997_v61, %v898_v60  ;;  %v1746_v60 = vld [vmem:[#allocation2 + $0xc] sm:$0xf]  ;;  %v2057_v61 = vshrl.u32 %v4123_v42, 16 }
 0x145   : > { %3385 = vmatmul.msk.bf16.gmra.mxu3 %vm852_vm5, %v3981_v33  ;;  %3396 = vmatmul.msk.bf16.gmra.mxu2 %vm852_vm5, %v817_v15 }
 0x148   : > { %v4051_v55 = vpop.f32.mrf.mxu2 }
 0x14a   : > { %v900_v8 = vpop.f32.mrf.mxu0 }
 0x14b   : > { %v1002_v12 = vpop.f32.mrf.mxu1 }
 0x150   : > { %v4053_v23 = vpop.f32.mrf.mxu2 }
 0x152   : > { %v903_v34 = vpop.f32.mrf.mxu0 }
 0x153   : > { %v4099_v14 = vpop.f32.mrf.mxu1  ;;  %v1003_v48 = vadd.f32 %v1002_v12, %v903_v34 }
 0x155   : > { %3386 = vmatmul.msk.bf16.gmra.mxu3 %vm852_vm5, %v3996_v38  ;;  %3397 = vmatmul.msk.bf16.gmra.mxu2 %vm852_vm5, %v819_v54 }
 0x158   : > { %v4059_v3 = vpop.f32.mrf.mxu2 }
 0x15a   : > { %v4097_v18 = vpop.f32.mrf.mxu0 }
 0x15b   : > { %v4119_v19 = vpop.f32.mrf.mxu1  ;;  %v1005_v2 = vadd.f32 %v4099_v14, %v4097_v18 }
 0x160   : > { %v4061_v56 = vpop.f32.mrf.mxu2 }
 0x163   : > { %v4117_v37 = vpop.f32.mrf.mxu0 }
 0x165   : > { %3398 = vmatmul.msk.bf16.gmra.mxu2 %vm852_vm5, %v821_v29 }
 0x168   : > { %v4064_v57 = vpop.f32.mrf.mxu2 }
 0x170   : > { %v4066_v59 = vpop.f32.mrf.mxu2 }
 0x175   : > { %3399 = vmatmul.msk.bf16.gmra.mxu2 %vm852_vm5, %v823_v36  ;;  %v1000_v36 = vadd.f32 %v999_v20, %v900_v8  ;;  %v4136_v8 = vpack.c.b16 %v2020_v52, %v2020_v52  ;;  %v2061_v20 = vrot.slane %v2059_v53, 1 }
 0x178   : > { %v4069_v63 = vpop.f32.mrf.mxu2 }
 0x180   : > { %v4079_v5 = vpop.f32.mrf.mxu2 }
 0x185   : > { %3400 = vmatmul.msk.bf16.gmra.mxu2 %vm852_vm5, %v3900_v24  ;;  %v1377_v24 = vld [vmem:[#allocation2 + $0x20] sm:$0x1] }
 0x186   : > { %v1378_v28 = vsel %vm4083_vm10, 0, %v1377_v24  ;;  %v2064_v24 = vshll.u32 %v4136_v8, 16 }
 0x187   : > { %1379 = vst [vmem:[#allocation2 + $0x20] sm:$0x1] %v1378_v28  ;;  %v1381_v28 = vsel %vm4083_vm10, 0, %v1380_v16 }
 0x188   : > { %v4091_v11 = vpop.f32.mrf.mxu2  ;;  %1382 = vst [vmem:[#allocation2 + $0x2c] sm:$0x1] %v1381_v28  ;;  %v2066_v12 = vrot.slane %v2064_v24, 1 }
 0x190   : > { %v4095_v13 = vpop.f32.mrf.mxu2 }
 0x195   : > { %3401 = vmatmul.msk.bf16.gmra.mxu2 %vm852_vm5, %v3913_v39 }
 0x198   : > { %v1099_v49 = vpop.f32.mrf.mxu2 }
 0x199   : > { %v1179_v25 = vadd.f32 %v1099_v49, %v998_v22  ;;  %v2062_v49 = vor.u32 %v2061_v20, %v2057_v61 }
 0x19b   : > { %v1215_v39 = vadd.f32 %v4106_v26, %v1179_v25  ;;  %v4143_v25 = vpop.f32.mrf.mxu0  ;;  %v2067_v32 = vsel %vm424_vm0, %v2062_v49, %v2066_v12 }
 0x19c   : > { %2272 = vrot.lane.b32.xlu0 %v2067_v32, %s3634_s24 }
 0x19d   : > { %v1247_v62 = vmax.f32 %v1215_v39, 0.0 }
 0x19f   : > { %v1279_v35 = vpack.c.bf16 %v1247_v62, %v1247_v62 }
 0x1a0   : > { %v1101_v58 = vpop.f32.mrf.mxu2 }
 0x1a1   : > { %v1425_v47 = vshrl.u32 %v1279_v35, 16  ;;  %v1180_v30 = vadd.f32 %v1101_v58, %v1000_v36  ;;  %v1428_v15 = vshll.u32 %v1279_v35, 16  ;;  %v1750_v35 = vld [vmem:[#allocation2 + $0x14] sm:$0x1] }
 0x1a3   : > { %v1427_v46 = vrot.slane %v1425_v47, 7  ;;  %v1216_v54 = vadd.f32 %v4106_v26, %v1180_v30 }
 0x1a5   : > { %v1430_v4 = vor.u32 %v1428_v15, %v1427_v46  ;;  %v1248_v31 = vmax.f32 %v1216_v54, 0.0  ;;  %3402 = vmatmul.msk.bf16.gmra.mxu2 %vm852_vm5, %v3922_v45  ;;  %v4145_v45 = vpop.f32.mrf.mxu1  ;;  %v1431_v58 = vrot.slane %v1427_v46, 4 }
 0x1a7   : > { %v1747_v10 = vsel %vm4129_vm12, %v1430_v4, %v1746_v60  ;;  %v1280_v6 = vpack.c.bf16 %v1248_v31, %v1248_v31  ;;  %v1333_v60 = vld [vmem:[#allocation2 + $0x30] sm:$0x1]  ;;  %v4164_v31 = vpop.f32.mrf.mxu0 }
 0x1a8   : > { %1748 = vst [vmem:[#allocation2 + $0xc] sm:$0xf] %v1747_v10  ;;  %v1104_v22 = vpop.f32.mrf.mxu2  ;;  %v1334_v46 = vsel %vm4073_vm8, 0, %v1333_v60 }
 0x1a9   : > { %v1433_v17 = vshrl.u32 %v1280_v6, 16  ;;  %v1181_v34 = vadd.f32 %v1104_v22, %v1003_v48  ;;  %v1436_v62 = vshll.u32 %v1280_v6, 16  ;;  %1335 = vst [vmem:[#allocation2 + $0x30] sm:$0x1] %v1334_v46  ;;  %v1753_v6 = vld [vmem:[#allocation2 + $0x18] sm:$0xf]  ;;  %v1008_v22 = vadd.f32 %v4119_v19, %v4117_v37 }
 0x1ab   : > { %v1435_v39 = vrot.slane %v1433_v17, 7  ;;  %v1217_v0 = vadd.f32 %v4106_v26, %v1181_v34  ;;  %v1383_v34 = vld [vmem:[#allocation2 + $0x38] sm:$0x1] }
 0x1ad   : > { %v1438_v47 = vor.u32 %v1436_v62, %v1435_v39  ;;  %v1440_v30 = vrot.slane %v1435_v39, 4  ;;  %v1249_v15 = vmax.f32 %v1217_v0, 0.0  ;;  %v4166_v20 = vpop.f32.mrf.mxu1  ;;  %v1384_v62 = vsel %vm4083_vm10, 0, %v1383_v34 }
 0x1ae   : > { %1385 = vst [vmem:[#allocation2 + $0x38] sm:$0x1] %v1384_v62 }
 0x1af   : > { %v1439_v54 = vsel %vm4149_vm14, %v1431_v58, %v1438_v47  ;;  %v1751_v52 = vsel %vm4073_vm8, %v1440_v30, %v1750_v35  ;;  %v1281_v53 = vpack.c.bf16 %v1249_v15, %v1249_v15  ;;  %v4180_v58 = vpop.f32.mrf.mxu0  ;;  %v1757_v15 = vld [vmem:[#allocation2 + $0x20] sm:$0x1] }
 0x1b0   : > { %1749 = vst.msk [vmem:[#allocation2 + $0x10] sm:$0xf] %vm1311_vm11, %v1439_v54  ;;  %v1106_v61 = vpop.f32.mrf.mxu2 }
 0x1b1   : > { %1752 = vst [vmem:[#allocation2 + $0x14] sm:$0x1] %v1751_v52  ;;  %v1442_v4 = vshrl.u32 %v1281_v53, 16  ;;  %v1182_v18 = vadd.f32 %v1106_v61, %v1005_v2  ;;  %v1445_v48 = vshll.u32 %v1281_v53, 16 }
 0x1b3   : > { %v1444_v14 = vrot.slane %v1442_v4, 7  ;;  %v1218_v10 = vadd.f32 %v4106_v26, %v1182_v18  ;;  %v279_v4 = vld [vmem:[%s3681_s23 + $0xd4] sm:$0x1] }
 0x1b5   : > { %v1447_v16 = vor.u32 %v1445_v48, %v1444_v14  ;;  %v1250_v24 = vmax.f32 %v1218_v10, 0.0  ;;  %3403 = vmatmul.msk.bf16.gmra.mxu2 %vm852_vm5, %v3943_v7  ;;  %v4182_v47 = vpop.f32.mrf.mxu1  ;;  %v1448_v53 = vrot.slane %v1444_v14, 4  ;;  %v4195_v14 = vld [vmem:[%s3681_s23 + $0xcc] sm:$0xff] }
 0x1b7   : > { %v1754_v28 = vsel %vm4129_vm12, %v1447_v16, %v1753_v6  ;;  %v1282_v49 = vpack.c.bf16 %v1250_v24, %v1250_v24  ;;  %v4175_v17 = vld [vmem:[#allocation2 + $0xc] sm:$0xff]  ;;  %v1010_v16 = vadd.f32 %v4145_v45, %v4143_v25  ;;  %v1336_v45 = vld [vmem:[#allocation2 + $0x3c] sm:$0x1] }
 0x1b8   : > { %1755 = vst [vmem:[#allocation2 + $0x18] sm:$0xf] %v1754_v28  ;;  %v1109_v12 = vpop.f32.mrf.mxu2  ;;  %v1863_v39 = vld [vmem:[#allocation2 + $0x14] sm:$0x1]  ;;  %v2071_v37 = vshll.u32 %v4175_v17, 16  ;;  %v2069_v54 = vshrl.u32 %v4175_v17, 16 }
 0x1b9   : > { %v1450_v0 = vshrl.u32 %v1282_v49, 16  ;;  %v1183_v35 = vadd.f32 %v1109_v12, %v1008_v22  ;;  %v2021_v7 = vunpack.c.l.b16 %v1863_v39  ;;  %v1453_v32 = vshll.u32 %v1282_v49, 16 }
 0x1ba   : > { %v2073_v52 = vrot.slane %v2071_v37, 1  ;;  %v2311_v18 = vrot.slane %v4175_v17, 1  ;;  %v405_v39 = vunpack.c.l.b16 %v279_v4 }
 0x1bb   : > { %v1452_v19 = vrot.slane %v1450_v0, 7  ;;  %v1219_v30 = vadd.f32 %v4106_v26, %v1183_v35  ;;  %v2039_v2 = vpack.c.b16 %v2021_v7, %v2021_v7  ;;  %v1337_v35 = vsel %vm4073_vm8, 0, %v1336_v45 }
 0x1bc   : > { %v2074_v10 = vor.u32 %v2073_v52, %v2069_v54  ;;  %1338 = vst [vmem:[#allocation2 + $0x3c] sm:$0x1] %v1337_v35  ;;  %v2308_v54 = vrot.slane %v4123_v42, 1  ;;  %v2309_v52 = vrot.slane %v4136_v8, 1  ;;  %v630_v42 = vshrl.u32 %v4195_v14, 16 }
 0x1bd   : > { %v1455_v60 = vor.u32 %v1453_v32, %v1452_v19  ;;  %v1457_v61 = vrot.slane %v1452_v19, 4  ;;  %v1251_v46 = vmax.f32 %v1219_v30, 0.0  ;;  %v2312_v48 = vrot.slane %v2039_v2, 1  ;;  %v4206_v30 = vpop.f32.mrf.mxu0  ;;  %v1386_v8 = vld [vmem:[#allocation2 + $0x44] sm:$0x1] }
 0x1be   : > { %v2076_v6 = vshll.u32 %v2039_v2, 16  ;;  %v632_v32 = vshll.u32 %v4195_v14, 16  ;;  %v1760_v2 = vld [vmem:[#allocation2 + $0x24] sm:$0xf] }
 0x1bf   : > { %v1456_v24 = vsel %vm4149_vm14, %v1448_v53, %v1455_v60  ;;  %v1758_v22 = vsel %vm4073_vm8, %v1457_v61, %v1757_v15  ;;  %v1283_v28 = vpack.c.bf16 %v1251_v46, %v1251_v46  ;;  %v2313_v49 = vsel %vm677_vm1, %v2311_v18, %v2312_v48  ;;  %v4208_v15 = vpop.f32.mrf.mxu1 }
 0x1c0   : > { %1756 = vst.msk [vmem:[#allocation2 + $0x1c] sm:$0xf] %vm1311_vm11, %v1456_v24  ;;  %v1111_v34 = vpop.f32.mrf.mxu2  ;;  %v2078_v12 = vrot.slane %v2076_v6, 1  ;;  %2364 = vrot.lane.b32.xlu2 %v2313_v49, %s3635_s25  ;;  %v4212_v53 = vpack.c.b16 %v405_v39, %v405_v39  ;;  %v1013_v46 = vadd.f32 %v4166_v20, %v4164_v31  ;;  %v1387_v31 = vsel %vm4083_vm10, 0, %v1386_v8 }
 0x1c1   : > { %1759 = vst [vmem:[#allocation2 + $0x20] sm:$0x1] %v1758_v22  ;;  %v1459_v62 = vshrl.u32 %v1283_v28, 16  ;;  %v1184_v25 = vadd.f32 %v1111_v34, %v1010_v16  ;;  %v1462_v37 = vshll.u32 %v1283_v28, 16  ;;  %v2310_v16 = vsel %vm677_vm1, %v2308_v54, %v2309_v52 }
 0x1c2   : > { %v2079_v0 = vsel %vm424_vm0, %v2074_v10, %v2078_v12  ;;  %v634_v10 = vrot.slane %v632_v32, 1  ;;  %1388 = vst [vmem:[#allocation2 + $0x44] sm:$0x1] %v1387_v31 }
 0x1c3   : > { %v1461_v7 = vrot.slane %v1459_v62, 7  ;;  %v1220_v19 = vadd.f32 %v4106_v26, %v1184_v25  ;;  %2274 = vrot.lane.b32.xlu1 %v2079_v0, %s3634_s24  ;;  %v1764_v25 = vld [vmem:[#allocation2 + $0x2c] sm:$0x1] }
 0x1c4   : > { %v635_v62 = vor.u32 %v634_v10, %v630_v42  ;;  %v1015_v42 = vadd.f32 %v4182_v47, %v4180_v58  ;;  %v1339_v47 = vld [vmem:[#allocation2 + $0x48] sm:$0x1] }
 0x1c5   : > { %v1464_v60 = vor.u32 %v1462_v37, %v1461_v7  ;;  %v1252_v61 = vmax.f32 %v1220_v19, 0.0  ;;  %3404 = vmatmul.msk.bf16.gmra.mxu2 %vm852_vm5, %v3963_v21  ;;  %v637_v21 = vshll.u32 %v4212_v53, 16  ;;  %v1465_v19 = vrot.slane %v1461_v7, 4  ;;  %v920_v52 = vpop.f32.mrf.mxu0 }
 0x1c7   : > { %v1761_v4 = vsel %vm4129_vm12, %v1464_v60, %v1760_v2  ;;  %v1284_v18 = vpack.c.bf16 %v1252_v61, %v1252_v61  ;;  %v4220_v48 = vld [vmem:[#allocation2 + $0x18] sm:$0xff]  ;;  %v639_v0 = vrot.slane %v637_v21, 1  ;;  %v1019_v60 = vpop.f32.mrf.mxu1 }
 0x1c8   : > { %1762 = vst [vmem:[#allocation2 + $0x24] sm:$0xf] %v1761_v4  ;;  %v1114_v6 = vpop.f32.mrf.mxu2  ;;  %v1866_v24 = vld [vmem:[#allocation2 + $0x20] sm:$0x1]  ;;  %v2083_v49 = vshll.u32 %v4220_v48, 16  ;;  %v2081_v35 = vshrl.u32 %v4220_v48, 16 }
 0x1c9   : > { %v1467_v20 = vshrl.u32 %v1284_v18, 16  ;;  %v1185_v22 = vadd.f32 %v1114_v6, %v1013_v46  ;;  %v2022_v28 = vunpack.c.l.b16 %v1866_v24  ;;  %v1470_v12 = vshll.u32 %v1284_v18, 16 }
 0x1ca   : > { %v2085_v37 = vrot.slane %v2083_v49, 1  ;;  %v2314_v61 = vrot.slane %v4220_v48, 1  ;;  %v640_v24 = vsel %vm424_vm0, %v635_v62, %v639_v0  ;;  %v730_v62 = vrot.slane %v4212_v53, 1 }
 0x1cb   : > { %v1469_v34 = vrot.slane %v1467_v20, 7  ;;  %v1221_v39 = vadd.f32 %v4106_v26, %v1185_v22  ;;  %2362 = vrot.lane.b32.xlu1 %v2310_v16, %s3635_s25  ;;  %v2040_v45 = vpack.c.b16 %v2022_v28, %v2022_v28  ;;  %v1340_v22 = vsel %vm4073_vm8, 0, %v1339_v47 }
 0x1cc   : > { %v2086_v4 = vor.u32 %v2085_v37, %v2081_v35  ;;  %1341 = vst [vmem:[#allocation2 + $0x48] sm:$0x1] %v1340_v22  ;;  %v1018_v0 = vadd.f32 %v4208_v15, %v4206_v30 }
 0x1cd   : > { %v1472_v32 = vor.u32 %v1470_v12, %v1469_v34  ;;  %v1474_v2 = vrot.slane %v1469_v34, 4  ;;  %v1253_v54 = vmax.f32 %v1221_v39, 0.0  ;;  %v2315_v46 = vrot.slane %v2040_v45, 1  ;;  %v1767_v12 = vld [vmem:[#allocation2 + $0x30] sm:$0xf] }
 0x1ce   : > { %v2088_v18 = vshll.u32 %v2040_v45, 16  ;;  %v729_v39 = vrot.slane %v4195_v14, 1 }
 0x1cf   : > { %v1473_v10 = vsel %vm4149_vm14, %v1465_v19, %v1472_v32  ;;  %v1765_v8 = vsel %vm4073_vm8, %v1474_v2, %v1764_v25  ;;  %v1285_v7 = vpack.c.bf16 %v1253_v54, %v1253_v54  ;;  %v2316_v6 = vsel %vm677_vm1, %v2314_v61, %v2315_v46  ;;  %v923_v32 = vpop.f32.mrf.mxu0  ;;  %v1022_v2 = vpop.f32.mrf.mxu1  ;;  %v1389_v54 = vld [vmem:[#allocation2 + $0x50] sm:$0x1] }
 0x1d0   : > { %1763 = vst.msk [vmem:[#allocation2 + $0x28] sm:$0xf] %vm1311_vm11, %v1473_v10  ;;  %v1116_v16 = vpop.f32.mrf.mxu2  ;;  %v2090_v21 = vrot.slane %v2088_v18, 1  ;;  %2366 = vrot.lane.b32.xlu0 %v2316_v6, %s3635_s25  ;;  %v731_v61 = vsel %vm677_vm1, %v729_v39, %v730_v62 }
 0x1d1   : > { %1766 = vst [vmem:[#allocation2 + $0x2c] sm:$0x1] %v1765_v8  ;;  %v1476_v31 = vshrl.u32 %v1285_v7, 16  ;;  %v1186_v58 = vadd.f32 %v1116_v16, %v1015_v42  ;;  %v1479_v49 = vshll.u32 %v1285_v7, 16  ;;  %v1771_v8 = vld [vmem:[#allocation2 + $0x38] sm:$0x1]  ;;  %v1020_v7 = vadd.f32 %v1019_v60, %v920_v52 }
 0x1d2   : > { %v2091_v20 = vsel %vm424_vm0, %v2086_v4, %v2090_v21 }
 0x1d3   : > { %v1478_v28 = vrot.slane %v1476_v31, 7  ;;  %v1222_v34 = vadd.f32 %v4106_v26, %v1186_v58  ;;  %675 = vrot.lane.b32.xlu1 %v640_v24, %s3634_s24  ;;  %2276 = vrot.lane.b32.xlu2 %v2091_v20, %s3634_s24 }
 0x1d5   : > { %v1481_v25 = vor.u32 %v1479_v49, %v1478_v28  ;;  %v1254_v45 = vmax.f32 %v1222_v34, 0.0  ;;  %3405 = vmatmul.msk.bf16.gmra.mxu2 %vm852_vm5, %v3981_v33  ;;  %v1390_v33 = vsel %vm4083_vm10, 0, %v1389_v54  ;;  %v1482_v21 = vrot.slane %v1478_v28, 4  ;;  %v1342_v54 = vld [vmem:[#allocation2 + $0x54] sm:$0x1] }
 0x1d6   : > { %1391 = vst [vmem:[#allocation2 + $0x50] sm:$0x1] %v1390_v33 }
 0x1d7   : > { %v1768_v35 = vsel %vm4129_vm12, %v1481_v25, %v1767_v12  ;;  %v1286_v37 = vpack.c.bf16 %v1254_v45, %v1254_v45  ;;  %v4256_v19 = vld [vmem:[#allocation2 + $0x24] sm:$0xff] }
 0x1d8   : > { %1769 = vst [vmem:[#allocation2 + $0x30] sm:$0xf] %v1768_v35  ;;  %v1119_v14 = vpop.f32.mrf.mxu2  ;;  %v1869_v53 = vld [vmem:[#allocation2 + $0x2c] sm:$0x1]  ;;  %v2095_v15 = vshll.u32 %v4256_v19, 16  ;;  %v2093_v16 = vshrl.u32 %v4256_v19, 16  ;;  %v925_v35 = vpop.f32.mrf.mxu0 }
 0x1d9   : > { %v1484_v46 = vshrl.u32 %v1286_v37, 16  ;;  %v1187_v4 = vadd.f32 %v1119_v14, %v1018_v0  ;;  %v2023_v30 = vunpack.c.l.b16 %v1869_v53  ;;  %v1487_v42 = vshll.u32 %v1286_v37, 16  ;;  %v1024_v37 = vpop.f32.mrf.mxu1 }
 0x1da   : > { %v2097_v24 = vrot.slane %v2095_v15, 1  ;;  %v2317_v20 = vrot.slane %v4256_v19, 1  ;;  %v1343_v53 = vsel %vm4073_vm8, 0, %v1342_v54  ;;  %v1023_v15 = vadd.f32 %v1022_v2, %v923_v32 }
 0x1db   : > { %v1486_v18 = vrot.slane %v1484_v46, 7  ;;  %v1223_v10 = vadd.f32 %v4106_v26, %v1187_v4  ;;  %766 = vrot.lane.b32.xlu2 %v731_v61, %s3635_s25  ;;  %v2041_v6 = vpack.c.b16 %v2023_v30, %v2023_v30  ;;  %1344 = vst [vmem:[#allocation2 + $0x54] sm:$0x1] %v1343_v53  ;;  %v1774_v46 = vld [vmem:[#allocation2 + $0x3c] sm:$0xf]  ;;  %v1025_v2 = vadd.f32 %v1024_v37, %v925_v35 }
 0x1dc   : > { %v2098_v49 = vor.u32 %v2097_v24, %v2093_v16  ;;  %v3485_v16 = vld [vmem:[%s4945_s3 + $0x8] sm:$0xf] }
 0x1dd   : > { %v1489_v31 = vor.u32 %v1487_v42, %v1486_v18  ;;  %v1491_v58 = vrot.slane %v1486_v18, 4  ;;  %v1255_v47 = vmax.f32 %v1223_v10, 0.0  ;;  %v2318_v22 = vrot.slane %v2041_v6, 1 }
 0x1de   : > { %v2100_v34 = vshll.u32 %v2041_v6, 16 }
 0x1df   : > { %v1490_v12 = vsel %vm4149_vm14, %v1482_v21, %v1489_v31  ;;  %v1772_v39 = vsel %vm4073_vm8, %v1491_v58, %v1771_v8  ;;  %v1287_v52 = vpack.c.bf16 %v1255_v47, %v1255_v47  ;;  %v2319_v60 = vsel %vm677_vm1, %v2317_v20, %v2318_v22  ;;  %v1392_v8 = vld [vmem:[#allocation2 + $0x5c] sm:$0x1] }
 0x1e0   : > { %1770 = vst.msk [vmem:[#allocation2 + $0x34] sm:$0xf] %vm1311_vm11, %v1490_v12  ;;  %v1121_v28 = vpop.f32.mrf.mxu2  ;;  %v2102_v62 = vrot.slane %v2100_v34, 1  ;;  %2368 = vrot.lane.b32.xlu1 %v2319_v60, %s3635_s25  ;;  %v1393_v60 = vsel %vm4083_vm10, 0, %v1392_v8 }
 0x1e1   : > { %1773 = vst [vmem:[#allocation2 + $0x38] sm:$0x1] %v1772_v39  ;;  %v1493_v25 = vshrl.u32 %v1287_v52, 16  ;;  %v1496_v45 = vshll.u32 %v1287_v52, 16  ;;  %v1188_v0 = vadd.f32 %v1121_v28, %v1020_v7  ;;  %v928_v39 = vpop.f32.mrf.mxu0  ;;  %v1027_v52 = vpop.f32.mrf.mxu1 }
 0x1e2   : > { %v2103_v14 = vsel %vm424_vm0, %v2098_v49, %v2102_v62  ;;  %v1778_v49 = vld [vmem:[#allocation2 + $0x44] sm:$0x1]  ;;  %1394 = vst [vmem:[#allocation2 + $0x5c] sm:$0x1] %v1393_v60 }
 0x1e3   : > { %v1495_v61 = vrot.slane %v1493_v25, 7  ;;  %v1224_v33 = vadd.f32 %v4106_v26, %v1188_v0  ;;  %2278 = vrot.lane.b32.xlu0 %v2103_v14, %s3634_s24 }
 0x1e5   : > { %v1498_v4 = vor.u32 %v1496_v45, %v1495_v61  ;;  %v1256_v30 = vmax.f32 %v1224_v33, 0.0  ;;  %3406 = vmatmul.msk.bf16.gmra.mxu2 %vm852_vm5, %v3996_v38  ;;  %v3588_v38 = vld [vmem:[%s4945_s3 + $0x8] sm:$0x30]  ;;  %v1499_v32 = vrot.slane %v1495_v61, 4 }
 0x1e6   : > { %v3486_v20 = vor.u32 %v3588_v38, %v3485_v16  ;;  %v3505_v16 = vld [vmem:[%s4945_s3] sm:$0xf] }
 0x1e7   : > { %v1775_v18 = vsel %vm4129_vm12, %v1498_v4, %v1774_v46  ;;  %v1288_v42 = vpack.c.bf16 %v1256_v30, %v1256_v30  ;;  %v4282_v10 = vld [vmem:[#allocation2 + $0x30] sm:$0xff]  ;;  %v1345_v30 = vld [vmem:[#allocation2 + $0x60] sm:$0x1] }
 0x1e8   : > { %1776 = vst [vmem:[#allocation2 + $0x3c] sm:$0xf] %v1775_v18  ;;  %v1124_v7 = vpop.f32.mrf.mxu2  ;;  %v1872_v6 = vld [vmem:[#allocation2 + $0x38] sm:$0x1]  ;;  %v2107_v47 = vshll.u32 %v4282_v10, 16  ;;  %v2320_v28 = vrot.slane %v4282_v10, 1 }
 0x1e9   : > { %v1501_v24 = vshrl.u32 %v1288_v42, 16  ;;  %v1504_v21 = vshll.u32 %v1288_v42, 16  ;;  %v1189_v31 = vadd.f32 %v1124_v7, %v1023_v15  ;;  %v2024_v58 = vunpack.c.l.b16 %v1872_v6  ;;  %v1029_v60 = vpop.f32.mrf.mxu1 }
 0x1ea   : > { %v2105_v62 = vshrl.u32 %v4282_v10, 16  ;;  %v2109_v25 = vrot.slane %v2107_v47, 1  ;;  %v2513_v45 = vsel %vm885_vm2, %v3486_v20, 0  ;;  %v1346_v42 = vsel %vm4073_vm8, 0, %v1345_v30  ;;  %v1781_v20 = vld [vmem:[#allocation2 + $0x48] sm:$0xf] }
 0x1eb   : > { %v1503_v22 = vrot.slane %v1501_v24, 7  ;;  %v1225_v34 = vadd.f32 %v4106_v26, %v1189_v31  ;;  %v2042_v12 = vpack.c.b16 %v2024_v58, %v2024_v58  ;;  %2522 = vmatpush.bf16.msrb.mxu3 %v2513_v45  ;;  %v3527_v31 = vld [vmem:[%s4945_s3 + $0x10] sm:$0xf]  ;;  %v3589_v58 = vld [vmem:[%s4945_s3 + $0x10] sm:$0x30] }
 0x1ec   : > { %v2110_v14 = vor.u32 %v2109_v25, %v2105_v62  ;;  %v3528_v47 = vor.u32 %v3589_v58, %v3527_v31  ;;  %1347 = vst [vmem:[#allocation2 + $0x60] sm:$0x1] %v1346_v42  ;;  %v1785_v42 = vld [vmem:[#allocation2 + $0x50] sm:$0x1] }
 0x1ed   : > { %v1506_v0 = vor.u32 %v1504_v21, %v1503_v22  ;;  %v1508_v35 = vrot.slane %v1503_v22, 4  ;;  %v1257_v37 = vmax.f32 %v1225_v34, 0.0  ;;  %v2321_v54 = vrot.slane %v2042_v12, 1  ;;  %v3587_v21 = vld [vmem:[%s4945_s3] sm:$0x30] }
 0x1ee   : > { %v2112_v53 = vshll.u32 %v2042_v12, 16  ;;  %v1028_v34 = vadd.f32 %v1027_v52, %v928_v39  ;;  %v930_v12 = vpop.f32.mrf.mxu0  ;;  %v2714_v62 = vsel %vm885_vm2, %v3528_v47, 0  ;;  %v4331_v39 = vpop.f32.mrf.mxu3 }
 0x1ef   : > { %v1507_v61 = vsel %vm4149_vm14, %v1499_v32, %v1506_v0  ;;  %v1779_v33 = vsel %vm4073_vm8, %v1508_v35, %v1778_v49  ;;  %v1289_v46 = vpack.c.bf16 %v1257_v37, %v1257_v37  ;;  %v2322_v4 = vsel %vm677_vm1, %v2320_v28, %v2321_v54  ;;  %2723 = vmatpush.bf16.msrb.mxu1 %v2714_v62  ;;  %v1395_v35 = vld [vmem:[#allocation2 + $0x68] sm:$0x1] }
 0x1f0   : > { %1777 = vst.msk [vmem:[#allocation2 + $0x40] sm:$0xf] %vm1311_vm11, %v1507_v61  ;;  %2370 = vrot.lane.b32.xlu0 %v2322_v4, %s3635_s25  ;;  %v1126_v15 = vpop.f32.mrf.mxu2  ;;  %v2114_v18 = vrot.slane %v2112_v53, 1 }
 0x1f1   : > { %1780 = vst [vmem:[#allocation2 + $0x44] sm:$0x1] %v1779_v33  ;;  %v1510_v8 = vshrl.u32 %v1289_v46, 16  ;;  %v1513_v7 = vshll.u32 %v1289_v46, 16  ;;  %v1190_v6 = vadd.f32 %v1126_v15, %v1025_v2  ;;  %v3506_v2 = vor.u32 %v3587_v21, %v3505_v16 }
 0x1f2   : > { %v2115_v24 = vsel %vm424_vm0, %v2110_v14, %v2114_v18 }
 0x1f3   : > { %v1512_v38 = vrot.slane %v1510_v8, 7  ;;  %v1226_v32 = vadd.f32 %v4106_v26, %v1190_v6  ;;  %2280 = vrot.lane.b32.xlu2 %v2115_v24, %s3634_s24  ;;  %v2612_v28 = vsel %vm885_vm2, %v3506_v2, 0  ;;  %v1030_v8 = vadd.f32 %v1029_v60, %v930_v12 }
 0x1f4   : > { %2621 = vmatpush.bf16.msrb.mxu0 %v2612_v28 }
 0x1f5   : > { %v1515_v22 = vor.u32 %v1513_v7, %v1512_v38  ;;  %v1258_v49 = vmax.f32 %v1226_v32, 0.0  ;;  %3407 = vmatmul.msk.bf16.gmra.mxu2 %vm852_vm5, %v3970_v27  ;;  %v1396_v27 = vsel %vm4083_vm10, 0, %v1395_v35  ;;  %v1516_v4 = vrot.slane %v1512_v38, 4 }
 0x1f6   : > { %1397 = vst [vmem:[#allocation2 + $0x68] sm:$0x1] %v1396_v27 }
 0x1f7   : > { %v1782_v25 = vsel %vm4129_vm12, %v1515_v22, %v1781_v20  ;;  %v1290_v45 = vpack.c.bf16 %v1258_v49, %v1258_v49  ;;  %v4327_v0 = vld [vmem:[#allocation2 + $0x3c] sm:$0xff]  ;;  %v933_v22 = vpop.f32.mrf.mxu0  ;;  %v1032_v49 = vpop.f32.mrf.mxu1 }
 0x1f8   : > { %1783 = vst [vmem:[#allocation2 + $0x48] sm:$0xf] %v1782_v25  ;;  %v1129_v37 = vpop.f32.mrf.mxu2  ;;  %v1875_v54 = vld [vmem:[#allocation2 + $0x44] sm:$0x1]  ;;  %v2117_v33 = vshrl.u32 %v4327_v0, 16  ;;  %v2119_v46 = vshll.u32 %v4327_v0, 16 }
 0x1f9   : > { %v1518_v52 = vshrl.u32 %v1290_v45, 16  ;;  %v1521_v14 = vshll.u32 %v1290_v45, 16  ;;  %v1191_v53 = vadd.f32 %v1129_v37, %v1028_v34  ;;  %v2025_v61 = vunpack.c.l.b16 %v1875_v54  ;;  %v1348_v34 = vld [vmem:[#allocation2 + $0x6c] sm:$0x1]  ;;  %v4348_v37 = vpop.f32.mrf.mxu3 }
 0x1fa   : > { %v2121_v7 = vrot.slane %v2119_v46, 1  ;;  %v2323_v6 = vrot.slane %v4327_v0, 1  ;;  %v1349_v28 = vsel %vm4073_vm8, 0, %v1348_v34 }
 0x1fb   : > { %v1520_v30 = vrot.slane %v1518_v52, 7  ;;  %v1227_v15 = vadd.f32 %v4106_v26, %v1191_v53  ;;  %v2043_v18 = vpack.c.b16 %v2025_v61, %v2025_v61  ;;  %1350 = vst [vmem:[#allocation2 + $0x6c] sm:$0x1] %v1349_v28  ;;  %v1788_v52 = vld [vmem:[#allocation2 + $0x54] sm:$0xf]  ;;  %v1033_v61 = vadd.f32 %v1032_v49, %v933_v22 }
 0x1fc   : > { %v2122_v58 = vor.u32 %v2121_v7, %v2117_v33 }
 0x1fd   : > { %v1523_v16 = vor.u32 %v1521_v14, %v1520_v30  ;;  %v1525_v24 = vrot.slane %v1520_v30, 4  ;;  %v1259_v21 = vmax.f32 %v1227_v15, 0.0  ;;  %v2124_v31 = vshll.u32 %v2043_v18, 16  ;;  %v1398_v30 = vld [vmem:[#allocation2 + $0x74] sm:$0x1] }
 0x1fe   : > { %v2324_v32 = vrot.slane %v2043_v18, 1 }
 0x1ff   : > { %v1524_v2 = vsel %vm4149_vm14, %v1516_v4, %v1523_v16  ;;  %v1786_v38 = vsel %vm4073_vm8, %v1525_v24, %v1785_v42  ;;  %v1291_v47 = vpack.c.bf16 %v1259_v21, %v1259_v21  ;;  %v2126_v20 = vrot.slane %v2124_v31, 1  ;;  %v935_v16 = vpop.f32.mrf.mxu0  ;;  %v1034_v24 = vpop.f32.mrf.mxu1 }
 0x200   : > { %1784 = vst.msk [vmem:[#allocation2 + $0x4c] sm:$0xf] %vm1311_vm11, %v1524_v2  ;;  %v1131_v12 = vpop.f32.mrf.mxu2  ;;  %v2325_v60 = vsel %vm677_vm1, %v2323_v6, %v2324_v32  ;;  %v1399_v42 = vsel %vm4083_vm10, 0, %v1398_v30  ;;  %v1035_v22 = vadd.f32 %v1034_v24, %v935_v16 }
 0x201   : > { %1787 = vst [vmem:[#allocation2 + $0x50] sm:$0x1] %v1786_v38  ;;  %v1527_v62 = vshrl.u32 %v1291_v47, 16  ;;  %v1530_v25 = vshll.u32 %v1291_v47, 16  ;;  %v1192_v45 = vadd.f32 %v1131_v12, %v1030_v8  ;;  %v2127_v35 = vsel %vm424_vm0, %v2122_v58, %v2126_v20  ;;  %2372 = vrot.lane.b32.xlu2 %v2325_v60, %s3635_s25  ;;  %v1792_v20 = vld [vmem:[#allocation2 + $0x5c] sm:$0x1]  ;;  %v4361_v12 = vpop.f32.mrf.mxu3 }
 0x202   : > { %2282 = vrot.lane.b32.xlu1 %v2127_v35, %s3634_s24  ;;  %1400 = vst [vmem:[#allocation2 + $0x74] sm:$0x1] %v1399_v42 }
 0x203   : > { %v1529_v54 = vrot.slane %v1527_v62, 7  ;;  %v1228_v27 = vadd.f32 %v4106_v26, %v1192_v45 }
 0x205   : > { %v1532_v14 = vor.u32 %v1530_v25, %v1529_v54  ;;  %v1260_v53 = vmax.f32 %v1228_v27, 0.0  ;;  %v1533_v32 = vrot.slane %v1529_v54, 4 }
 0x207   : > { %v1789_v33 = vsel %vm4129_vm12, %v1532_v14, %v1788_v52  ;;  %v1292_v46 = vpack.c.bf16 %v1260_v53, %v1260_v53  ;;  %v4353_v4 = vld [vmem:[#allocation2 + $0x48] sm:$0xff]  ;;  %v1351_v53 = vld [vmem:[#allocation2 + $0x78] sm:$0x1] }
 0x208   : > { %1790 = vst [vmem:[#allocation2 + $0x54] sm:$0xf] %v1789_v33  ;;  %v1134_v15 = vpop.f32.mrf.mxu2  ;;  %v1878_v18 = vld [vmem:[#allocation2 + $0x50] sm:$0x1]  ;;  %v2129_v31 = vshrl.u32 %v4353_v4, 16  ;;  %v2131_v58 = vshll.u32 %v4353_v4, 16 }
 0x209   : > { %v1535_v8 = vshrl.u32 %v1292_v46, 16  ;;  %v1538_v7 = vshll.u32 %v1292_v46, 16  ;;  %v1193_v6 = vadd.f32 %v1134_v15, %v1033_v61  ;;  %v2026_v21 = vunpack.c.l.b16 %v1878_v18 }
 0x20a   : > { %v2133_v49 = vrot.slane %v2131_v58, 1  ;;  %v2326_v34 = vrot.slane %v4353_v4, 1  ;;  %v1352_v46 = vsel %vm4073_vm8, 0, %v1351_v53 }
 0x20b   : > { %v1537_v2 = vrot.slane %v1535_v8, 7  ;;  %v1229_v38 = vadd.f32 %v4106_v26, %v1193_v6  ;;  %v2044_v47 = vpack.c.b16 %v2026_v21, %v2026_v21  ;;  %1353 = vst [vmem:[#allocation2 + $0x78] sm:$0x1] %v1352_v46  ;;  %v1795_v6 = vld [vmem:[#allocation2 + $0x60] sm:$0xf]  ;;  %v1038_v21 = vadd.f32 %v4331_v39, %v4015_v40 }
 0x20c   : > { %v2134_v45 = vor.u32 %v2133_v49, %v2129_v31  ;;  %v4377_v31 = vpop.f32.mrf.mxu3  ;;  %v1040_v46 = vadd.f32 %v4348_v37, %v4017_v41 }
 0x20d   : > { %v1540_v60 = vor.u32 %v1538_v7, %v1537_v2  ;;  %v1542_v28 = vrot.slane %v1537_v2, 4  ;;  %v1261_v62 = vmax.f32 %v1229_v38, 0.0  ;;  %v2136_v25 = vshll.u32 %v2044_v47, 16  ;;  %v1401_v38 = vld [vmem:[#allocation2 + $0x80] sm:$0x1] }
 0x20e   : > { %v2327_v35 = vrot.slane %v2044_v47, 1 }
 0x20f   : > { %v1541_v54 = vsel %vm4149_vm14, %v1533_v32, %v1540_v60  ;;  %v1793_v27 = vsel %vm4073_vm8, %v1542_v28, %v1792_v20  ;;  %v1293_v52 = vpack.c.bf16 %v1261_v62, %v1261_v62  ;;  %v2138_v14 = vrot.slane %v2136_v25, 1 }
 0x210   : > { %1791 = vst.msk [vmem:[#allocation2 + $0x58] sm:$0xf] %vm1311_vm11, %v1541_v54  ;;  %v1136_v61 = vpop.f32.mrf.mxu2  ;;  %v2328_v33 = vsel %vm677_vm1, %v2326_v34, %v2327_v35 }
 0x211   : > { %1794 = vst [vmem:[#allocation2 + $0x5c] sm:$0x1] %v1793_v27  ;;  %v1544_v30 = vshrl.u32 %v1293_v52, 16  ;;  %v1194_v15 = vadd.f32 %v1136_v61, %v1035_v22  ;;  %v2139_v18 = vsel %vm424_vm0, %v2134_v45, %v2138_v14  ;;  %2374 = vrot.lane.b32.xlu1 %v2328_v33, %s3635_s25  ;;  %v1547_v8 = vshll.u32 %v1293_v52, 16  ;;  %v1799_v27 = vld [vmem:[#allocation2 + $0x68] sm:$0x1] }
 0x212   : > { %2284 = vrot.lane.b32.xlu0 %v2139_v18, %s3634_s24  ;;  %v1402_v22 = vsel %vm4083_vm10, 0, %v1401_v38 }
 0x213   : > { %v1546_v42 = vrot.slane %v1544_v30, 7  ;;  %v1230_v7 = vadd.f32 %v4106_v26, %v1194_v15  ;;  %1403 = vst [vmem:[#allocation2 + $0x80] sm:$0x1] %v1402_v22  ;;  %v1802_v22 = vld [vmem:[#allocation2 + $0x6c] sm:$0xf] }
 0x214   : > { %v4400_v37 = vpop.f32.mrf.mxu3 }
 0x215   : > { %v1549_v16 = vor.u32 %v1547_v8, %v1546_v42  ;;  %v1262_v24 = vmax.f32 %v1230_v7, 0.0  ;;  %v1550_v54 = vrot.slane %v1546_v42, 4 }
 0x217   : > { %v1796_v58 = vsel %vm4129_vm12, %v1549_v16, %v1795_v6  ;;  %v1294_v32 = vpack.c.bf16 %v1262_v24, %v1262_v24  ;;  %v4381_v2 = vld [vmem:[#allocation2 + $0x54] sm:$0xff]  ;;  %v1354_v6 = vld [vmem:[#allocation2 + $0x84] sm:$0x1] }
 0x218   : > { %1797 = vst [vmem:[#allocation2 + $0x60] sm:$0xf] %v1796_v58  ;;  %v1139_v47 = vpop.f32.mrf.mxu2  ;;  %v1881_v20 = vld [vmem:[#allocation2 + $0x5c] sm:$0x1]  ;;  %v2141_v39 = vshrl.u32 %v4381_v2, 16  ;;  %v2143_v28 = vshll.u32 %v4381_v2, 16 }
 0x219   : > { %v1552_v49 = vshrl.u32 %v1294_v32, 16  ;;  %v1195_v34 = vadd.f32 %v1139_v47, %v1038_v21  ;;  %v2027_v60 = vunpack.c.l.b16 %v1881_v20  ;;  %v1555_v40 = vshll.u32 %v1294_v32, 16 }
 0x21a   : > { %v2329_v35 = vrot.slane %v4381_v2, 1  ;;  %v2145_v52 = vrot.slane %v2143_v28, 1  ;;  %v1355_v41 = vsel %vm4073_vm8, 0, %v1354_v6 }
 0x21b   : > { %v1554_v62 = vrot.slane %v1552_v49, 7  ;;  %v1231_v25 = vadd.f32 %v4106_v26, %v1195_v34  ;;  %v2045_v45 = vpack.c.b16 %v2027_v60, %v2027_v60  ;;  %1356 = vst [vmem:[#allocation2 + $0x84] sm:$0x1] %v1355_v41  ;;  %v1043_v60 = vadd.f32 %v4361_v12, %v4027_v43 }
 0x21c   : > { %v2146_v30 = vor.u32 %v2145_v52, %v2141_v39  ;;  %v4414_v43 = vpop.f32.mrf.mxu3 }
 0x21d   : > { %v1557_v14 = vor.u32 %v1555_v40, %v1554_v62  ;;  %v1559_v53 = vrot.slane %v1554_v62, 4  ;;  %v1263_v61 = vmax.f32 %v1231_v25, 0.0  ;;  %v2330_v33 = vrot.slane %v2045_v45, 1  ;;  %v1404_v62 = vld [vmem:[#allocation2 + $0x8c] sm:$0x1] }
 0x21e   : > { %v2148_v15 = vshll.u32 %v2045_v45, 16 }
 0x21f   : > { %v1558_v18 = vsel %vm4149_vm14, %v1550_v54, %v1557_v14  ;;  %v1800_v8 = vsel %vm4073_vm8, %v1559_v53, %v1799_v27  ;;  %v1295_v7 = vpack.c.bf16 %v1263_v61, %v1263_v61  ;;  %v2331_v42 = vsel %vm677_vm1, %v2329_v35, %v2330_v33  ;;  %v4419_v53 = vld [vmem:[%s4944_s2] ss:$0 sm:$0xff] }
 0x220   : > { %1798 = vst.msk [vmem:[#allocation2 + $0x64] sm:$0xf] %vm1311_vm11, %v1558_v18  ;;  %2376 = vrot.lane.b32.xlu0 %v2331_v42, %s3635_s25  ;;  %v1141_v16 = vpop.f32.mrf.mxu2  ;;  %v2150_v24 = vrot.slane %v2148_v15, 1 }
 0x221   : > { %1801 = vst [vmem:[#allocation2 + $0x68] sm:$0x1] %v1800_v8  ;;  %v1561_v21 = vshrl.u32 %v1295_v7, 16  ;;  %v1196_v58 = vadd.f32 %v1141_v16, %v1040_v46  ;;  %v1564_v47 = vshll.u32 %v1295_v7, 16 }
 0x222   : > { %v2151_v32 = vsel %vm424_vm0, %v2146_v30, %v2150_v24  ;;  %v1806_v30 = vld [vmem:[#allocation2 + $0x74] sm:$0x1]  ;;  %v1045_v24 = vadd.f32 %v4377_v31, %v4029_v44 }
 0x223   : > { %v1563_v38 = vrot.slane %v1561_v21, 7  ;;  %v1232_v20 = vadd.f32 %v4106_v26, %v1196_v58  ;;  %2286 = vrot.lane.b32.xlu2 %v2151_v32, %s3634_s24  ;;  %v1405_v26 = vsel %vm4083_vm10, 0, %v1404_v62 }
 0x224   : > { %1406 = vst [vmem:[#allocation2 + $0x8c] sm:$0x1] %v1405_v26  ;;  %v4438_v26 = vpop.f32.mrf.mxu3 }
 0x225   : > { %v1566_v49 = vor.u32 %v1564_v47, %v1563_v38  ;;  %v1264_v34 = vmax.f32 %v1232_v20, 0.0  ;;  %v1567_v46 = vrot.slane %v1563_v38, 4  ;;  %v1357_v20 = vld [vmem:[#allocation2 + $0x90] sm:$0x1] }
 0x226   : > { %v1358_v44 = vsel %vm4073_vm8, 0, %v1357_v20 }
 0x227   : > { %v1803_v40 = vsel %vm4129_vm12, %v1566_v49, %v1802_v22  ;;  %v1296_v39 = vpack.c.bf16 %v1264_v34, %v1264_v34  ;;  %v4409_v28 = vld [vmem:[#allocation2 + $0x60] sm:$0xff]  ;;  %1359 = vst [vmem:[#allocation2 + $0x90] sm:$0x1] %v1358_v44 }
 0x228   : > { %1804 = vst [vmem:[#allocation2 + $0x6c] sm:$0xf] %v1803_v40  ;;  %v1144_v25 = vpop.f32.mrf.mxu2  ;;  %v1884_v45 = vld [vmem:[#allocation2 + $0x68] sm:$0x1]  ;;  %v2155_v52 = vshll.u32 %v4409_v28, 16  ;;  %v2332_v15 = vrot.slane %v4409_v28, 1 }
 0x229   : > { %v1569_v35 = vshrl.u32 %v1296_v39, 16  ;;  %v1197_v54 = vadd.f32 %v1144_v25, %v1043_v60  ;;  %v2028_v27 = vunpack.c.l.b16 %v1884_v45  ;;  %v1572_v14 = vshll.u32 %v1296_v39, 16  ;;  %v2365_v25 = vpop.permute.xlu2 %2364  ;;  %v1809_v45 = vld [vmem:[#allocation2 + $0x78] sm:$0xf] }
 0x22a   : > { %v2153_v18 = vshrl.u32 %v4409_v28, 16  ;;  %v2157_v8 = vrot.slane %v2155_v52, 1 }
 0x22b   : > { %v1571_v12 = vrot.slane %v1569_v35, 7  ;;  %v1233_v61 = vadd.f32 %v4419_v53, %v1197_v54  ;;  %v2046_v33 = vpack.c.b16 %v2028_v27, %v2028_v27 }
 0x22c   : > { %v2158_v41 = vor.u32 %v2157_v8, %v2153_v18 }
 0x22d   : > { %v1574_v7 = vor.u32 %v1572_v14, %v1571_v12  ;;  %v1576_v42 = vrot.slane %v1571_v12, 4  ;;  %v1265_v6 = vmax.f32 %v1233_v61, 0.0  ;;  %v2333_v16 = vrot.slane %v2046_v33, 1 }
 0x22e   : > { %v2160_v21 = vshll.u32 %v2046_v33, 16  ;;  %v1048_v12 = vadd.f32 %v4400_v37, %v4039_v50 }
 0x22f   : > { %v1575_v58 = vsel %vm4149_vm14, %v1567_v46, %v1574_v7  ;;  %v1807_v32 = vsel %vm4073_vm8, %v1576_v42, %v1806_v30  ;;  %v1297_v38 = vpack.c.bf16 %v1265_v6, %v1265_v6  ;;  %v2334_v47 = vsel %vm677_vm1, %v2332_v15, %v2333_v16  ;;  %v2273_v46 = vpop.permute.xlu0 %2272  ;;  %v1407_v15 = vld [vmem:[#allocation2 + $0x98] sm:$0x1]  ;;  %v3607_v42 = vld [vmem:[#allocation2] sm:$0xff] }
 0x230   : > { %1805 = vst.msk [vmem:[#allocation2 + $0x70] sm:$0xf] %vm1311_vm11, %v1575_v58  ;;  %2378 = vrot.lane.b32.xlu2 %v2334_v47, %s3635_s25  ;;  %v1146_v22 = vpop.f32.mrf.mxu2  ;;  %v2162_v49 = vrot.slane %v2160_v21, 1  ;;  %v1408_v50 = vsel %vm4083_vm10, 0, %v1407_v15  ;;  %v2399_v6 = vsel %vm768_vm3, %v3607_v42, %v2273_v46  ;;  %v1813_v47 = vld [vmem:[#allocation2 + $0x80] sm:$0x1] }
 0x231   : > { %1808 = vst [vmem:[#allocation2 + $0x74] sm:$0x1] %v1807_v32  ;;  %v1578_v31 = vshrl.u32 %v1297_v38, 16  ;;  %v1198_v34 = vadd.f32 %v1146_v22, %v1045_v24  ;;  %v1581_v39 = vshll.u32 %v1297_v38, 16  ;;  %v2277_v38 = vpop.permute.xlu2 %2276  ;;  %v1816_v42 = vld [vmem:[#allocation2 + $0x84] sm:$0xf] }
 0x232   : > { %v2163_v60 = vsel %vm424_vm0, %v2158_v41, %v2162_v49  ;;  %1409 = vst [vmem:[#allocation2 + $0x98] sm:$0x1] %v1408_v50 }
 0x233   : > { %v1580_v40 = vrot.slane %v1578_v31, 7  ;;  %v1234_v62 = vadd.f32 %v4419_v53, %v1198_v34  ;;  %2288 = vrot.lane.b32.xlu1 %v2163_v60, %s3634_s24 }
 0x235   : > { %v1583_v35 = vor.u32 %v1581_v39, %v1580_v40  ;;  %v1266_v54 = vmax.f32 %v1234_v62, 0.0  ;;  %v2275_v27 = vpop.permute.xlu1 %2274  ;;  %v1584_v32 = vrot.slane %v1580_v40, 4  ;;  %v1050_v62 = vadd.f32 %v4414_v43, %v4041_v51  ;;  %v4463_v40 = vpop.f32.mrf.mxu3 }
 0x236   : > { %v2401_v52 = vsel %vm768_vm3, %v4175_v17, %v2275_v27 }
 0x237   : > { %v1810_v14 = vsel %vm4129_vm12, %v1583_v35, %v1809_v45  ;;  %v1298_v61 = vpack.c.bf16 %v1266_v54, %v1266_v54  ;;  %v4447_v33 = vsel %vm805_vm4, %v2401_v52, %v2365_v25  ;;  %v4449_v30 = vld [vmem:[#allocation2 + $0x6c] sm:$0xff] }
 0x238   : > { %1811 = vst [vmem:[#allocation2 + $0x78] sm:$0xf] %v1810_v14  ;;  %3487 = vmatmul.msk.bf16.vlgmr.msrb.gmra.mxu3 %vm852_vm5, %v4447_v33  ;;  %v1149_v18 = vpop.f32.mrf.mxu2  ;;  %v1887_v17 = vld [vmem:[#allocation2 + $0x74] sm:$0x1]  ;;  %v2167_v16 = vshll.u32 %v4449_v30, 16  ;;  %v2335_v20 = vrot.slane %v4449_v30, 1 }
 0x239   : > { %v1586_v37 = vshrl.u32 %v1298_v61, 16  ;;  %v1199_v8 = vadd.f32 %v1149_v18, %v1048_v12  ;;  %v2029_v7 = vunpack.c.l.b16 %v1887_v17  ;;  %v1589_v41 = vshll.u32 %v1298_v61, 16  ;;  %v1360_v14 = vld [vmem:[#allocation2 + $0x9c] sm:$0x1] }
 0x23a   : > { %v2165_v22 = vshrl.u32 %v4449_v30, 16  ;;  %v2169_v49 = vrot.slane %v2167_v16, 1  ;;  %v1361_v61 = vsel %vm4073_vm8, 0, %v1360_v14  ;;  %v2403_v17 = vsel %vm768_vm3, %v4220_v48, %v2277_v38  ;;  %v767_v16 = vpop.permute.xlu2 %766 }
 0x23b   : > { %v1588_v24 = vrot.slane %v1586_v37, 7  ;;  %v1235_v21 = vadd.f32 %v4419_v53, %v1199_v8  ;;  %v2047_v58 = vpack.c.b16 %v2029_v7, %v2029_v7  ;;  %1362 = vst [vmem:[#allocation2 + $0x9c] sm:$0x1] %v1361_v61 }
 0x23c   : > { %v2170_v45 = vor.u32 %v2169_v49, %v2165_v22  ;;  %v1410_v49 = vld [vmem:[#allocation2 + $0xa4] sm:$0x1] }
 0x23d   : > { %v1591_v44 = vor.u32 %v1589_v41, %v1588_v24  ;;  %v1593_v31 = vrot.slane %v1588_v24, 4  ;;  %v1267_v34 = vmax.f32 %v1235_v21, 0.0  ;;  %v2363_v60 = vpop.permute.xlu1 %2362  ;;  %v2336_v39 = vrot.slane %v2047_v58, 1 }
 0x23e   : > { %v2435_v25 = vsel %vm805_vm4, %v2399_v6, %v2363_v60  ;;  %v2172_v35 = vshll.u32 %v2047_v58, 16  ;;  %v3608_v58 = vld [vmem:[%s3681_s23 + $0xcc] sm:$0xff] }
 0x23f   : > { %v1592_v54 = vsel %vm4149_vm14, %v1584_v32, %v1591_v44  ;;  %v1814_v27 = vsel %vm4073_vm8, %v1593_v31, %v1813_v47  ;;  %v1299_v52 = vpack.c.bf16 %v1267_v34, %v1267_v34  ;;  %3507 = vmatmul.msk.bf16.vlgmr.msrb.gmra.mxu0 %vm852_vm5, %v2435_v25  ;;  %v2337_v12 = vsel %vm677_vm1, %v2335_v20, %v2336_v39 }
 0x240   : > { %1812 = vst.msk [vmem:[#allocation2 + $0x7c] sm:$0xf] %vm1311_vm11, %v1592_v54  ;;  %2380 = vrot.lane.b32.xlu1 %v2337_v12, %s3635_s25  ;;  %v1151_v51 = vpop.f32.mrf.mxu2  ;;  %v2174_v43 = vrot.slane %v2172_v35, 1  ;;  %v1053_v32 = vadd.f32 %v4438_v26, %v4051_v55  ;;  %v1411_v55 = vsel %vm4083_vm10, 0, %v1410_v49  ;;  %v1057_v26 = vpop.f32.mrf.mxu3 }
 0x241   : > { %1815 = vst [vmem:[#allocation2 + $0x80] sm:$0x1] %v1814_v27  ;;  %v1595_v46 = vshrl.u32 %v1299_v52, 16  ;;  %v1200_v15 = vadd.f32 %v1151_v51, %v1050_v62  ;;  %v1598_v37 = vshll.u32 %v1299_v52, 16  ;;  %v1820_v52 = vld [vmem:[#allocation2 + $0x8c] sm:$0x1] }
 0x242   : > { %v2175_v18 = vsel %vm424_vm0, %v2170_v45, %v2174_v43  ;;  %v2367_v7 = vpop.permute.xlu0 %2366  ;;  %1412 = vst [vmem:[#allocation2 + $0xa4] sm:$0x1] %v1411_v55 }
 0x243   : > { %v1597_v50 = vrot.slane %v1595_v46, 7  ;;  %v1236_v8 = vadd.f32 %v4419_v53, %v1200_v15  ;;  %2290 = vrot.lane.b32.xlu0 %v2175_v18, %s3634_s24  ;;  %v4481_v6 = vsel %vm805_vm4, %v2403_v17, %v2367_v7  ;;  %v1055_v18 = vadd.f32 %v4463_v40, %v4053_v23 }
 0x244   : > { %3529 = vmatmul.msk.bf16.vlgmr.msrb.gmra.mxu1 %vm852_vm5, %v4481_v6 }
 0x245   : > { %v1600_v24 = vor.u32 %v1598_v37, %v1597_v50  ;;  %v1268_v41 = vmax.f32 %v1236_v8, 0.0  ;;  %v676_v21 = vpop.permute.xlu1 %675  ;;  %v1601_v27 = vrot.slane %v1597_v50, 4 }
 0x246   : > { %v804_v48 = vsel %vm768_vm3, %v3608_v58, %v676_v21 }
 0x247   : > { %v1817_v38 = vsel %vm4129_vm12, %v1600_v24, %v1816_v42  ;;  %v1300_v47 = vpack.c.bf16 %v1268_v41, %v1268_v41  ;;  %v841_v20 = vsel %vm805_vm4, %v804_v48, %v767_v16  ;;  %v4492_v22 = vld [vmem:[#allocation2 + $0x78] sm:$0xff]  ;;  %v1363_v16 = vld [vmem:[#allocation2 + $0xa8] sm:$0x1] }
 0x248   : > { %1818 = vst [vmem:[#allocation2 + $0x84] sm:$0xf] %v1817_v38  ;;  %3408 = vmatmul.msk.bf16.gmra.mxu2 %vm852_vm5, %v841_v20  ;;  %3488 = vmatmul.msk.bf16.gmra.mxu3 %vm852_vm5, %v4481_v6  ;;  %v1154_v44 = vpop.f32.mrf.mxu2  ;;  %v1890_v31 = vld [vmem:[#allocation2 + $0x80] sm:$0x1]  ;;  %v2179_v62 = vshll.u32 %v4492_v22, 16  ;;  %v2338_v12 = vrot.slane %v4492_v22, 1  ;;  %v1059_v48 = vpop.f32.mrf.mxu3 }
 0x249   : > { %v1603_v34 = vshrl.u32 %v1300_v47, 16  ;;  %v1201_v60 = vadd.f32 %v1154_v44, %v1053_v32  ;;  %v2030_v39 = vunpack.c.l.b16 %v1890_v31  ;;  %v1606_v45 = vshll.u32 %v1300_v47, 16  ;;  %v1823_v47 = vld [vmem:[#allocation2 + $0x90] sm:$0xf] }
 0x24a   : > { %v2177_v14 = vshrl.u32 %v4492_v22, 16  ;;  %v2181_v51 = vrot.slane %v2179_v62, 1  ;;  %v1364_v24 = vsel %vm4073_vm8, 0, %v1363_v16  ;;  %v1060_v16 = vadd.f32 %v1059_v48, %v4061_v56 }
 0x24b   : > { %v1605_v25 = vrot.slane %v1603_v34, 7  ;;  %v1237_v35 = vadd.f32 %v4419_v53, %v1201_v60  ;;  %v2048_v54 = vpack.c.b16 %v2030_v39, %v2030_v39  ;;  %1365 = vst [vmem:[#allocation2 + $0xa8] sm:$0x1] %v1364_v24  ;;  %v1058_v34 = vadd.f32 %v1057_v26, %v4059_v3 }
 0x24c   : > { %v2182_v17 = vor.u32 %v2181_v51, %v2177_v14 }
 0x24d   : > { %v1608_v43 = vor.u32 %v1606_v45, %v1605_v25  ;;  %v1610_v61 = vrot.slane %v1605_v25, 4  ;;  %v1269_v46 = vmax.f32 %v1237_v35, 0.0  ;;  %v2339_v15 = vrot.slane %v2048_v54, 1  ;;  %v1413_v45 = vld [vmem:[#allocation2 + $0xb0] sm:$0x1] }
 0x24e   : > { %v2184_v37 = vshll.u32 %v2048_v54, 16  ;;  %v1414_v3 = vsel %vm4083_vm10, 0, %v1413_v45 }
 0x24f   : > { %v1609_v8 = vsel %vm4149_vm14, %v1601_v27, %v1608_v43  ;;  %v1821_v50 = vsel %vm4073_vm8, %v1610_v61, %v1820_v52  ;;  %v1301_v7 = vpack.c.bf16 %v1269_v46, %v1269_v46  ;;  %3508 = vmatmul.msk.bf16.gmra.mxu0 %vm852_vm5, %v4447_v33  ;;  %v2340_v42 = vsel %vm677_vm1, %v2338_v12, %v2339_v15  ;;  %v1827_v46 = vld [vmem:[#allocation2 + $0x98] sm:$0x1] }
 0x250   : > { %1819 = vst.msk [vmem:[#allocation2 + $0x88] sm:$0xf] %vm1311_vm11, %v1609_v8  ;;  %2382 = vrot.lane.b32.xlu0 %v2340_v42, %s3635_s25  ;;  %v1156_v23 = vpop.f32.mrf.mxu2  ;;  %v2186_v40 = vrot.slane %v2184_v37, 1  ;;  %v1062_v37 = vpop.f32.mrf.mxu3 }
 0x251   : > { %1822 = vst [vmem:[#allocation2 + $0x8c] sm:$0x1] %v1821_v50  ;;  %v1612_v41 = vshrl.u32 %v1301_v7, 16  ;;  %v1202_v21 = vadd.f32 %v1156_v23, %v1055_v18  ;;  %v1615_v32 = vshll.u32 %v1301_v7, 16 }
 0x252   : > { %v2187_v58 = vsel %vm424_vm0, %v2182_v17, %v2186_v40  ;;  %v2369_v31 = vpop.permute.xlu1 %2368  ;;  %1415 = vst [vmem:[#allocation2 + $0xb0] sm:$0x1] %v1414_v3 }
 0x253   : > { %v1614_v33 = vrot.slane %v1612_v41, 7  ;;  %v1238_v38 = vadd.f32 %v4419_v53, %v1202_v21  ;;  %2292 = vrot.lane.b32.xlu2 %v2187_v58, %s3634_s24 }
 0x255   : > { %v1617_v20 = vor.u32 %v1615_v32, %v1614_v33  ;;  %v1270_v49 = vmax.f32 %v1238_v38, 0.0  ;;  %v2279_v44 = vpop.permute.xlu0 %2278  ;;  %v1618_v61 = vrot.slane %v1614_v33, 4  ;;  %v1366_v33 = vld [vmem:[#allocation2 + $0xb4] sm:$0x1] }
 0x256   : > { %v2405_v55 = vsel %vm768_vm3, %v4256_v19, %v2279_v44  ;;  %v1367_v32 = vsel %vm4073_vm8, 0, %v1366_v33 }
 0x257   : > { %v1824_v60 = vsel %vm4129_vm12, %v1617_v20, %v1823_v47  ;;  %v1302_v39 = vpack.c.bf16 %v1270_v49, %v1270_v49  ;;  %v4525_v62 = vsel %vm805_vm4, %v2405_v55, %v2369_v31  ;;  %v4527_v25 = vld [vmem:[#allocation2 + $0x84] sm:$0xff]  ;;  %1368 = vst [vmem:[#allocation2 + $0xb4] sm:$0x1] %v1367_v32  ;;  %v2281_v49 = vpop.permute.xlu2 %2280  ;;  %v1830_v55 = vld [vmem:[#allocation2 + $0x9c] sm:$0xf] }
 0x258   : > { %1825 = vst [vmem:[#allocation2 + $0x90] sm:$0xf] %v1824_v60  ;;  %3489 = vmatmul.msk.bf16.gmra.mxu3 %vm852_vm5, %v4525_v62  ;;  %3530 = vmatmul.msk.bf16.gmra.mxu1 %vm852_vm5, %v4525_v62  ;;  %v1159_v19 = vpop.f32.mrf.mxu2  ;;  %v1893_v35 = vld [vmem:[#allocation2 + $0x8c] sm:$0x1]  ;;  %v2191_v52 = vshll.u32 %v4527_v25, 16  ;;  %v2341_v15 = vrot.slane %v4527_v25, 1  ;;  %v2407_v45 = vsel %vm768_vm3, %v4282_v10, %v2281_v49 }
 0x259   : > { %v1620_v26 = vshrl.u32 %v1302_v39, 16  ;;  %v1203_v54 = vadd.f32 %v1159_v19, %v1058_v34  ;;  %v2031_v27 = vunpack.c.l.b16 %v1893_v35  ;;  %v1623_v14 = vshll.u32 %v1302_v39, 16  ;;  %v1064_v35 = vpop.f32.mrf.mxu3 }
 0x25a   : > { %v2189_v18 = vshrl.u32 %v4527_v25, 16  ;;  %v2193_v17 = vrot.slane %v2191_v52, 1  ;;  %v1063_v19 = vadd.f32 %v1062_v37, %v4064_v57  ;;  %v1416_v52 = vld [vmem:[#allocation2 + $0xbc] sm:$0x1] }
 0x25b   : > { %v1622_v12 = vrot.slane %v1620_v26, 7  ;;  %v1239_v51 = vadd.f32 %v4419_v53, %v1203_v54  ;;  %v2049_v43 = vpack.c.b16 %v2031_v27, %v2031_v27 }
 0x25c   : > { %v2194_v23 = vor.u32 %v2193_v17, %v2189_v18 }
 0x25d   : > { %v1625_v8 = vor.u32 %v1623_v14, %v1622_v12  ;;  %v1627_v50 = vrot.slane %v1622_v12, 4  ;;  %v1271_v7 = vmax.f32 %v1239_v51, 0.0  ;;  %v2342_v42 = vrot.slane %v2049_v43, 1 }
 0x25e   : > { %v2196_v40 = vshll.u32 %v2049_v43, 16  ;;  %v1417_v12 = vsel %vm4083_vm10, 0, %v1416_v52 }
 0x25f   : > { %v1626_v24 = vsel %vm4149_vm14, %v1618_v61, %v1625_v8  ;;  %v1828_v41 = vsel %vm4073_vm8, %v1627_v50, %v1827_v46  ;;  %v1303_v21 = vpack.c.bf16 %v1271_v7, %v1271_v7  ;;  %3509 = vmatmul.msk.bf16.gmra.mxu0 %vm852_vm5, %v4481_v6  ;;  %v2343_v58 = vsel %vm677_vm1, %v2341_v15, %v2342_v42  ;;  %v1834_v8 = vld [vmem:[#allocation2 + $0xa4] sm:$0x1] }
 0x260   : > { %1826 = vst.msk [vmem:[#allocation2 + $0x94] sm:$0xf] %vm1311_vm11, %v1626_v24  ;;  %2384 = vrot.lane.b32.xlu2 %v2343_v58, %s3635_s25  ;;  %v1161_v56 = vpop.f32.mrf.mxu2  ;;  %v2198_v48 = vrot.slane %v2196_v40, 1 }
 0x261   : > { %1829 = vst [vmem:[#allocation2 + $0x98] sm:$0x1] %v1828_v41  ;;  %v1629_v38 = vshrl.u32 %v1303_v21, 16  ;;  %v1204_v47 = vadd.f32 %v1161_v56, %v1060_v16  ;;  %v1632_v44 = vshll.u32 %v1303_v21, 16  ;;  %v1065_v41 = vadd.f32 %v1064_v35, %v4066_v59 }
 0x262   : > { %v2199_v20 = vsel %vm424_vm0, %v2194_v23, %v2198_v48  ;;  %v2371_v34 = vpop.permute.xlu0 %2370  ;;  %1418 = vst [vmem:[#allocation2 + $0xbc] sm:$0x1] %v1417_v12 }
 0x263   : > { %v1631_v6 = vrot.slane %v1629_v38, 7  ;;  %v1240_v31 = vadd.f32 %v4419_v53, %v1204_v47  ;;  %2294 = vrot.lane.b32.xlu1 %v2199_v20, %s3634_s24  ;;  %v4560_v54 = vsel %vm805_vm4, %v2407_v45, %v2371_v34  ;;  %v1067_v47 = vpop.f32.mrf.mxu3 }
 0x265   : > { %v1634_v60 = vor.u32 %v1632_v44, %v1631_v6  ;;  %v1272_v39 = vmax.f32 %v1240_v31, 0.0  ;;  %v1635_v37 = vrot.slane %v1631_v6, 4 }
 0x267   : > { %v1831_v3 = vsel %vm4129_vm12, %v1634_v60, %v1830_v55  ;;  %v1304_v26 = vpack.c.bf16 %v1272_v39, %v1272_v39  ;;  %v4562_v27 = vld [vmem:[#allocation2 + $0x90] sm:$0xff]  ;;  %v2373_v60 = vpop.permute.xlu2 %2372 }
 0x268   : > { %1832 = vst [vmem:[#allocation2 + $0x9c] sm:$0xf] %v1831_v3  ;;  %3490 = vmatmul.msk.bf16.gmra.mxu3 %vm852_vm5, %v4560_v54  ;;  %3531 = vmatmul.msk.bf16.gmra.mxu1 %vm852_vm5, %v4560_v54  ;;  %v1164_v10 = vpop.f32.mrf.mxu2  ;;  %v1896_v57 = vld [vmem:[#allocation2 + $0x98] sm:$0x1]  ;;  %v2203_v61 = vshll.u32 %v4562_v27, 16  ;;  %v2344_v50 = vrot.slane %v4562_v27, 1  ;;  %v1068_v3 = vadd.f32 %v1067_v47, %v4069_v63 }
 0x269   : > { %v1637_v14 = vshrl.u32 %v1304_v26, 16  ;;  %v1205_v51 = vadd.f32 %v1164_v10, %v1063_v19  ;;  %v2032_v43 = vunpack.c.l.b16 %v1896_v57  ;;  %v1640_v15 = vshll.u32 %v1304_v26, 16 }
 0x26a   : > { %v2201_v7 = vshrl.u32 %v4562_v27, 16  ;;  %v2205_v42 = vrot.slane %v2203_v61, 1 }
 0x26b   : > { %v1639_v46 = vrot.slane %v1637_v14, 7  ;;  %v1241_v18 = vadd.f32 %v4419_v53, %v1205_v51  ;;  %v2050_v17 = vpack.c.b16 %v2032_v43, %v2032_v43  ;;  %v1069_v43 = vpop.f32.mrf.mxu3 }
 0x26c   : > { %v2206_v21 = vor.u32 %v2205_v42, %v2201_v7 }
 0x26d   : > { %v1642_v16 = vor.u32 %v1640_v15, %v1639_v46  ;;  %v1644_v23 = vrot.slane %v1639_v46, 4  ;;  %v1273_v40 = vmax.f32 %v1241_v18, 0.0  ;;  %v2345_v24 = vrot.slane %v2050_v17, 1 }
 0x26e   : > { %v2208_v58 = vshll.u32 %v2050_v17, 16 }
 0x26f   : > { %v1643_v33 = vsel %vm4149_vm14, %v1635_v37, %v1642_v16  ;;  %v1835_v56 = vsel %vm4073_vm8, %v1644_v23, %v1834_v8  ;;  %v1305_v48 = vpack.c.bf16 %v1273_v40, %v1273_v40  ;;  %3510 = vmatmul.msk.bf16.gmra.mxu0 %vm852_vm5, %v4525_v62  ;;  %v2346_v32 = vsel %vm677_vm1, %v2344_v50, %v2345_v24  ;;  %v1837_v62 = vld [vmem:[#allocation2 + $0xa8] sm:$0xf]  ;;  %v1841_v37 = vld [vmem:[#allocation2 + $0xb0] sm:$0x1] }
 0x270   : > { %1833 = vst.msk [vmem:[#allocation2 + $0xa0] sm:$0xf] %vm1311_vm11, %v1643_v33  ;;  %2386 = vrot.lane.b32.xlu1 %v2346_v32, %s3635_s25  ;;  %v1166_v38 = vpop.f32.mrf.mxu2  ;;  %v2210_v59 = vrot.slane %v2208_v58, 1  ;;  %v1070_v24 = vadd.f32 %v1069_v43, %v4079_v5 }
 0x271   : > { %1836 = vst [vmem:[#allocation2 + $0xa4] sm:$0x1] %v1835_v56  ;;  %v1646_v20 = vshrl.u32 %v1305_v48, 16  ;;  %v1206_v49 = vadd.f32 %v1166_v38, %v1065_v41  ;;  %v1649_v31 = vshll.u32 %v1305_v48, 16 }
 0x272   : > { %v2211_v6 = vsel %vm424_vm0, %v2206_v21, %v2210_v59 }
 0x273   : > { %v1648_v44 = vrot.slane %v1646_v20, 7  ;;  %v1242_v55 = vadd.f32 %v4419_v53, %v1206_v49  ;;  %2296 = vrot.lane.b32.xlu0 %v2211_v6, %s3634_s24 }
 0x274   : > { %v2283_v34 = vpop.permute.xlu1 %2282 }
 0x275   : > { %v1651_v39 = vor.u32 %v1649_v31, %v1648_v44  ;;  %v1274_v45 = vmax.f32 %v1242_v55, 0.0  ;;  %v2409_v19 = vsel %vm768_vm3, %v4327_v0, %v2283_v34  ;;  %v1652_v17 = vrot.slane %v1648_v44, 4  ;;  %v1844_v44 = vld [vmem:[#allocation2 + $0xb4] sm:$0xf] }
 0x276   : > { %v4590_v35 = vsel %vm805_vm4, %v2409_v19, %v2373_v60 }
 0x277   : > { %v1838_v26 = vsel %vm4129_vm12, %v1651_v39, %v1837_v62  ;;  %v1306_v52 = vpack.c.bf16 %v1274_v45, %v1274_v45  ;;  %v4595_v10 = vld [vmem:[#allocation2 + $0x9c] sm:$0xff] }
 0x278   : > { %1839 = vst [vmem:[#allocation2 + $0xa8] sm:$0xf] %v1838_v26  ;;  %3491 = vmatmul.msk.bf16.gmra.mxu3 %vm852_vm5, %v4590_v35  ;;  %3532 = vmatmul.msk.bf16.gmra.mxu1 %vm852_vm5, %v4590_v35  ;;  %v1169_v57 = vpop.f32.mrf.mxu2  ;;  %v1899_v0 = vld [vmem:[#allocation2 + $0xa4] sm:$0x1]  ;;  %v2215_v63 = vshll.u32 %v4595_v10, 16  ;;  %v2347_v8 = vrot.slane %v4595_v10, 1 }
 0x279   : > { %v1654_v12 = vshrl.u32 %v1306_v52, 16  ;;  %v1207_v14 = vadd.f32 %v1169_v57, %v1068_v3  ;;  %v2033_v51 = vunpack.c.l.b16 %v1899_v0  ;;  %v1657_v46 = vshll.u32 %v1306_v52, 16 }
 0x27a   : > { %v2213_v50 = vshrl.u32 %v4595_v10, 16  ;;  %v2217_v7 = vrot.slane %v2215_v63, 1 }
 0x27b   : > { %v1656_v61 = vrot.slane %v1654_v12, 7  ;;  %v1243_v15 = vadd.f32 %v4419_v53, %v1207_v14  ;;  %v2051_v18 = vpack.c.b16 %v2033_v51, %v2033_v51  ;;  %v1848_v51 = vld [vmem:[#allocation2 + $0xbc] sm:$0x1] }
 0x27c   : > { %v2218_v41 = vor.u32 %v2217_v7, %v2213_v50 }
 0x27d   : > { %v1659_v42 = vor.u32 %v1657_v46, %v1656_v61  ;;  %v1661_v16 = vrot.slane %v1656_v61, 4  ;;  %v1275_v23 = vmax.f32 %v1243_v15, 0.0  ;;  %v2348_v40 = vrot.slane %v2051_v18, 1 }
 0x27e   : > { %v2220_v21 = vshll.u32 %v2051_v18, 16 }
 0x27f   : > { %v1660_v58 = vsel %vm4149_vm14, %v1652_v17, %v1659_v42  ;;  %v1842_v33 = vsel %vm4073_vm8, %v1661_v16, %v1841_v37  ;;  %v1307_v56 = vpack.c.bf16 %v1275_v23, %v1275_v23  ;;  %3511 = vmatmul.msk.bf16.gmra.mxu0 %vm852_vm5, %v4560_v54  ;;  %v2349_v48 = vsel %vm677_vm1, %v2347_v8, %v2348_v40  ;;  %v2287_v23 = vpop.permute.xlu2 %2286 }
 0x280   : > { %1840 = vst.msk [vmem:[#allocation2 + $0xac] sm:$0xf] %vm1311_vm11, %v1660_v58  ;;  %2388 = vrot.lane.b32.xlu0 %v2349_v48, %s3635_s25  ;;  %v1171_v32 = vpop.f32.mrf.mxu2  ;;  %v2222_v5 = vrot.slane %v2220_v21, 1 }
 0x281   : > { %1843 = vst [vmem:[#allocation2 + $0xb0] sm:$0x1] %v1842_v33  ;;  %v1663_v38 = vshrl.u32 %v1307_v56, 16  ;;  %v1208_v59 = vadd.f32 %v1171_v32, %v1070_v24  ;;  %v1666_v49 = vshll.u32 %v1307_v56, 16  ;;  %v2413_v24 = vsel %vm768_vm3, %v4381_v2, %v2287_v23 }
 0x282   : > { %v2223_v47 = vsel %vm424_vm0, %v2218_v41, %v2222_v5 }
 0x283   : > { %v1665_v20 = vrot.slane %v1663_v38, 7  ;;  %v1244_v6 = vadd.f32 %v4419_v53, %v1208_v59  ;;  %2298 = vrot.lane.b32.xlu2 %v2223_v47, %s3634_s24  ;;  %v2375_v54 = vpop.permute.xlu1 %2374 }
 0x284   : > { %v2285_v31 = vpop.permute.xlu0 %2284 }
 0x285   : > { %v1668_v55 = vor.u32 %v1666_v49, %v1665_v20  ;;  %v1276_v62 = vmax.f32 %v1244_v6, 0.0  ;;  %v2411_v34 = vsel %vm768_vm3, %v4353_v4, %v2285_v31  ;;  %v1669_v14 = vrot.slane %v1665_v20, 4 }
 0x286   : > { %v2447_v60 = vsel %vm805_vm4, %v2411_v34, %v2375_v54 }
 0x287   : > { %v1845_v39 = vsel %vm4129_vm12, %v1668_v55, %v1844_v44  ;;  %v1308_v45 = vpack.c.bf16 %v1276_v62, %v1276_v62  ;;  %v4623_v19 = vld [vmem:[#allocation2 + $0xa8] sm:$0xff]  ;;  %v1072_v55 = vpop.f32.mrf.mxu3  ;;  %v1369_v62 = vld [vmem:[#allocation2 + $0xc0] sm:$0x1] }
 0x288   : > { %1846 = vst [vmem:[#allocation2 + $0xb4] sm:$0xf] %v1845_v39  ;;  %3492 = vmatmul.msk.bf16.gmra.mxu3 %vm852_vm5, %v2447_v60  ;;  %3533 = vmatmul.msk.bf16.gmra.mxu1 %vm852_vm5, %v2447_v60  ;;  %v1902_v3 = vld [vmem:[#allocation2 + $0xb0] sm:$0x1]  ;;  %v2227_v57 = vshll.u32 %v4623_v19, 16  ;;  %v2350_v63 = vrot.slane %v4623_v19, 1 }
 0x289   : > { %v1671_v26 = vshrl.u32 %v1308_v45, 16  ;;  %v2034_v52 = vunpack.c.l.b16 %v1902_v3  ;;  %v1674_v4 = vshll.u32 %v1308_v45, 16  ;;  %v2225_v43 = vshrl.u32 %v4623_v19, 16  ;;  %v229_v3 = vld [vmem:[%s3681_s23 + $0xc] sm:$0xff]  }
 0x28a   : > { %v2229_v61 = vrot.slane %v2227_v57, 1  ;;  %v2379_v54 = vpop.permute.xlu2 %2378  ;;  %v1370_v34 = vsel %vm4073_vm8, 0, %v1369_v62  ;;  %v2837_v57 = vunpack.c.l.bf16 %v229_v3 }
 0x28b   : > { %v1673_v0 = vrot.slane %v1671_v26, 7  ;;  %v2052_v12 = vpack.c.b16 %v2034_v52, %v2034_v52  ;;  %1371 = vst [vmem:[#allocation2 + $0xc0] sm:$0x1] %v1370_v34  ;;  %v1419_v52 = vld [vmem:[#allocation2 + $0xc8] sm:$0x1] }
 0x28c   : > { %v2230_v37 = vor.u32 %v2229_v61, %v2225_v43 }
 0x28d   : > { %v1676_v46 = vor.u32 %v1674_v4, %v1673_v0  ;;  %v1678_v15 = vrot.slane %v1673_v0, 4  ;;  %v2351_v18 = vrot.slane %v2052_v12, 1  ;;  %v2232_v17 = vshll.u32 %v2052_v12, 16 }
 0x28e   : > { %v2838_v0 = vunpack.c.h.bf16 %v229_v3  ;;  %v1420_v4 = vsel %vm4083_vm10, 0, %v1419_v52 }
 0x28f   : > { %v1677_v8 = vsel %vm4149_vm14, %v1669_v14, %v1676_v46  ;;  %v1849_v50 = vsel %vm4073_vm8, %v1678_v15, %v1848_v51  ;;  %3512 = vmatmul.msk.bf16.gmra.mxu0 %vm852_vm5, %v4590_v35  ;;  %v2352_v7 = vsel %vm677_vm1, %v2350_v63, %v2351_v18  ;;  %v2234_v42 = vrot.slane %v2232_v17, 1  ;;  %1421 = vst [vmem:[#allocation2 + $0xc8] sm:$0x1] %v1420_v4  ;;  %v4680_v15 = vld [vmem:[%s4946_s4] ss:$0 sm:$0xff] }
 0x290   : > { %1847 = vst.msk [vmem:[#allocation2 + $0xb8] sm:$0xf] %vm1311_vm11, %v1677_v8  ;;  %2390 = vrot.lane.b32.xlu2 %v2352_v7, %s3635_s25  ;;  %v2934_v51 = vrot.slane %v2837_v57, 1  ;;  %v2935_v63 = vrot.slane %v2838_v0, 1 }
 0x291   : > { %1850 = vst [vmem:[#allocation2 + $0xbc] sm:$0x1] %v1849_v50  ;;  %v2235_v16 = vsel %vm424_vm0, %v2230_v37, %v2234_v42 }
 0x292   : > { %2300 = vrot.lane.b32.xlu1 %v2235_v16, %s3634_s24  ;;  %v2377_v40 = vpop.permute.xlu0 %2376  ;;  %v2936_v46 = vsel %vm677_vm1, %v2934_v51, %v2935_v63 }
 0x293   : > { %v2449_v41 = vsel %vm805_vm4, %v2413_v24, %v2377_v40  ;;  %v3046_v8 = vsel %vm768_vm3, %v2936_v46, 0.0  ;;  %v1851_v46 = vld [vmem:[#allocation2 + $0xc0] sm:$0xf] }
 0x297   : > { %v4644_v35 = vld [vmem:[#allocation2 + $0xb4] sm:$0xff] }
 0x298   : > { %3493 = vmatmul.msk.bf16.gmra.mxu3 %vm852_vm5, %v2449_v41  ;;  %3534 = vmatmul.msk.bf16.gmra.mxu1 %vm852_vm5, %v2449_v41  ;;  %v1905_v21 = vld [vmem:[#allocation2 + $0xbc] sm:$0x1]  ;;  %v2239_v33 = vshll.u32 %v4644_v35, 16  ;;  %v2237_v48 = vshrl.u32 %v4644_v35, 16  ;;  %v2353_v5 = vrot.slane %v4644_v35, 1 }
 0x299   : > { %v2035_v58 = vunpack.c.l.b16 %v1905_v21 }
 0x29a   : > { %v2241_v32 = vrot.slane %v2239_v33, 1  ;;  %v1073_v33 = vadd.f32 %v1072_v55, %v4091_v11  ;;  %v3610_v55 = vld [vmem:[%s3681_s23 + $0x20] sm:$0x1] }
 0x29b   : > { %v2053_v56 = vpack.c.b16 %v2035_v58, %v2035_v58  ;;  %v232_v58 = vld [vmem:[%s3681_s23 + $0x18] sm:$0xff]   ;;  %v2842_v62 = vunpack.c.l.bf16 %v3610_v55 }
 0x29c   : > { %v2242_v2 = vor.u32 %v2241_v32, %v2237_v48 }
 0x29d   : > { %v2354_v38 = vrot.slane %v2053_v56, 1  ;;  %v2244_v59 = vshll.u32 %v2053_v56, 16 }
 0x29f   : > { %3513 = vmatmul.msk.bf16.gmra.mxu0 %vm852_vm5, %v2447_v60  ;;  %v2355_v47 = vsel %vm677_vm1, %v2353_v5, %v2354_v38  ;;  %v2246_v20 = vrot.slane %v2244_v59, 1  ;;  %v4664_v60 = vpop.f32.mrf.mxu3 }
 0x2a0   : > { %2392 = vrot.lane.b32.xlu1 %v2355_v47, %s3635_s25  ;;  %v2840_v47 = vunpack.c.l.bf16 %v232_v58 }
 0x2a1   : > { %v2247_v49 = vsel %vm424_vm0, %v2242_v2, %v2246_v20  ;;  %v2841_v20 = vunpack.c.h.bf16 %v232_v58 }
 0x2a2   : > { %2302 = vrot.lane.b32.xlu0 %v2247_v49, %s3634_s24 }
 0x2a5   : > { %v2289_v6 = vpop.permute.xlu1 %2288 }
 0x2a6   : > { %v2415_v44 = vsel %vm768_vm3, %v4409_v28, %v2289_v6 }
 0x2a7   : > { %v2451_v31 = vsel %vm805_vm4, %v2415_v44, %v2379_v54  ;;  %v2939_v44 = vrot.slane %v2840_v47, 1 }
 0x2a8   : > { %3494 = vmatmul.msk.bf16.gmra.mxu3 %vm852_vm5, %v2451_v31  ;;  %3535 = vmatmul.msk.bf16.gmra.mxu1 %vm852_vm5, %v2451_v31 }
 0x2ad   : > { %v2293_v18 = vpop.permute.xlu2 %2292 }
 0x2ae   : > { %v2419_v23 = vsel %vm768_vm3, %v4492_v22, %v2293_v18 }
 0x2af   : > { %3514 = vmatmul.msk.bf16.gmra.mxu0 %vm852_vm5, %v2449_v41 }
 0x2b2   : > { %v2381_v45 = vpop.permute.xlu1 %2380 }
 0x2b5   : > { %v2291_v39 = vpop.permute.xlu0 %2290 }
 0x2b6   : > { %v2417_v28 = vsel %vm768_vm3, %v4449_v30, %v2291_v39  ;;  %v3609_v30 = vld [vmem:[%s3681_s23 + $0x14] sm:$0x1]  ;;  %v1075_v39 = vadd.f32 %v4664_v60, %v4095_v13 }
 0x2b7   : > { %v2453_v26 = vsel %vm805_vm4, %v2417_v28, %v2381_v45  ;;  %v2839_v43 = vunpack.c.l.bf16 %v3609_v30 }
 0x2b8   : > { %3495 = vmatmul.msk.bf16.gmra.mxu3 %vm852_vm5, %v2453_v26  ;;  %3536 = vmatmul.msk.bf16.gmra.mxu1 %vm852_vm5, %v2453_v26 }
 0x2b9   : > { %v2937_v42 = vrot.slane %v2839_v43, 1 }
 0x2ba   : > { %v2385_v30 = vpop.permute.xlu2 %2384 }
 0x2bb   : > { %v2524_v12 = vpop.f32.mrf.mxu3  ;;  %v2938_v22 = vsel %vm677_vm1, %v2935_v63, %v2937_v42 }
 0x2bc   : > { %v2623_v14 = vpop.f32.mrf.mxu0  ;;  %v3047_v38 = vsel %vm768_vm3, %v2938_v22, 0.0 }
 0x2bd   : > { %v2624_v61 = vadd.f32 %v2623_v14, %v2524_v12 }
 0x2bf   : > { %3515 = vmatmul.msk.bf16.gmra.mxu0 %vm852_vm5, %v2451_v31  ;;  %v2940_v31 = vrot.slane %v2841_v20, 1 }
 0x2c1   : > { %v2725_v9 = vpop.f32.mrf.mxu1  ;;  %v2941_v12 = vsel %vm677_vm1, %v2939_v44, %v2940_v31 }
 0x2c2   : > { %v2805_v17 = vadd.f32 %v2725_v9, %v2624_v61  ;;  %v2383_v50 = vpop.permute.xlu0 %2382  ;;  %v3048_v9 = vsel %vm768_vm3, %v2941_v12, 0.0 }
 0x2c3   : > { %v2526_v37 = vpop.f32.mrf.mxu3  ;;  %v4688_v24 = vsel %vm805_vm4, %v2419_v23, %v2383_v50  ;;  %v1911_v50 = vld [vmem:[#allocation2 + $0xd4] sm:$0x1] }
 0x2c4   : > { %v2625_v7 = vpop.f32.mrf.mxu0  ;;  %v3082_v16 = vadd.f32 %v4680_v15, %v2805_v17 }
 0x2c5   : > { %v2626_v21 = vadd.f32 %v2625_v7, %v2526_v37  ;;  %v2037_v7 = vunpack.c.l.b16 %v1911_v50 }
 0x2c6   : > { %v3114_v40 = vadd.f32 %v3082_v16, %v3046_v8 }
 0x2c7   : > { %v4730_v58 = vpack.c.b16 %v2037_v7, %v2037_v7 }
 0x2c8   : > { %3496 = vmatmul.msk.bf16.gmra.mxu3 %vm852_vm5, %v4688_v24  ;;  %3537 = vmatmul.msk.bf16.gmra.mxu1 %vm852_vm5, %v4688_v24  ;;  %v3146_v41 = vmax.f32 %v3114_v40, 0.0 }
 0x2c9   : > { %v2727_v56 = vpop.f32.mrf.mxu1 }
 0x2ca   : > { %3178 = vst [vmem:[%s4693_s14] sm:$0xff] %v3146_v41  ;;  %v2806_v48 = vadd.f32 %v2727_v56, %v2626_v21 }
 0x2cb   : > { %v1174_v32 = vpop.f32.mrf.mxu2  ;;  %v2529_v5 = vpop.f32.mrf.mxu3 }
 0x2cc   : > { %v1209_v2 = vadd.f32 %v1174_v32, %v1073_v33  ;;  %v2628_v59 = vpop.f32.mrf.mxu0  ;;  %v3083_v49 = vadd.f32 %v4680_v15, %v2806_v48 }
 0x2cd   : > { %v2629_v57 = vadd.f32 %v2628_v59, %v2529_v5  ;;  %v2268_v59 = vshll.u32 %v4730_v58, 16 }
 0x2ce   : > { %v1245_v6 = vadd.f32 %v4419_v53, %v1209_v2  ;;  %v3115_v54 = vadd.f32 %v3083_v49, %v3047_v38 }
 0x2cf   : > { %3516 = vmatmul.msk.bf16.gmra.mxu0 %vm852_vm5, %v2453_v26  ;;  %v2942_v26 = vrot.slane %v2842_v62, 1  ;;  %v2270_v55 = vrot.slane %v2268_v59, 1 }
 0x2d0   : > { %v1277_v11 = vmax.f32 %v1245_v6, 0.0  ;;  %v3147_v34 = vmax.f32 %v3115_v54, 0.0  ;;  %v1855_v54 = vld [vmem:[#allocation2 + $0xc8] sm:$0x1] }
 0x2d1   : > { %v2943_v40 = vsel %vm677_vm1, %v2940_v31, %v2942_v26 }
 0x2d2   : > { %v1309_v45 = vpack.c.bf16 %v1277_v11, %v1277_v11  ;;  %3179 = vst [vmem:[%s4693_s14 + $0x8] sm:$0xff] %v3147_v34  ;;  %v3049_v6 = vsel %vm768_vm3, %v2943_v40, 0.0 }
 0x2d3   : > { %v1176_v28 = vpop.f32.mrf.mxu2  ;;  %v2531_v3 = vpop.f32.mrf.mxu3 }
 0x2d4   : > { %v1680_v52 = vshrl.u32 %v1309_v45, 16  ;;  %v1210_v0 = vadd.f32 %v1176_v28, %v1075_v39  ;;  %v2630_v4 = vpop.f32.mrf.mxu0  ;;  %v1683_v14 = vshll.u32 %v1309_v45, 16 }
 0x2d5   : > { %v2295_v51 = vpop.permute.xlu1 %2294  ;;  %v2730_v63 = vpop.f32.mrf.mxu1  ;;  %v2631_v48 = vadd.f32 %v2630_v4, %v2531_v3 }
 0x2d6   : > { %v1682_v43 = vrot.slane %v1680_v52, 7  ;;  %v1246_v61 = vadd.f32 %v4419_v53, %v1210_v0  ;;  %v2421_v13 = vsel %vm768_vm3, %v4527_v25, %v2295_v51  ;;  %v2807_v60 = vadd.f32 %v2730_v63, %v2629_v57  ;;  %v235_v53 = vld [vmem:[%s3681_s23 + $0x24] sm:$0xff]   ;;  %v4725_v25 = vld [vmem:[#allocation2 + $0xcc] sm:$0xff] }
 0x2d7   : > { %v4717_v18 = vsel %vm805_vm4, %v2421_v13, %v2385_v30  ;;  %v2843_v21 = vunpack.c.l.bf16 %v235_v53  ;;  %v2844_v22 = vunpack.c.h.bf16 %v235_v53  ;;  %v2263_v33 = vshll.u32 %v4725_v25, 16 }
 0x2d8   : > { %v1685_v17 = vor.u32 %v1683_v14, %v1682_v43  ;;  %v1278_v37 = vmax.f32 %v1246_v61, 0.0  ;;  %v3084_v8 = vadd.f32 %v4680_v15, %v2807_v60  ;;  %3497 = vmatmul.msk.bf16.gmra.mxu3 %vm852_vm5, %v4717_v18  ;;  %3538 = vmatmul.msk.bf16.gmra.mxu1 %vm852_vm5, %v4717_v18  ;;  %v2261_v29 = vshrl.u32 %v4725_v25, 16 }
 0x2d9   : > { %v2265_v2 = vrot.slane %v2263_v33, 1  ;;  %v2944_v11 = vrot.slane %v2843_v21, 1  ;;  %v2945_v44 = vrot.slane %v2844_v22, 1  ;;  %v1686_v62 = vrot.slane %v1682_v43, 4 }
 0x2da   : > { %v1852_v42 = vsel %vm4129_vm12, %v1685_v17, %v1851_v46  ;;  %v1310_v16 = vpack.c.bf16 %v1278_v37, %v1278_v37  ;;  %v3116_v23 = vadd.f32 %v3084_v8, %v3048_v9  ;;  %v238_v9 = vld [vmem:[%s3681_s23 + $0x30] sm:$0xff]  }
 0x2db   : > { %1853 = vst [vmem:[#allocation2 + $0xc0] sm:$0xf] %v1852_v42  ;;  %v2534_v41 = vpop.f32.mrf.mxu3  ;;  %v2266_v31 = vor.u32 %v2265_v2, %v2261_v29  ;;  %v2946_v36 = vsel %vm677_vm1, %v2944_v11, %v2945_v44  ;;  %v2846_v50 = vunpack.c.l.bf16 %v238_v9  ;;  %v2847_v7 = vunpack.c.h.bf16 %v238_v9  ;;  %v3612_v11 = vld [vmem:[%s3681_s23 + $0x38] sm:$0x1] }
 0x2dc   : > { %v1688_v56 = vshrl.u32 %v1310_v16, 16  ;;  %v3148_v32 = vmax.f32 %v3116_v23, 0.0  ;;  %v2633_v5 = vpop.f32.mrf.mxu0  ;;  %v1691_v20 = vshll.u32 %v1310_v16, 16  ;;  %v3050_v13 = vsel %vm768_vm3, %v2946_v36, 0.0  ;;  %v241_v36 = vld [vmem:[%s3681_s23 + $0x3c] sm:$0xff]  }
 0x2dd   : > { %v2732_v38 = vpop.f32.mrf.mxu1  ;;  %v2271_v28 = vsel %vm424_vm0, %v2266_v31, %v2270_v55  ;;  %v2634_v12 = vadd.f32 %v2633_v5, %v2534_v41  ;;  %v2949_v5 = vrot.slane %v2846_v50, 1 }
 0x2de   : > { %v1690_v47 = vrot.slane %v1688_v56, 7  ;;  %3180 = vst [vmem:[%s4693_s14 + $0x10] sm:$0xff] %v3148_v32  ;;  %v2808_v49 = vadd.f32 %v2732_v38, %v2631_v48  ;;  %2306 = vrot.lane.b32.xlu1 %v2271_v28, %s3634_s24  ;;  %v2950_v38 = vrot.slane %v2847_v7, 1  ;;  %v3613_v7 = vld [vmem:[%s3681_s23 + $0x44] sm:$0x1] }
 0x2df   : > { %3517 = vmatmul.msk.bf16.gmra.mxu0 %vm852_vm5, %v4688_v24  ;;  %v3611_v24 = vld [vmem:[%s3681_s23 + $0x2c] sm:$0x1] }
 0x2e0   : > { %v1693_v34 = vor.u32 %v1691_v20, %v1690_v47  ;;  %v1695_v39 = vrot.slane %v1690_v47, 4  ;;  %v3085_v45 = vadd.f32 %v4680_v15, %v2808_v49  ;;  %v2845_v0 = vunpack.c.l.bf16 %v3611_v24 }
 0x2e1   : > { %v2951_v28 = vsel %vm677_vm1, %v2949_v5, %v2950_v38 }
 0x2e2   : > { %v1694_v3 = vsel %vm4149_vm14, %v1686_v62, %v1693_v34  ;;  %v1856_v52 = vsel %vm4073_vm8, %v1695_v39, %v1855_v54  ;;  %v3117_v57 = vadd.f32 %v3085_v45, %v3049_v6  ;;  %v2387_v1 = vpop.permute.xlu1 %2386  ;;  %v2947_v61 = vrot.slane %v2845_v0, 1 }
 0x2e3   : > { %1854 = vst.msk [vmem:[#allocation2 + $0xc4] sm:$0xf] %vm1311_vm11, %v1694_v3  ;;  %v2536_v4 = vpop.f32.mrf.mxu3 }
 0x2e4   : > { %1857 = vst [vmem:[#allocation2 + $0xc8] sm:$0x1] %v1856_v52  ;;  %v3149_v26 = vmax.f32 %v3117_v57, 0.0  ;;  %v2635_v14 = vpop.f32.mrf.mxu0  ;;  %v2948_v8 = vsel %vm677_vm1, %v2945_v44, %v2947_v61  ;;  %v2848_v44 = vunpack.c.l.bf16 %v3612_v11 }
 0x2e5   : > { %v2735_v51 = vpop.f32.mrf.mxu1  ;;  %v2297_v63 = vpop.permute.xlu0 %2296  ;;  %v2636_v42 = vadd.f32 %v2635_v14, %v2536_v4  ;;  %v3051_v33 = vsel %vm768_vm3, %v2948_v8, 0.0  ;;  %v3052_v4 = vsel %vm768_vm3, %v2951_v28, 0.0  ;;  %v2360_v14 = vrot.slane %v4730_v58, 1 }
 0x2e6   : > { %3181 = vst [vmem:[%s4693_s14 + $0x18] sm:$0xff] %v3149_v26  ;;  %v2809_v30 = vadd.f32 %v2735_v51, %v2634_v12  ;;  %v2423_v43 = vsel %vm768_vm3, %v4562_v27, %v2297_v63  ;;  %v2952_v24 = vrot.slane %v2848_v44, 1  ;;  %v2359_v26 = vrot.slane %v4725_v25, 1 }
 0x2e7   : > { %v4754_v60 = vsel %vm805_vm4, %v2423_v43, %v2387_v1 }
 0x2e8   : > { %v3086_v46 = vadd.f32 %v4680_v15, %v2809_v30  ;;  %3498 = vmatmul.msk.bf16.gmra.mxu3 %vm852_vm5, %v4754_v60  ;;  %3539 = vmatmul.msk.bf16.gmra.mxu1 %vm852_vm5, %v4754_v60  ;;  %v2361_v51 = vsel %vm677_vm1, %v2359_v26, %v2360_v14  ;;  %v2953_v1 = vsel %vm677_vm1, %v2950_v38, %v2952_v24 }
 0x2e9   : > { %v3053_v58 = vsel %vm768_vm3, %v2953_v1, 0.0 }
 0x2ea   : > { %v3118_v17 = vadd.f32 %v3086_v46, %v3050_v13  ;;  %v4762_v37 = vld [vmem:[#allocation2 + $0xc0] sm:$0xff]  ;;  %v2849_v13 = vunpack.c.l.bf16 %v241_v36  ;;  %v2850_v46 = vunpack.c.h.bf16 %v241_v36 }
 0x2eb   : > { %v2539_v27 = vpop.f32.mrf.mxu3  ;;  %v1908_v53 = vld [vmem:[#allocation2 + $0xc8] sm:$0x1]  ;;  %v2251_v21 = vshll.u32 %v4762_v37, 16  ;;  %v2249_v48 = vshrl.u32 %v4762_v37, 16  ;;  %v2356_v2 = vrot.slane %v4762_v37, 1 }
 0x2ec   : > { %v3150_v16 = vmax.f32 %v3118_v17, 0.0  ;;  %v2638_v23 = vpop.f32.mrf.mxu0  ;;  %v2036_v40 = vunpack.c.l.b16 %v1908_v53  ;;  %v2954_v8 = vrot.slane %v2849_v13, 1  ;;  %v2955_v53 = vrot.slane %v2850_v46, 1 }
 0x2ed   : > { %v2737_v41 = vpop.f32.mrf.mxu1  ;;  %v2253_v32 = vrot.slane %v2251_v21, 1  ;;  %v2639_v55 = vadd.f32 %v2638_v23, %v2539_v27 }
 0x2ee   : > { %3182 = vst [vmem:[%s4693_s14 + $0x20] sm:$0xff] %v3150_v16  ;;  %v2810_v22 = vadd.f32 %v2737_v41, %v2636_v42  ;;  %v2054_v56 = vpack.c.b16 %v2036_v40, %v2036_v40  ;;  %v2851_v42 = vunpack.c.l.bf16 %v3613_v7 }
 0x2ef   : > { %3518 = vmatmul.msk.bf16.gmra.mxu0 %vm852_vm5, %v4717_v18  ;;  %v2254_v20 = vor.u32 %v2253_v32, %v2249_v48  ;;  %v2299_v18 = vpop.permute.xlu2 %2298 }
 0x2f0   : > { %v3087_v29 = vadd.f32 %v4680_v15, %v2810_v22  ;;  %v2357_v59 = vrot.slane %v2054_v56, 1  ;;  %v2256_v47 = vshll.u32 %v2054_v56, 16  ;;  %v2425_v52 = vsel %vm768_vm3, %v4595_v10, %v2299_v18 }
 0x2f1   : > { %v2956_v22 = vsel %vm677_vm1, %v2954_v8, %v2955_v53  ;;  %v2957_v38 = vrot.slane %v2851_v42, 1 }
 0x2f2   : > { %v3119_v49 = vadd.f32 %v3087_v29, %v3051_v33  ;;  %v2358_v6 = vsel %vm677_vm1, %v2356_v2, %v2357_v59  ;;  %v2258_v54 = vrot.slane %v2256_v47, 1  ;;  %v2389_v34 = vpop.permute.xlu0 %2388  ;;  %v3054_v5 = vsel %vm768_vm3, %v2956_v22, 0.0  ;;  %v244_v2 = vld [vmem:[%s3681_s23 + $0x48] sm:$0xff]  }
 0x2f3   : > { %2394 = vrot.lane.b32.xlu0 %v2358_v6, %s3635_s25  ;;  %v2541_v31 = vpop.f32.mrf.mxu3  ;;  %v2461_v0 = vsel %vm805_vm4, %v2425_v52, %v2389_v34  ;;  %v2853_v11 = vunpack.c.h.bf16 %v244_v2 }
 0x2f4   : > { %v3151_v62 = vmax.f32 %v3119_v49, 0.0  ;;  %v2259_v39 = vsel %vm424_vm0, %v2254_v20, %v2258_v54  ;;  %v2640_v45 = vpop.f32.mrf.mxu0  ;;  %v2852_v54 = vunpack.c.l.bf16 %v244_v2 }
 0x2f5   : > { %2304 = vrot.lane.b32.xlu2 %v2259_v39, %s3634_s24  ;;  %v2740_v3 = vpop.f32.mrf.mxu1  ;;  %v2641_v30 = vadd.f32 %v2640_v45, %v2541_v31  ;;  %v2960_v34 = vrot.slane %v2853_v11, 1  ;;  %v3614_v45 = vld [vmem:[%s3681_s23 + $0x50] sm:$0x1] }
 0x2f6   : > { %3183 = vst [vmem:[%s4693_s14 + $0x28] sm:$0xff] %v3151_v62  ;;  %v2811_v57 = vadd.f32 %v2740_v3, %v2639_v55  ;;  %v2959_v62 = vrot.slane %v2852_v54, 1  ;;  %v2854_v28 = vunpack.c.l.bf16 %v3614_v45 }
 0x2f7   : > { %v2391_v33 = vpop.permute.xlu2 %2390 }
 0x2f8   : > { %v3088_v12 = vadd.f32 %v4680_v15, %v2811_v57  ;;  %3499 = vmatmul.msk.bf16.gmra.mxu3 %vm852_vm5, %v2461_v0  ;;  %3540 = vmatmul.msk.bf16.gmra.mxu1 %vm852_vm5, %v2461_v0 }
 0x2fa   : > { %v3120_v10 = vadd.f32 %v3088_v12, %v3052_v4  ;;  %v2961_v4 = vsel %vm677_vm1, %v2959_v62, %v2960_v34 }
 0x2fb   : > { %v2544_v63 = vpop.f32.mrf.mxu3 }
 0x2fc   : > { %v3152_v43 = vmax.f32 %v3120_v10, 0.0  ;;  %v2643_v61 = vpop.f32.mrf.mxu0 }
 0x2fd   : > { %v2742_v9 = vpop.f32.mrf.mxu1  ;;  %2396 = vrot.lane.b32.xlu2 %v2361_v51, %s3635_s25  ;;  %v2644_v23 = vadd.f32 %v2643_v61, %v2544_v63  ;;  %v3056_v51 = vsel %vm768_vm3, %v2961_v4, 0.0  ;;  %v2962_v63 = vrot.slane %v2854_v28, 1 }
 0x2fe   : > { %3184 = vst [vmem:[%s4693_s14 + $0x30] sm:$0xff] %v3152_v43  ;;  %v2812_v17 = vadd.f32 %v2742_v9, %v2641_v30  ;;  %v247_v30 = vld [vmem:[%s3681_s23 + $0x54] sm:$0xff]  }
 0x2ff   : > { %3519 = vmatmul.msk.bf16.gmra.mxu0 %vm852_vm5, %v4754_v60 }
 0x300   : > { %v3089_v27 = vadd.f32 %v4680_v15, %v2812_v17  ;;  %v2855_v17 = vunpack.c.l.bf16 %v247_v30 }
 0x302   : > { %v3121_v50 = vadd.f32 %v3089_v27, %v3053_v58  ;;  %v2856_v58 = vunpack.c.h.bf16 %v247_v30  ;;  %v2964_v7 = vrot.slane %v2855_v17, 1 }
 0x303   : > { %v2546_v16 = vpop.f32.mrf.mxu3 }
 0x304   : > { %v3153_v40 = vmax.f32 %v3121_v50, 0.0  ;;  %v2645_v41 = vpop.f32.mrf.mxu0  ;;  %v2301_v21 = vpop.permute.xlu1 %2300  ;;  %v2965_v42 = vrot.slane %v2856_v58, 1 }
 0x305   : > { %v2427_v60 = vsel %vm768_vm3, %v4623_v19, %v2301_v21  ;;  %v2745_v56 = vpop.f32.mrf.mxu1  ;;  %v2958_v19 = vsel %vm677_vm1, %v2955_v53, %v2957_v38  ;;  %v2646_v20 = vadd.f32 %v2645_v41, %v2546_v16 }
 0x306   : > { %3185 = vst [vmem:[%s4693_s14 + $0x38] sm:$0xff] %v3153_v40  ;;  %v2813_v48 = vadd.f32 %v2745_v56, %v2644_v23  ;;  %v2463_v32 = vsel %vm805_vm4, %v2427_v60, %v2391_v33  ;;  %v3055_v31 = vsel %vm768_vm3, %v2958_v19, 0.0  ;;  %v3615_v23 = vld [vmem:[%s3681_s23 + $0x5c] sm:$0x1]  ;;  %v2966_v60 = vsel %vm677_vm1, %v2964_v7, %v2965_v42 }
 0x307   : > { %v2857_v40 = vunpack.c.l.bf16 %v3615_v23 }
 0x308   : > { %v3090_v29 = vadd.f32 %v4680_v15, %v2813_v48  ;;  %3500 = vmatmul.msk.bf16.gmra.mxu3 %vm852_vm5, %v2463_v32  ;;  %3541 = vmatmul.msk.bf16.gmra.mxu1 %vm852_vm5, %v2463_v32 }
 0x30a   : > { %v3122_v59 = vadd.f32 %v3090_v29, %v3054_v5  ;;  %v2967_v5 = vrot.slane %v2857_v40, 1  ;;  %v250_v29 = vld [vmem:[%s3681_s23 + $0x60] sm:$0xff]  }
 0x30b   : > { %v2549_v47 = vpop.f32.mrf.mxu3  ;;  %v2859_v54 = vunpack.c.h.bf16 %v250_v29 }
 0x30c   : > { %v3154_v49 = vmax.f32 %v3122_v59, 0.0  ;;  %v2648_v6 = vpop.f32.mrf.mxu0 }
 0x30d   : > { %v2747_v44 = vpop.f32.mrf.mxu1  ;;  %v2649_v52 = vadd.f32 %v2648_v6, %v2549_v47  ;;  %v2968_v47 = vsel %vm677_vm1, %v2965_v42, %v2967_v5  ;;  %v2858_v6 = vunpack.c.l.bf16 %v250_v29  ;;  %v2970_v62 = vrot.slane %v2859_v54, 1 }
 0x30e   : > { %3186 = vst [vmem:[%s4693_s14 + $0x40] sm:$0xff] %v3154_v49  ;;  %v2814_v18 = vadd.f32 %v2747_v44, %v2646_v20 }
 0x30f   : > { %3520 = vmatmul.msk.bf16.gmra.mxu0 %vm852_vm5, %v2461_v0 }
 0x310   : > { %v3091_v55 = vadd.f32 %v4680_v15, %v2814_v18  ;;  %v3059_v18 = vsel %vm768_vm3, %v2968_v47, 0.0 }
 0x312   : > { %v3123_v39 = vadd.f32 %v3091_v55, %v3055_v31  ;;  %v2393_v26 = vpop.permute.xlu1 %2392  ;;  %v2969_v55 = vrot.slane %v2858_v6, 1 }
 0x313   : > { %v2551_v3 = vpop.f32.mrf.mxu3 }
 0x314   : > { %v3155_v57 = vmax.f32 %v3123_v39, 0.0  ;;  %v2650_v24 = vpop.f32.mrf.mxu0  ;;  %v2303_v12 = vpop.permute.xlu0 %2302  ;;  %v3616_v39 = vld [vmem:[%s3681_s23 + $0x68] sm:$0x1] }
 0x315   : > { %v2750_v14 = vpop.f32.mrf.mxu1  ;;  %v2429_v0 = vsel %vm768_vm3, %v4644_v35, %v2303_v12  ;;  %v2963_v35 = vsel %vm677_vm1, %v2960_v34, %v2962_v63  ;;  %v2651_v13 = vadd.f32 %v2650_v24, %v2551_v3  ;;  %v2860_v45 = vunpack.c.l.bf16 %v3616_v39 }
 0x316   : > { %3187 = vst [vmem:[%s4693_s14 + $0x48] sm:$0xff] %v3155_v57  ;;  %v2815_v36 = vadd.f32 %v2750_v14, %v2649_v52  ;;  %v2465_v10 = vsel %vm805_vm4, %v2429_v0, %v2393_v26  ;;  %v3057_v53 = vsel %vm768_vm3, %v2963_v35, 0.0  ;;  %v2971_v24 = vsel %vm677_vm1, %v2969_v55, %v2970_v62 }
 0x317   : > { %v3060_v26 = vsel %vm768_vm3, %v2971_v24, 0.0  ;;  %v2972_v14 = vrot.slane %v2860_v45, 1 }
 0x318   : > { %v3092_v1 = vadd.f32 %v4680_v15, %v2815_v36  ;;  %3501 = vmatmul.msk.bf16.gmra.mxu3 %vm852_vm5, %v2465_v10  ;;  %3542 = vmatmul.msk.bf16.gmra.mxu1 %vm852_vm5, %v2465_v10  ;;  %v253_v36 = vld [vmem:[%s3681_s23 + $0x6c] sm:$0xff]  }
 0x319   : > { %v2973_v63 = vsel %vm677_vm1, %v2970_v62, %v2972_v14  ;;  %v2862_v35 = vunpack.c.h.bf16 %v253_v36 }
 0x31a   : > { %v3124_v43 = vadd.f32 %v3092_v1, %v3056_v51 }
 0x31b   : > { %v2554_v61 = vpop.f32.mrf.mxu3 }
 0x31c   : > { %v3156_v46 = vmax.f32 %v3124_v43, 0.0  ;;  %v2653_v9 = vpop.f32.mrf.mxu0 }
 0x31d   : > { %v2752_v27 = vpop.f32.mrf.mxu1  ;;  %v2654_v21 = vadd.f32 %v2653_v9, %v2554_v61  ;;  %v2861_v61 = vunpack.c.l.bf16 %v253_v36  ;;  %v3061_v9 = vsel %vm768_vm3, %v2973_v63, 0.0 }
 0x31e   : > { %3188 = vst [vmem:[%s4693_s14 + $0x50] sm:$0xff] %v3156_v46  ;;  %v2816_v8 = vadd.f32 %v2752_v27, %v2651_v13  ;;  %v2975_v27 = vrot.slane %v2862_v35, 1 }
 0x31f   : > { %3521 = vmatmul.msk.bf16.gmra.mxu0 %vm852_vm5, %v2463_v32  ;;  %v3058_v32 = vsel %vm768_vm3, %v2966_v60, 0.0  ;;  %v2974_v58 = vrot.slane %v2861_v61, 1 }
 0x320   : > { %v3093_v50 = vadd.f32 %v4680_v15, %v2816_v8 }
 0x321   : > { %v2976_v40 = vsel %vm677_vm1, %v2974_v58, %v2975_v27 }
 0x322   : > { %v3125_v16 = vadd.f32 %v3093_v50, %v3057_v53  ;;  %v3617_v53 = vld [vmem:[%s3681_s23 + $0x74] sm:$0x1] }
 0x323   : > { %v2556_v41 = vpop.f32.mrf.mxu3  ;;  %v2863_v50 = vunpack.c.l.bf16 %v3617_v53 }
 0x324   : > { %v3157_v22 = vmax.f32 %v3125_v16, 0.0  ;;  %v2655_v33 = vpop.f32.mrf.mxu0 }
 0x325   : > { %v2755_v56 = vpop.f32.mrf.mxu1  ;;  %v2656_v19 = vadd.f32 %v2655_v33, %v2556_v41  ;;  %v3062_v33 = vsel %vm768_vm3, %v2976_v40, 0.0 }
 0x326   : > { %3189 = vst [vmem:[%s4693_s14 + $0x58] sm:$0xff] %v3157_v22  ;;  %v2817_v48 = vadd.f32 %v2755_v56, %v2654_v21  ;;  %v2977_v22 = vrot.slane %v2863_v50, 1  ;;  %v256_v56 = vld [vmem:[%s3681_s23 + $0x78] sm:$0xff]  }
 0x327   : > { %v2865_v47 = vunpack.c.h.bf16 %v256_v56 }
 0x328   : > { %v3094_v38 = vadd.f32 %v4680_v15, %v2817_v48  ;;  %v2978_v5 = vsel %vm677_vm1, %v2975_v27, %v2977_v22 }
 0x32a   : > { %v3126_v2 = vadd.f32 %v3094_v38, %v3058_v32 }
 0x32b   : > { %v2559_v59 = vpop.f32.mrf.mxu3 }
 0x32c   : > { %v3158_v20 = vmax.f32 %v3126_v2, 0.0  ;;  %v2658_v49 = vpop.f32.mrf.mxu0 }
 0x32d   : > { %v2757_v11 = vpop.f32.mrf.mxu1  ;;  %v2659_v3 = vadd.f32 %v2658_v49, %v2559_v59  ;;  %v2864_v59 = vunpack.c.l.bf16 %v256_v56  ;;  %v3063_v49 = vsel %vm768_vm3, %v2978_v5, 0.0 }
 0x32e   : > { %3190 = vst [vmem:[%s4693_s14 + $0x60] sm:$0xff] %v3158_v20  ;;  %v2818_v44 = vadd.f32 %v2757_v11, %v2656_v19  ;;  %v2980_v11 = vrot.slane %v2865_v47, 1 }
 0x32f   : > { %3522 = vmatmul.msk.bf16.gmra.mxu0 %vm852_vm5, %v2465_v10  ;;  %v2979_v54 = vrot.slane %v2864_v59, 1 }
 0x330   : > { %v3095_v31 = vadd.f32 %v4680_v15, %v2818_v44 }
 0x331   : > { %v2981_v45 = vsel %vm677_vm1, %v2979_v54, %v2980_v11 }
 0x332   : > { %v3127_v34 = vadd.f32 %v3095_v31, %v3059_v18  ;;  %v3618_v18 = vld [vmem:[%s3681_s23 + $0x80] sm:$0x1] }
 0x333   : > { %v2561_v28 = vpop.f32.mrf.mxu3  ;;  %v2866_v31 = vunpack.c.l.bf16 %v3618_v18 }
 0x334   : > { %v3159_v52 = vmax.f32 %v3127_v34, 0.0  ;;  %v2660_v57 = vpop.f32.mrf.mxu0 }
 0x335   : > { %v2760_v4 = vpop.f32.mrf.mxu1  ;;  %v2661_v1 = vadd.f32 %v2660_v57, %v2561_v28  ;;  %v3064_v57 = vsel %vm768_vm3, %v2981_v45, 0.0 }
 0x336   : > { %3191 = vst [vmem:[%s4693_s14 + $0x68] sm:$0xff] %v3159_v52  ;;  %v2819_v12 = vadd.f32 %v2760_v4, %v2659_v3  ;;  %v2982_v52 = vrot.slane %v2866_v31, 1  ;;  %v259_v4 = vld [vmem:[%s3681_s23 + $0x84] sm:$0xff]   ;;  %v3620_v31 = vld [vmem:[%s3681_s23 + $0x98] sm:$0x1] }
 0x337   : > { %v2868_v63 = vunpack.c.h.bf16 %v259_v4 }
 0x338   : > { %v3096_v0 = vadd.f32 %v4680_v15, %v2819_v12  ;;  %v2983_v14 = vsel %vm677_vm1, %v2980_v11, %v2982_v52 }
 0x33a   : > { %v3128_v10 = vadd.f32 %v3096_v0, %v3060_v26 }
 0x33b   : > { %v2564_v51 = vpop.f32.mrf.mxu3 }
 0x33c   : > { %v3160_v30 = vmax.f32 %v3128_v10, 0.0  ;;  %v2663_v43 = vpop.f32.mrf.mxu0 }
 0x33d   : > { %v2762_v13 = vpop.f32.mrf.mxu1  ;;  %v2664_v42 = vadd.f32 %v2663_v43, %v2564_v51  ;;  %v2867_v51 = vunpack.c.l.bf16 %v259_v4  ;;  %v3065_v43 = vsel %vm768_vm3, %v2983_v14, 0.0 }
 0x33e   : > { %3192 = vst [vmem:[%s4693_s14 + $0x70] sm:$0xff] %v3160_v30  ;;  %v2820_v46 = vadd.f32 %v2762_v13, %v2661_v1  ;;  %v2985_v13 = vrot.slane %v2868_v63, 1 }
 0x33f   : > { %v2984_v35 = vrot.slane %v2867_v51, 1 }
 0x340   : > { %v3097_v17 = vadd.f32 %v4680_v15, %v2820_v46 }
 0x342   : > { %v3129_v8 = vadd.f32 %v3097_v17, %v3061_v9  ;;  %v3619_v17 = vld [vmem:[%s3681_s23 + $0x8c] sm:$0x1] }
 0x343   : > { %v2566_v7 = vpop.f32.mrf.mxu3  ;;  %v2869_v58 = vunpack.c.l.bf16 %v3619_v17  ;;  %v3621_v17 = vld [vmem:[%s3681_s23 + $0xa4] sm:$0x1] }
 0x344   : > { %v3161_v16 = vmax.f32 %v3129_v8, 0.0  ;;  %v2665_v23 = vpop.f32.mrf.mxu0 }
 0x345   : > { %v2765_v41 = vpop.f32.mrf.mxu1  ;;  %v2666_v38 = vadd.f32 %v2665_v23, %v2566_v7  ;;  %v2986_v7 = vsel %vm677_vm1, %v2984_v35, %v2985_v13 }
 0x346   : > { %3193 = vst [vmem:[%s4693_s14 + $0x78] sm:$0xff] %v3161_v16  ;;  %v2821_v21 = vadd.f32 %v2765_v41, %v2664_v42  ;;  %v3066_v22 = vsel %vm768_vm3, %v2986_v7, 0.0 }
 0x348   : > { %v3098_v60 = vadd.f32 %v4680_v15, %v2821_v21  ;;  %v2987_v21 = vrot.slane %v2869_v58, 1  ;;  %v2875_v58 = vunpack.c.l.bf16 %v3621_v17 }
 0x34a   : > { %v3130_v48 = vadd.f32 %v3098_v60, %v3062_v33  ;;  %v262_v60 = vld [vmem:[%s3681_s23 + $0x90] sm:$0xff]  }
 0x34b   : > { %v2569_v32 = vpop.f32.mrf.mxu3 }
 0x34c   : > { %v3162_v29 = vmax.f32 %v3130_v48, 0.0  ;;  %v2668_v2 = vpop.f32.mrf.mxu0 }
 0x34d   : > { %v2767_v19 = vpop.f32.mrf.mxu1  ;;  %v2669_v62 = vadd.f32 %v2668_v2, %v2569_v32  ;;  %v2871_v2 = vunpack.c.h.bf16 %v262_v60 }
 0x34e   : > { %3194 = vst [vmem:[%s4693_s14 + $0x80] sm:$0xff] %v3162_v29  ;;  %v2822_v20 = vadd.f32 %v2767_v19, %v2666_v38  ;;  %v2870_v29 = vunpack.c.l.bf16 %v262_v60 }
 0x34f   : > { %v2305_v46 = vpop.permute.xlu2 %2304  ;;  %v2990_v54 = vrot.slane %v2871_v2, 1 }
 0x350   : > { %v3099_v6 = vadd.f32 %v4680_v15, %v2822_v20  ;;  %v2431_v42 = vsel %vm768_vm3, %v4762_v37, %v2305_v46  ;;  %v2988_v37 = vsel %vm677_vm1, %v2985_v13, %v2987_v21  ;;  %v2307_v19 = vpop.permute.xlu1 %2306  ;;  %v268_v21 = vld [vmem:[%s3681_s23 + $0xa8] sm:$0xff]  }
 0x351   : > { %v3067_v20 = vsel %vm768_vm3, %v2988_v37, 0.0  ;;  %v2433_v11 = vsel %vm768_vm3, %v4725_v25, %v2307_v19  ;;  %v2877_v37 = vunpack.c.h.bf16 %v268_v21 }
 0x352   : > { %v3131_v44 = vadd.f32 %v3099_v6, %v3063_v49  ;;  %v2989_v6 = vrot.slane %v2870_v29, 1 }
 0x353   : > { %v2571_v55 = vpop.f32.mrf.mxu3  ;;  %v3000_v19 = vrot.slane %v2877_v37, 1 }
 0x354   : > { %v3163_v34 = vmax.f32 %v3131_v44, 0.0  ;;  %v2670_v39 = vpop.f32.mrf.mxu0 }
 0x355   : > { %v2770_v28 = vpop.f32.mrf.mxu1  ;;  %v2671_v0 = vadd.f32 %v2670_v39, %v2571_v55  ;;  %v2872_v55 = vunpack.c.l.bf16 %v3620_v31 }
 0x356   : > { %3195 = vst [vmem:[%s4693_s14 + $0x88] sm:$0xff] %v3163_v34  ;;  %v2823_v3 = vadd.f32 %v2770_v28, %v2669_v62 }
 0x357   : > { %v2397_v44 = vpop.permute.xlu2 %2396  ;;  %v2992_v25 = vrot.slane %v2872_v55, 1 }
 0x358   : > { %v3100_v24 = vadd.f32 %v4680_v15, %v2823_v3  ;;  %v2469_v45 = vsel %vm805_vm4, %v2433_v11, %v2397_v44  ;;  %v2991_v3 = vsel %vm677_vm1, %v2989_v6, %v2990_v54 }
 0x35a   : > { %v3132_v12 = vadd.f32 %v3100_v24, %v3064_v57  ;;  %v3068_v24 = vsel %vm768_vm3, %v2991_v3, 0.0 }
 0x35b   : > { %v2574_v26 = vpop.f32.mrf.mxu3 }
 0x35c   : > { %v3164_v36 = vmax.f32 %v3132_v12, 0.0  ;;  %v2673_v10 = vpop.f32.mrf.mxu0  ;;  %v265_v12 = vld [vmem:[%s3681_s23 + $0x9c] sm:$0xff]  }
 0x35d   : > { %v2772_v1 = vpop.f32.mrf.mxu1  ;;  %v2674_v8 = vadd.f32 %v2673_v10, %v2574_v26  ;;  %v2873_v63 = vunpack.c.l.bf16 %v265_v12 }
 0x35e   : > { %3196 = vst [vmem:[%s4693_s14 + $0x90] sm:$0xff] %v3164_v36  ;;  %v2824_v30 = vadd.f32 %v2772_v1, %v2671_v0  ;;  %v2993_v0 = vsel %vm677_vm1, %v2990_v54, %v2992_v25  ;;  %v2874_v1 = vunpack.c.h.bf16 %v265_v12 }
 0x35f   : > { %v2994_v13 = vrot.slane %v2873_v63, 1 }
 0x360   : > { %v3101_v61 = vadd.f32 %v4680_v15, %v2824_v30  ;;  %v2995_v46 = vrot.slane %v2874_v1, 1 }
 0x362   : > { %v3133_v9 = vadd.f32 %v3101_v61, %v3065_v43  ;;  %v3069_v61 = vsel %vm768_vm3, %v2993_v0, 0.0  ;;  %v271_v0 = vld [vmem:[%s3681_s23 + $0xb4] sm:$0xff]  }
 0x363   : > { %v2576_v27 = vpop.f32.mrf.mxu3 }
 0x364   : > { %v3165_v53 = vmax.f32 %v3133_v9, 0.0  ;;  %v2675_v50 = vpop.f32.mrf.mxu0 }
 0x365   : > { %v2395_v16 = vpop.permute.xlu0 %2394  ;;  %v2775_v23 = vpop.f32.mrf.mxu1  ;;  %v2676_v32 = vadd.f32 %v2675_v50, %v2576_v27  ;;  %v2996_v50 = vsel %vm677_vm1, %v2994_v13, %v2995_v46 }
 0x366   : > { %3197 = vst [vmem:[%s4693_s14 + $0x98] sm:$0xff] %v3165_v53  ;;  %v2467_v40 = vsel %vm805_vm4, %v2431_v42, %v2395_v16  ;;  %v2825_v41 = vadd.f32 %v2775_v23, %v2674_v8  ;;  %v3070_v23 = vsel %vm768_vm3, %v2996_v50, 0.0  ;;  %v274_v50 = vld [vmem:[%s3681_s23 + $0xc0] sm:$0xff]  }
 0x367   : > { %3502 = vmatmul.msk.bf16.gmra.mxu3 %vm852_vm5, %v2467_v40  ;;  %3543 = vmatmul.msk.bf16.gmra.mxu1 %vm852_vm5, %v2467_v40  ;;  %v2997_v40 = vrot.slane %v2875_v58, 1 }
 0x368   : > { %v3102_v33 = vadd.f32 %v4680_v15, %v2825_v41 }
 0x36a   : > { %v3134_v56 = vadd.f32 %v3102_v33, %v3066_v22  ;;  %v2998_v33 = vsel %vm677_vm1, %v2995_v46, %v2997_v40  ;;  %v2882_v40 = vunpack.c.l.bf16 %v274_v50 }
 0x36b   : > { %v2579_v48 = vpop.f32.mrf.mxu3  ;;  %v3071_v2 = vsel %vm768_vm3, %v2998_v33, 0.0 }
 0x36c   : > { %v3166_v5 = vmax.f32 %v3134_v56, 0.0  ;;  %v2678_v38 = vpop.f32.mrf.mxu0 }
 0x36d   : > { %v2777_v59 = vpop.f32.mrf.mxu1  ;;  %v2679_v34 = vadd.f32 %v2678_v38, %v2579_v48  ;;  %v2876_v48 = vunpack.c.l.bf16 %v268_v21 }
 0x36e   : > { %3198 = vst [vmem:[%s4693_s14 + $0xa0] sm:$0xff] %v3166_v5  ;;  %v2826_v47 = vadd.f32 %v2777_v59, %v2676_v32 }
 0x370   : > { %v3103_v49 = vadd.f32 %v4680_v15, %v2826_v47  ;;  %v2999_v47 = vrot.slane %v2876_v48, 1  ;;  %v3009_v48 = vrot.slane %v2882_v40, 1 }
 0x372   : > { %v3135_v18 = vadd.f32 %v3103_v49, %v3067_v20  ;;  %v3622_v49 = vld [vmem:[%s3681_s23 + $0xb0] sm:$0x1]  ;;  %v3001_v44 = vsel %vm677_vm1, %v2999_v47, %v3000_v19 }
 0x373   : > { %v2581_v62 = vpop.f32.mrf.mxu3  ;;  %v2878_v6 = vunpack.c.l.bf16 %v3622_v49  ;;  %v3072_v55 = vsel %vm768_vm3, %v3001_v44, 0.0 }
 0x374   : > { %v3167_v39 = vmax.f32 %v3135_v18, 0.0  ;;  %v2680_v28 = vpop.f32.mrf.mxu0 }
 0x375   : > { %v2780_v52 = vpop.f32.mrf.mxu1  ;;  %v2681_v36 = vadd.f32 %v2680_v28, %v2581_v62 }
 0x376   : > { %3199 = vst [vmem:[%s4693_s14 + $0xa8] sm:$0xff] %v3167_v39  ;;  %v2827_v57 = vadd.f32 %v2780_v52, %v2679_v34  ;;  %v3002_v34 = vrot.slane %v2878_v6, 1 }
 0x377   : > { %3544 = vmatmul.msk.bf16.gmra.mxu1 %vm852_vm5, %v2469_v45 }
 0x378   : > { %v3104_v4 = vadd.f32 %v4680_v15, %v2827_v57  ;;  %v3003_v57 = vsel %vm677_vm1, %v3000_v19, %v3002_v34 }
 0x37a   : > { %v3136_v26 = vadd.f32 %v3104_v4, %v3068_v24  ;;  %v3073_v4 = vsel %vm768_vm3, %v3003_v57, 0.0 }
 0x37b   : > { %v2584_v14 = vpop.f32.mrf.mxu3 }
 0x37c   : > { %v3168_v10 = vmax.f32 %v3136_v26, 0.0  ;;  %v2683_v51 = vpop.f32.mrf.mxu0 }
 0x37d   : > { %v2782_v30 = vpop.f32.mrf.mxu1  ;;  %v2684_v27 = vadd.f32 %v2683_v51, %v2584_v14 }
 0x37e   : > { %3200 = vst [vmem:[%s4693_s14 + $0xb0] sm:$0xff] %v3168_v10  ;;  %v2828_v43 = vadd.f32 %v2782_v30, %v2681_v36  ;;  %v2879_v36 = vunpack.c.l.bf16 %v271_v0  ;;  %v2880_v10 = vunpack.c.h.bf16 %v271_v0 }
 0x380   : > { %v3105_v35 = vadd.f32 %v4680_v15, %v2828_v43  ;;  %v3004_v1 = vrot.slane %v2879_v36, 1  ;;  %v3005_v30 = vrot.slane %v2880_v10, 1  ;;  %v3623_v43 = vld [vmem:[%s3681_s23 + $0xbc] sm:$0x1] }
 0x382   : > { %v3137_v9 = vadd.f32 %v3105_v35, %v3069_v61  ;;  %v2881_v61 = vunpack.c.l.bf16 %v3623_v43  ;;  %v3006_v13 = vsel %vm677_vm1, %v3004_v1, %v3005_v30 }
 0x383   : > { %v2586_v53 = vpop.f32.mrf.mxu3  ;;  %v3074_v58 = vsel %vm768_vm3, %v3006_v13, 0.0 }
 0x384   : > { %v3169_v8 = vmax.f32 %v3137_v9, 0.0  ;;  %v2685_v7 = vpop.f32.mrf.mxu0 }
 0x385   : > { %v2785_v42 = vpop.f32.mrf.mxu1  ;;  %v2686_v60 = vadd.f32 %v2685_v7, %v2586_v53  ;;  %v3007_v53 = vrot.slane %v2881_v61, 1 }
 0x386   : > { %3201 = vst [vmem:[%s4693_s14 + $0xb8] sm:$0xff] %v3169_v8  ;;  %v2829_v16 = vadd.f32 %v2785_v42, %v2684_v27  ;;  %v3624_v27 = vld [vmem:[%s4946_s4] ss:$0 sm:$0xff] }
 0x388   : > { %v3106_v41 = vadd.f32 %v4680_v15, %v2829_v16 }
 0x38a   : > { %v3138_v22 = vadd.f32 %v3106_v41, %v3070_v23  ;;  %v3008_v23 = vsel %vm677_vm1, %v3005_v30, %v3007_v53  ;;  %v2883_v41 = vunpack.c.h.bf16 %v274_v50 }
 0x38b   : > { %v2589_v38 = vpop.f32.mrf.mxu3 }
 0x38c   : > { %v3170_v56 = vmax.f32 %v3138_v22, 0.0  ;;  %v2688_v29 = vpop.f32.mrf.mxu0  ;;  %v3010_v37 = vrot.slane %v2883_v41, 1 }
 0x38d   : > { %v2787_v32 = vpop.f32.mrf.mxu1  ;;  %v2689_v54 = vadd.f32 %v2688_v29, %v2589_v38  ;;  %v3625_v38 = vld [vmem:[%s3681_s23 + $0xc8] sm:$0x1] }
 0x38e   : > { %3202 = vst [vmem:[%s4693_s14 + $0xc0] sm:$0xff] %v3170_v56  ;;  %v2830_v5 = vadd.f32 %v2787_v32, %v2686_v60  ;;  %v3075_v60 = vsel %vm768_vm3, %v3008_v23, 0.0  ;;  %v2884_v29 = vunpack.c.l.bf16 %v3625_v38  ;;  %v3011_v47 = vsel %vm677_vm1, %v3009_v48, %v3010_v37 }
 0x38f   : > { %v3076_v49 = vsel %vm768_vm3, %v3011_v47, 0.0 }
 0x390   : > { %v3107_v59 = vadd.f32 %v4680_v15, %v2830_v5 }
 0x392   : > { %v3139_v20 = vadd.f32 %v3107_v59, %v3071_v2 }
 0x393   : > { %v2591_v39 = vpop.f32.mrf.mxu3 }
 0x394   : > { %v3171_v11 = vmax.f32 %v3139_v20, 0.0  ;;  %v2690_v45 = vpop.f32.mrf.mxu0 }
 0x395   : > { %v2790_v18 = vpop.f32.mrf.mxu1  ;;  %v2691_v3 = vadd.f32 %v2690_v45, %v2591_v39 }
 0x396   : > { %3203 = vst [vmem:[%s4693_s14 + $0xc8] sm:$0xff] %v3171_v11  ;;  %v2831_v31 = vadd.f32 %v2790_v18, %v2689_v54  ;;  %v3012_v54 = vrot.slane %v2884_v29, 1 }
 0x398   : > { %v3108_v62 = vadd.f32 %v4680_v15, %v2831_v31 }
 0x39a   : > { %v3140_v28 = vadd.f32 %v3108_v62, %v3072_v55  ;;  %v3013_v62 = vsel %vm677_vm1, %v3010_v37, %v3012_v54 }
 0x39b   : > { %v2594_v51 = vpop.f32.mrf.mxu3  ;;  %v3077_v45 = vsel %vm768_vm3, %v3013_v62, 0.0 }
 0x39c   : > { %v3172_v52 = vmax.f32 %v3140_v28, 0.0  ;;  %v2693_v63 = vpop.f32.mrf.mxu0 }
 0x39d   : > { %v2792_v24 = vpop.f32.mrf.mxu1  ;;  %v2694_v35 = vadd.f32 %v2693_v63, %v2594_v51 }
 0x39e   : > { %3204 = vst [vmem:[%s4693_s14 + $0xd0] sm:$0xff] %v3172_v52  ;;  %v2832_v25 = vadd.f32 %v2792_v24, %v2691_v3 }
 0x3a0   : > { %v3109_v12 = vadd.f32 %v4680_v15, %v2832_v25 }
 0x3a2   : > { %v3141_v26 = vadd.f32 %v3109_v12, %v3073_v4 }
 0x3a3   : > { %v2596_v15 = vpop.f32.mrf.mxu3 }
 0x3a4   : > { %v3173_v14 = vmax.f32 %v3141_v26, 0.0  ;;  %v2695_v17 = vpop.f32.mrf.mxu0 }
 0x3a5   : > { %v2696_v42 = vadd.f32 %v2695_v17, %v2596_v15 }
 0x3a6   : > { %3205 = vst [vmem:[%s4693_s14 + $0xd8] sm:$0xff] %v3173_v14 }
 0x3ac   : > { %v2698_v32 = vpop.f32.mrf.mxu0 }
 0x3b4   : > { %v2700_v18 = vpop.f32.mrf.mxu0 }
 0x3e4   : > { %v2795_v46 = vpop.f32.mrf.mxu1 }
 0x3e5   : > { %v2833_v9 = vadd.f32 %v2795_v46, %v2694_v35 }
 0x3e7   : > { %v3110_v8 = vadd.f32 %v3624_v27, %v2833_v9 }
 0x3e9   : > { %v3142_v7 = vadd.f32 %v3110_v8, %v3074_v58 }
 0x3ea   : > { %v2599_v33 = vpop.f32.mrf.mxu3 }
 0x3eb   : > { %v3174_v16 = vmax.f32 %v3142_v7, 0.0  ;;  %v2699_v2 = vadd.f32 %v2698_v32, %v2599_v33 }
 0x3ec   : > { %v2797_v21 = vpop.f32.mrf.mxu1 }
 0x3ed   : > { %3206 = vst [vmem:[%s4693_s14 + $0xe0] sm:$0xff] %v3174_v16  ;;  %v2834_v22 = vadd.f32 %v2797_v21, %v2696_v42 }
 0x3ef   : > { %v3111_v56 = vadd.f32 %v3624_v27, %v2834_v22 }
 0x3f1   : > { %v3143_v5 = vadd.f32 %v3111_v56, %v3075_v60 }
 0x3f2   : > { %v2601_v11 = vpop.f32.mrf.mxu3 }
 0x3f3   : > { %v3175_v59 = vmax.f32 %v3143_v5, 0.0  ;;  %v2701_v31 = vadd.f32 %v2700_v18, %v2601_v11 }
 0x3f4   : > { %v2800_v19 = vpop.f32.mrf.mxu1 }
 0x3f5   : > { %3207 = vst [vmem:[%s4693_s14 + $0xe8] sm:$0xff] %v3175_v59  ;;  %v2835_v20 = vadd.f32 %v2800_v19, %v2699_v2 }
 0x3f7   : > { %v3112_v6 = vadd.f32 %v3624_v27, %v2835_v20 }
 0x3f9   : > { %v3144_v44 = vadd.f32 %v3112_v6, %v3076_v49 }
 0x3fb   : > { %v3176_v55 = vmax.f32 %v3144_v44, 0.0 }
 0x3fc   : > { %v2802_v34 = vpop.f32.mrf.mxu1 }
 0x3fd   : > { %3208 = vst [vmem:[%s4693_s14 + $0xf0] sm:$0xff] %v3176_v55  ;;  %v2836_v39 = vadd.f32 %v2802_v34, %v2701_v31 }
 0x3ff   : > { %v3113_v28 = vadd.f32 %v3624_v27, %v2836_v39 }
 0x401   : > { %v3145_v3 = vadd.f32 %v3113_v28, %v3077_v45 }
 0x403   : > { %v3177_v52 = vmax.f32 %v3145_v3, 0.0 }
 0x405   : > { %3209 = vst [vmem:[%s4693_s14 + $0xf8] sm:$0xff] %v3177_v52 }
 0x406 PF: > { %s15_s18 = sadd.s32 1, %s3632_s18  }
 0x407   : > { %p12_p4 = scmp.ge.s32.totalorder %s15_s18, 4  }
 0x409   :  { %14 = sbr.rel (!%p12_p4) target bundleno = 1 (0x1), region = 76 }

</bundles_post_ra>
